<compile_context>
chip_gen: v7x
topology: tpu7x:2x2x1
jax: 0.10.0
libtpu: 0.0.40
codegen_flags: <defaults>
</compile_context>

<pallas_src>
import functools

import jax
import jax.numpy as jnp
from jax import lax
from jax.experimental import pallas as pl
from jax.experimental.pallas import tpu as pltpu


def _attention_kernel(x_ref, wqkv_ref, wproj_ref, bproj_ref, o_ref,
                      qkv_scr, head_scr, *, num_heads, head_dim, n_pix,
                      batch_block, scale):
    # x_ref:     (1, C, BB*N) bf16      wqkv_ref: (3C, C) bf16
    # wproj_ref: (C, C) bf16            bproj_ref: (C, 1) f32
    # o_ref:     (1, C, BB*N) f32
    # qkv_scr:   VMEM (3C, BB*N) f32    head_scr: VMEM (C, BB*N) f32
    x = x_ref[0]                                                   # (C, BB*N)

    # QKV 1x1 conv == channel matmul; lane-dense (BB*N wide), f32 accumulation.
    qkv_scr[...] = jnp.dot(wqkv_ref[...], x,
                           preferred_element_type=jnp.float32)     # (3C, BB*N)

    qkv_stride = 3 * head_dim

    # Fully unrolled (static Python) head x batch loops: every slice start is
    # a compile-time constant and all per-head bodies are independent, giving
    # the scheduler the ILP a rolled loop would hide.
    for h in range(num_heads):
        base = h * qkv_stride            # q rows: [base, base+hd)
        orow = h * head_dim
        for b in range(batch_block):     # static column (lane) offsets
            c0 = b * n_pix
            q = qkv_scr[pl.ds(base, head_dim),
                        pl.ds(c0, n_pix)].astype(jnp.bfloat16)
            k = qkv_scr[pl.ds(base + head_dim, head_dim),
                        pl.ds(c0, n_pix)].astype(jnp.bfloat16)
            v = qkv_scr[pl.ds(base + 2 * head_dim, head_dim),
                        pl.ds(c0, n_pix)].astype(jnp.bfloat16)

            # attn[i, j] = scale * sum_d k[d, i] * q[d, j]  (no explicit k.T)
            attn = lax.dot_general(
                k, q, (((0,), (0,)), ((), ())),
                preferred_element_type=jnp.float32) * scale        # (N, N)

            # softmax over the key index (PyTorch dim=-2), f32 math; the
            # 1/colsum normalisation is folded into the (hd, N) output.
            m = jnp.max(attn, axis=0, keepdims=True)               # (1, N)
            e = jnp.exp(attn - m)                                  # (N, N)
            colsum = jnp.sum(e, axis=0, keepdims=True)             # (1, N)

            # out_h[d, j] = (sum_i v[d, i] * e[i, j]) / colsum[j]
            out_h = jnp.dot(v, e.astype(jnp.bfloat16),
                            preferred_element_type=jnp.float32)    # (hd, N)
            out_h = out_h * pl.reciprocal(colsum)                  # exact
            head_scr[pl.ds(orow, head_dim), pl.ds(c0, n_pix)] = out_h

    # proj 1x1 conv (with bias) over concatenated head outputs; lane dense.
    out = jnp.dot(wproj_ref[...], head_scr[...].astype(jnp.bfloat16),
                  preferred_element_type=jnp.float32) + bproj_ref[...]
    o_ref[0] = out.astype(o_ref.dtype)


def _default_batch_block(B, N):
    """Fold batch into lanes only where it helps the hardware generation."""
    if not (N < 128 and B % 2 == 0):
        return 1
    # On v7x (2 TensorCores / chip) keep grid=(B,) with 'parallel' semantics
    # so both cores run; lane density loses to idling a whole core there.
    try:
        kind = jax.devices()[0].device_kind.lower()
        if "v7" in kind or "7x" in kind:
            return 1
    except Exception:
        pass
    return 2   # v5e / v6e: single TC, prefer 128-lane-dense tiles.


def attention_forward(x, w_qkv, w_proj, b_proj, *, num_heads, batch_block=None):
    """x: (B, C, H, W) NCHW; w_qkv: (3C, C); w_proj: (C, C); b_proj: (C,)."""
    B, C, H, W = x.shape
    N = H * W
    head_dim = C // num_heads
    scale = head_dim ** (-0.5)

    if batch_block is None:
        batch_block = _default_batch_block(B, N)
    G = B // batch_block
    bbN = batch_block * N

    # (B, C, H, W) -> (G, C, batch_block*N): lane-dense tiles (layout plumbing).
    x_folded = (x.reshape(G, batch_block, C, N)
                 .transpose(0, 2, 1, 3)
                 .reshape(G, C, bbN))

    x_bf = x_folded.astype(jnp.bfloat16)
    wqkv_bf = w_qkv.astype(jnp.bfloat16)
    wproj_bf = w_proj.astype(jnp.bfloat16)
    # (C, 1) bias block: varies along sublanes of the (C, BB*N) output, so a
    # (1, C) block would need a lanes->sublanes relayout in-kernel.
    bproj2 = b_proj.reshape(C, 1).astype(jnp.float32)

    kernel = functools.partial(_attention_kernel, num_heads=num_heads,
                               head_dim=head_dim, n_pix=N,
                               batch_block=batch_block, scale=scale)

    # Advisory cost hint: this call is tiny and latency-bound; help XLA
    # overlap it with the surrounding fold/unfold transposes.
    flops = (2 * B * N * C * (3 * C)                       # qkv 1x1 conv
             + 2 * B * num_heads * (2 * N * N * head_dim)  # k^T q  and  v @ p
             + 2 * B * N * C * C)                          # proj 1x1 conv
    transcendentals = B * num_heads * N * N                # exp
    bytes_accessed = (B * C * N * 2            # x (bf16 in)
                      + B * C * N * 4          # out (f32)
                      + 3 * C * C * 2          # w_qkv (bf16)
                      + C * C * 2              # w_proj (bf16)
                      + C * 4)                 # bias (f32)
    cost = pl.CostEstimate(flops=flops, transcendentals=transcendentals,
                           bytes_accessed=bytes_accessed)

    out_folded = pl.pallas_call(
        kernel,
        out_shape=jax.ShapeDtypeStruct((G, C, bbN), x.dtype),
        grid_spec=pltpu.PrefetchScalarGridSpec(
            num_scalar_prefetch=0,
            grid=(G,),
            in_specs=[
                pl.BlockSpec((1, C, bbN), lambda g: (g, 0, 0)),   # x (folded)
                pl.BlockSpec((3 * C, C), lambda g: (0, 0)),       # qkv weight
                pl.BlockSpec((C, C), lambda g: (0, 0)),           # proj weight
                pl.BlockSpec((C, 1), lambda g: (0, 0)),           # proj bias
            ],
            out_specs=pl.BlockSpec((1, C, bbN), lambda g: (g, 0, 0)),
            scratch_shapes=[
                pltpu.VMEM((3 * C, bbN), jnp.float32),            # qkv
                pltpu.VMEM((C, bbN), jnp.float32),                # head outputs
            ],
        ),
        compiler_params=pltpu.CompilerParams(
            dimension_semantics=("parallel",)),
        cost_estimate=cost,
    )(x_bf, wqkv_bf, wproj_bf, bproj2)

    out = (out_folded.reshape(G, C, batch_block, N)
                     .transpose(0, 2, 1, 3)
                     .reshape(B, C, H, W))
    return out


def attention_reference(x, w_qkv, w_proj, b_proj, *, num_heads):
    """Pure-JAX f32 reference mirroring the PyTorch forward exactly."""
    B, C, H, W = x.shape
    N = H * W
    hd = C // num_heads
    scale = hd ** (-0.5)
    xf = x.reshape(B, C, N)
    qkv = jnp.einsum('oc,bcn->bon', w_qkv, xf)                # (B, 3C, N)
    qkv = qkv.reshape(B, num_heads, 3 * hd, N)
    q, k, v = qkv[:, :, :hd], qkv[:, :, hd:2 * hd], qkv[:, :, 2 * hd:]
    attn = jnp.einsum('bhdi,bhdj->bhij', k, q) * scale        # (B, nh, N, N)
    attn = jax.nn.softmax(attn, axis=-2)
    out = jnp.einsum('bhdi,bhij->bhdj', v, attn).reshape(B, C, N)
    out = jnp.einsum('oc,bcn->bon', w_proj, out) + b_proj[None, :, None]
    return out.reshape(B, C, H, W)


if __name__ == "__main__":
    B, dim, H, W = 2, 64, 8, 8
    num_heads = 8

    key = jax.random.PRNGKey(0)
    kx, kw1, kw2, kb = jax.random.split(key, 4)
    x = jax.random.normal(kx, (B, dim, H, W), dtype=jnp.float32)
    # nn.Conv2d(dim, dim*3, 1, bias=False) weight, squeezed from (3C, C, 1, 1)
    w_qkv = 0.05 * jax.random.normal(kw1, (3 * dim, dim), dtype=jnp.float32)
    # nn.Conv2d(dim, dim, 1) weight + bias
    w_proj = 0.05 * jax.random.normal(kw2, (dim, dim), dtype=jnp.float32)
    b_proj = 0.05 * jax.random.normal(kb, (dim,), dtype=jnp.float32)

    out = attention_forward(x, w_qkv, w_proj, b_proj, num_heads=num_heads)
    out = jax.block_until_ready(out)

    ref = attention_reference(x, w_qkv, w_proj, b_proj, num_heads=num_heads)
    assert out.shape == (B, dim, H, W)
    # Tolerance sized for bf16 MXU inputs with f32 accumulation.
    assert jnp.allclose(out, ref, atol=1e-2, rtol=1e-2), "mismatch vs reference"

    print("KERNEL_OK")
</pallas_src>

<mosaic_0001>
module attributes {stable_mosaic.version = 11 : i64} {
  func.func @_attention_kernel(%arg0: i32, %arg1: memref<1x64x128xbf16, #tpu.memory_space<vmem>>, %arg2: memref<192x64xbf16, #tpu.memory_space<vmem>>, %arg3: memref<64x64xbf16, #tpu.memory_space<vmem>>, %arg4: memref<64x1xf32, #tpu.memory_space<vmem>>, %arg5: memref<1x64x128xf32, #tpu.memory_space<vmem>>, %arg6: memref<192x128xf32, #tpu.memory_space<vmem>>, %arg7: memref<64x128xf32, #tpu.memory_space<vmem>>) attributes {dimension_semantics = [#tpu.dimension_semantics<parallel>], iteration_bounds = array<i64: 1>, scalar_prefetch = 0 : i64, scratch_operands = 2 : i64, tpu.core_type = #tpu.core_type<tc>, window_params = [{transform_indices = @transform_0, window_bounds = array<i64: 1, 64, 128>}, {pipeline_mode = #tpu.pipeline_mode<synchronous>, transform_indices = @transform_1, window_bounds = array<i64: 192, 64>}, {pipeline_mode = #tpu.pipeline_mode<synchronous>, transform_indices = @transform_2, window_bounds = array<i64: 64, 64>}, {pipeline_mode = #tpu.pipeline_mode<synchronous>, transform_indices = @transform_3, window_bounds = array<i64: 64, 1>}, {transform_indices = @transform_4, window_bounds = array<i64: 1, 64, 128>}]} {
    %c0 = arith.constant 0 : index
    %c0_0 = arith.constant 0 : index
    %c0_1 = arith.constant 0 : index
    %0 = vector.load %arg1[%c0, %c0_0, %c0_1] : memref<1x64x128xbf16, #tpu.memory_space<vmem>>, vector<1x64x128xbf16>
    %1 = vector.shape_cast %0 : vector<1x64x128xbf16> to vector<64x128xbf16>
    %c0_2 = arith.constant 0 : index
    %c0_3 = arith.constant 0 : index
    %2 = vector.load %arg2[%c0_2, %c0_3] : memref<192x64xbf16, #tpu.memory_space<vmem>>, vector<192x64xbf16>
    %cst = arith.constant dense<0.000000e+00> : vector<192x128xf32>
    %3 = tpu.matmul %2, %1, %cst {dimension_numbers = #tpu.dot_dimension_numbers<[1], [0], [0], [1], [0, 0, 1, 1], [], []>} : vector<192x64xbf16>, vector<64x128xbf16>, vector<192x128xf32> -> vector<192x128xf32>
    %c0_4 = arith.constant 0 : index
    %c0_5 = arith.constant 0 : index
    %4 = vector.load %arg6[%c0_4, %c0_5] : memref<192x128xf32, #tpu.memory_space<vmem>>, vector<192x128xf32>
    tpu.vector_store %arg6[%c0_4, %c0_5], %3 {strides = array<i32>} : memref<192x128xf32, #tpu.memory_space<vmem>>, vector<192x128xf32>,
    %c0_6 = arith.constant 0 : index
    %c0_7 = arith.constant 0 : index
    %5 = vector.load %arg6[%c0_6, %c0_7] : memref<192x128xf32, #tpu.memory_space<vmem>>, vector<8x64xf32>
    %6 = arith.truncf %5 : vector<8x64xf32> to vector<8x64xbf16>
    %c8 = arith.constant 8 : index
    %c0_8 = arith.constant 0 : index
    %7 = vector.load %arg6[%c8, %c0_8] : memref<192x128xf32, #tpu.memory_space<vmem>>, vector<8x64xf32>
    %8 = arith.truncf %7 : vector<8x64xf32> to vector<8x64xbf16>
    %c16 = arith.constant 16 : index
    %c0_9 = arith.constant 0 : index
    %9 = vector.load %arg6[%c16, %c0_9] : memref<192x128xf32, #tpu.memory_space<vmem>>, vector<8x64xf32>
    %10 = arith.truncf %9 : vector<8x64xf32> to vector<8x64xbf16>
    %cst_10 = arith.constant dense<0.000000e+00> : vector<64x64xf32>
    %11 = tpu.matmul %8, %6, %cst_10 {dimension_numbers = #tpu.dot_dimension_numbers<[0], [0], [1], [1], [0, 1, 1, 1], [], []>} : vector<8x64xbf16>, vector<8x64xbf16>, vector<64x64xf32> -> vector<64x64xf32>
    %cst_11 = arith.constant 0.353553385 : f32
    %12 = vector.broadcast %cst_11 : f32 to vector<64x64xf32>
    %13 = arith.mulf %11, %12 : vector<64x64xf32>
    %cst_12 = arith.constant dense<0xFF800000> : vector<64xf32>
    %14 = vector.multi_reduction <maximumf>, %13, %cst_12 [0] : vector<64x64xf32> to vector<64xf32>
    %15 = vector.shape_cast %14 : vector<64xf32> to vector<1x64xf32>
    %16 = vector.broadcast %15 : vector<1x64xf32> to vector<64x64xf32>
    %17 = arith.subf %13, %16 : vector<64x64xf32>
    %18 = math.exp %17 : vector<64x64xf32>
    %cst_13 = arith.constant dense<0.000000e+00> : vector<64xf32>
    %19 = vector.multi_reduction <add>, %18, %cst_13 [0] : vector<64x64xf32> to vector<64xf32>
    %20 = vector.shape_cast %19 : vector<64xf32> to vector<1x64xf32>
    %21 = arith.truncf %18 : vector<64x64xf32> to vector<64x64xbf16>
    %cst_14 = arith.constant dense<0.000000e+00> : vector<8x64xf32>
    %22 = tpu.matmul %10, %21, %cst_14 {dimension_numbers = #tpu.dot_dimension_numbers<[1], [0], [0], [1], [0, 0, 1, 1], [], []>} : vector<8x64xbf16>, vector<64x64xbf16>, vector<8x64xf32> -> vector<8x64xf32>
    %23 = tpu.reciprocal %20 : vector<1x64xf32> -> vector<1x64xf32>
    %24 = vector.broadcast %23 : vector<1x64xf32> to vector<8x64xf32>
    %25 = arith.mulf %22, %24 : vector<8x64xf32>
    %c0_15 = arith.constant 0 : index
    %c0_16 = arith.constant 0 : index
    %26 = vector.load %arg7[%c0_15, %c0_16] : memref<64x128xf32, #tpu.memory_space<vmem>>, vector<8x64xf32>
    tpu.vector_store %arg7[%c0_15, %c0_16], %25 {strides = array<i32>} : memref<64x128xf32, #tpu.memory_space<vmem>>, vector<8x64xf32>,
    %c0_17 = arith.constant 0 : index
    %c64 = arith.constant 64 : index
    %27 = vector.load %arg6[%c0_17, %c64] : memref<192x128xf32, #tpu.memory_space<vmem>>, vector<8x64xf32>
    %28 = arith.truncf %27 : vector<8x64xf32> to vector<8x64xbf16>
    %c8_18 = arith.constant 8 : index
    %c64_19 = arith.constant 64 : index
    %29 = vector.load %arg6[%c8_18, %c64_19] : memref<192x128xf32, #tpu.memory_space<vmem>>, vector<8x64xf32>
    %30 = arith.truncf %29 : vector<8x64xf32> to vector<8x64xbf16>
    %c16_20 = arith.constant 16 : index
    %c64_21 = arith.constant 64 : index
    %31 = vector.load %arg6[%c16_20, %c64_21] : memref<192x128xf32, #tpu.memory_space<vmem>>, vector<8x64xf32>
    %32 = arith.truncf %31 : vector<8x64xf32> to vector<8x64xbf16>
    %cst_22 = arith.constant dense<0.000000e+00> : vector<64x64xf32>
    %33 = tpu.matmul %30, %28, %cst_22 {dimension_numbers = #tpu.dot_dimension_numbers<[0], [0], [1], [1], [0, 1, 1, 1], [], []>} : vector<8x64xbf16>, vector<8x64xbf16>, vector<64x64xf32> -> vector<64x64xf32>
    %cst_23 = arith.constant 0.353553385 : f32
    %34 = vector.broadcast %cst_23 : f32 to vector<64x64xf32>
    %35 = arith.mulf %33, %34 : vector<64x64xf32>
    %cst_24 = arith.constant dense<0xFF800000> : vector<64xf32>
    %36 = vector.multi_reduction <maximumf>, %35, %cst_24 [0] : vector<64x64xf32> to vector<64xf32>
    %37 = vector.shape_cast %36 : vector<64xf32> to vector<1x64xf32>
    %38 = vector.broadcast %37 : vector<1x64xf32> to vector<64x64xf32>
    %39 = arith.subf %35, %38 : vector<64x64xf32>
    %40 = math.exp %39 : vector<64x64xf32>
    %cst_25 = arith.constant dense<0.000000e+00> : vector<64xf32>
    %41 = vector.multi_reduction <add>, %40, %cst_25 [0] : vector<64x64xf32> to vector<64xf32>
    %42 = vector.shape_cast %41 : vector<64xf32> to vector<1x64xf32>
    %43 = arith.truncf %40 : vector<64x64xf32> to vector<64x64xbf16>
    %cst_26 = arith.constant dense<0.000000e+00> : vector<8x64xf32>
    %44 = tpu.matmul %32, %43, %cst_26 {dimension_numbers = #tpu.dot_dimension_numbers<[1], [0], [0], [1], [0, 0, 1, 1], [], []>} : vector<8x64xbf16>, vector<64x64xbf16>, vector<8x64xf32> -> vector<8x64xf32>
    %45 = tpu.reciprocal %42 : vector<1x64xf32> -> vector<1x64xf32>
    %46 = vector.broadcast %45 : vector<1x64xf32> to vector<8x64xf32>
    %47 = arith.mulf %44, %46 : vector<8x64xf32>
    %c0_27 = arith.constant 0 : index
    %c64_28 = arith.constant 64 : index
    %48 = vector.load %arg7[%c0_27, %c64_28] : memref<64x128xf32, #tpu.memory_space<vmem>>, vector<8x64xf32>
    tpu.vector_store %arg7[%c0_27, %c64_28], %47 {strides = array<i32>} : memref<64x128xf32, #tpu.memory_space<vmem>>, vector<8x64xf32>,
    %c24 = arith.constant 24 : index
    %c0_29 = arith.constant 0 : index
    %49 = vector.load %arg6[%c24, %c0_29] : memref<192x128xf32, #tpu.memory_space<vmem>>, vector<8x64xf32>
    %50 = arith.truncf %49 : vector<8x64xf32> to vector<8x64xbf16>
    %c32 = arith.constant 32 : index
    %c0_30 = arith.constant 0 : index
    %51 = vector.load %arg6[%c32, %c0_30] : memref<192x128xf32, #tpu.memory_space<vmem>>, vector<8x64xf32>
    %52 = arith.truncf %51 : vector<8x64xf32> to vector<8x64xbf16>
    %c40 = arith.constant 40 : index
    %c0_31 = arith.constant 0 : index
    %53 = vector.load %arg6[%c40, %c0_31] : memref<192x128xf32, #tpu.memory_space<vmem>>, vector<8x64xf32>
    %54 = arith.truncf %53 : vector<8x64xf32> to vector<8x64xbf16>
    %cst_32 = arith.constant dense<0.000000e+00> : vector<64x64xf32>
    %55 = tpu.matmul %52, %50, %cst_32 {dimension_numbers = #tpu.dot_dimension_numbers<[0], [0], [1], [1], [0, 1, 1, 1], [], []>} : vector<8x64xbf16>, vector<8x64xbf16>, vector<64x64xf32> -> vector<64x64xf32>
    %cst_33 = arith.constant 0.353553385 : f32
    %56 = vector.broadcast %cst_33 : f32 to vector<64x64xf32>
    %57 = arith.mulf %55, %56 : vector<64x64xf32>
    %cst_34 = arith.constant dense<0xFF800000> : vector<64xf32>
    %58 = vector.multi_reduction <maximumf>, %57, %cst_34 [0] : vector<64x64xf32> to vector<64xf32>
    %59 = vector.shape_cast %58 : vector<64xf32> to vector<1x64xf32>
    %60 = vector.broadcast %59 : vector<1x64xf32> to vector<64x64xf32>
    %61 = arith.subf %57, %60 : vector<64x64xf32>
    %62 = math.exp %61 : vector<64x64xf32>
    %cst_35 = arith.constant dense<0.000000e+00> : vector<64xf32>
    %63 = vector.multi_reduction <add>, %62, %cst_35 [0] : vector<64x64xf32> to vector<64xf32>
    %64 = vector.shape_cast %63 : vector<64xf32> to vector<1x64xf32>
    %65 = arith.truncf %62 : vector<64x64xf32> to vector<64x64xbf16>
    %cst_36 = arith.constant dense<0.000000e+00> : vector<8x64xf32>
    %66 = tpu.matmul %54, %65, %cst_36 {dimension_numbers = #tpu.dot_dimension_numbers<[1], [0], [0], [1], [0, 0, 1, 1], [], []>} : vector<8x64xbf16>, vector<64x64xbf16>, vector<8x64xf32> -> vector<8x64xf32>
    %67 = tpu.reciprocal %64 : vector<1x64xf32> -> vector<1x64xf32>
    %68 = vector.broadcast %67 : vector<1x64xf32> to vector<8x64xf32>
    %69 = arith.mulf %66, %68 : vector<8x64xf32>
    %c8_37 = arith.constant 8 : index
    %c0_38 = arith.constant 0 : index
    %70 = vector.load %arg7[%c8_37, %c0_38] : memref<64x128xf32, #tpu.memory_space<vmem>>, vector<8x64xf32>
    tpu.vector_store %arg7[%c8_37, %c0_38], %69 {strides = array<i32>} : memref<64x128xf32, #tpu.memory_space<vmem>>, vector<8x64xf32>,
    %c24_39 = arith.constant 24 : index
    %c64_40 = arith.constant 64 : index
    %71 = vector.load %arg6[%c24_39, %c64_40] : memref<192x128xf32, #tpu.memory_space<vmem>>, vector<8x64xf32>
    %72 = arith.truncf %71 : vector<8x64xf32> to vector<8x64xbf16>
    %c32_41 = arith.constant 32 : index
    %c64_42 = arith.constant 64 : index
    %73 = vector.load %arg6[%c32_41, %c64_42] : memref<192x128xf32, #tpu.memory_space<vmem>>, vector<8x64xf32>
    %74 = arith.truncf %73 : vector<8x64xf32> to vector<8x64xbf16>
    %c40_43 = arith.constant 40 : index
    %c64_44 = arith.constant 64 : index
    %75 = vector.load %arg6[%c40_43, %c64_44] : memref<192x128xf32, #tpu.memory_space<vmem>>, vector<8x64xf32>
    %76 = arith.truncf %75 : vector<8x64xf32> to vector<8x64xbf16>
    %cst_45 = arith.constant dense<0.000000e+00> : vector<64x64xf32>
    %77 = tpu.matmul %74, %72, %cst_45 {dimension_numbers = #tpu.dot_dimension_numbers<[0], [0], [1], [1], [0, 1, 1, 1], [], []>} : vector<8x64xbf16>, vector<8x64xbf16>, vector<64x64xf32> -> vector<64x64xf32>
    %cst_46 = arith.constant 0.353553385 : f32
    %78 = vector.broadcast %cst_46 : f32 to vector<64x64xf32>
    %79 = arith.mulf %77, %78 : vector<64x64xf32>
    %cst_47 = arith.constant dense<0xFF800000> : vector<64xf32>
    %80 = vector.multi_reduction <maximumf>, %79, %cst_47 [0] : vector<64x64xf32> to vector<64xf32>
    %81 = vector.shape_cast %80 : vector<64xf32> to vector<1x64xf32>
    %82 = vector.broadcast %81 : vector<1x64xf32> to vector<64x64xf32>
    %83 = arith.subf %79, %82 : vector<64x64xf32>
    %84 = math.exp %83 : vector<64x64xf32>
    %cst_48 = arith.constant dense<0.000000e+00> : vector<64xf32>
    %85 = vector.multi_reduction <add>, %84, %cst_48 [0] : vector<64x64xf32> to vector<64xf32>
    %86 = vector.shape_cast %85 : vector<64xf32> to vector<1x64xf32>
    %87 = arith.truncf %84 : vector<64x64xf32> to vector<64x64xbf16>
    %cst_49 = arith.constant dense<0.000000e+00> : vector<8x64xf32>
    %88 = tpu.matmul %76, %87, %cst_49 {dimension_numbers = #tpu.dot_dimension_numbers<[1], [0], [0], [1], [0, 0, 1, 1], [], []>} : vector<8x64xbf16>, vector<64x64xbf16>, vector<8x64xf32> -> vector<8x64xf32>
    %89 = tpu.reciprocal %86 : vector<1x64xf32> -> vector<1x64xf32>
    %90 = vector.broadcast %89 : vector<1x64xf32> to vector<8x64xf32>
    %91 = arith.mulf %88, %90 : vector<8x64xf32>
    %c8_50 = arith.constant 8 : index
    %c64_51 = arith.constant 64 : index
    %92 = vector.load %arg7[%c8_50, %c64_51] : memref<64x128xf32, #tpu.memory_space<vmem>>, vector<8x64xf32>
    tpu.vector_store %arg7[%c8_50, %c64_51], %91 {strides = array<i32>} : memref<64x128xf32, #tpu.memory_space<vmem>>, vector<8x64xf32>,
    %c48 = arith.constant 48 : index
    %c0_52 = arith.constant 0 : index
    %93 = vector.load %arg6[%c48, %c0_52] : memref<192x128xf32, #tpu.memory_space<vmem>>, vector<8x64xf32>
    %94 = arith.truncf %93 : vector<8x64xf32> to vector<8x64xbf16>
    %c56 = arith.constant 56 : index
    %c0_53 = arith.constant 0 : index
    %95 = vector.load %arg6[%c56, %c0_53] : memref<192x128xf32, #tpu.memory_space<vmem>>, vector<8x64xf32>
    %96 = arith.truncf %95 : vector<8x64xf32> to vector<8x64xbf16>
    %c64_54 = arith.constant 64 : index
    %c0_55 = arith.constant 0 : index
    %97 = vector.load %arg6[%c64_54, %c0_55] : memref<192x128xf32, #tpu.memory_space<vmem>>, vector<8x64xf32>
    %98 = arith.truncf %97 : vector<8x64xf32> to vector<8x64xbf16>
    %cst_56 = arith.constant dense<0.000000e+00> : vector<64x64xf32>
    %99 = tpu.matmul %96, %94, %cst_56 {dimension_numbers = #tpu.dot_dimension_numbers<[0], [0], [1], [1], [0, 1, 1, 1], [], []>} : vector<8x64xbf16>, vector<8x64xbf16>, vector<64x64xf32> -> vector<64x64xf32>
    %cst_57 = arith.constant 0.353553385 : f32
    %100 = vector.broadcast %cst_57 : f32 to vector<64x64xf32>
    %101 = arith.mulf %99, %100 : vector<64x64xf32>
    %cst_58 = arith.constant dense<0xFF800000> : vector<64xf32>
    %102 = vector.multi_reduction <maximumf>, %101, %cst_58 [0] : vector<64x64xf32> to vector<64xf32>
    %103 = vector.shape_cast %102 : vector<64xf32> to vector<1x64xf32>
    %104 = vector.broadcast %103 : vector<1x64xf32> to vector<64x64xf32>
    %105 = arith.subf %101, %104 : vector<64x64xf32>
    %106 = math.exp %105 : vector<64x64xf32>
    %cst_59 = arith.constant dense<0.000000e+00> : vector<64xf32>
    %107 = vector.multi_reduction <add>, %106, %cst_59 [0] : vector<64x64xf32> to vector<64xf32>
    %108 = vector.shape_cast %107 : vector<64xf32> to vector<1x64xf32>
    %109 = arith.truncf %106 : vector<64x64xf32> to vector<64x64xbf16>
    %cst_60 = arith.constant dense<0.000000e+00> : vector<8x64xf32>
    %110 = tpu.matmul %98, %109, %cst_60 {dimension_numbers = #tpu.dot_dimension_numbers<[1], [0], [0], [1], [0, 0, 1, 1], [], []>} : vector<8x64xbf16>, vector<64x64xbf16>, vector<8x64xf32> -> vector<8x64xf32>
    %111 = tpu.reciprocal %108 : vector<1x64xf32> -> vector<1x64xf32>
    %112 = vector.broadcast %111 : vector<1x64xf32> to vector<8x64xf32>
    %113 = arith.mulf %110, %112 : vector<8x64xf32>
    %c16_61 = arith.constant 16 : index
    %c0_62 = arith.constant 0 : index
    %114 = vector.load %arg7[%c16_61, %c0_62] : memref<64x128xf32, #tpu.memory_space<vmem>>, vector<8x64xf32>
    tpu.vector_store %arg7[%c16_61, %c0_62], %113 {strides = array<i32>} : memref<64x128xf32, #tpu.memory_space<vmem>>, vector<8x64xf32>,
    %c48_63 = arith.constant 48 : index
    %c64_64 = arith.constant 64 : index
    %115 = vector.load %arg6[%c48_63, %c64_64] : memref<192x128xf32, #tpu.memory_space<vmem>>, vector<8x64xf32>
    %116 = arith.truncf %115 : vector<8x64xf32> to vector<8x64xbf16>
    %c56_65 = arith.constant 56 : index
    %c64_66 = arith.constant 64 : index
    %117 = vector.load %arg6[%c56_65, %c64_66] : memref<192x128xf32, #tpu.memory_space<vmem>>, vector<8x64xf32>
    %118 = arith.truncf %117 : vector<8x64xf32> to vector<8x64xbf16>
    %c64_67 = arith.constant 64 : index
    %c64_68 = arith.constant 64 : index
    %119 = vector.load %arg6[%c64_67, %c64_68] : memref<192x128xf32, #tpu.memory_space<vmem>>, vector<8x64xf32>
    %120 = arith.truncf %119 : vector<8x64xf32> to vector<8x64xbf16>
    %cst_69 = arith.constant dense<0.000000e+00> : vector<64x64xf32>
    %121 = tpu.matmul %118, %116, %cst_69 {dimension_numbers = #tpu.dot_dimension_numbers<[0], [0], [1], [1], [0, 1, 1, 1], [], []>} : vector<8x64xbf16>, vector<8x64xbf16>, vector<64x64xf32> -> vector<64x64xf32>
    %cst_70 = arith.constant 0.353553385 : f32
    %122 = vector.broadcast %cst_70 : f32 to vector<64x64xf32>
    %123 = arith.mulf %121, %122 : vector<64x64xf32>
    %cst_71 = arith.constant dense<0xFF800000> : vector<64xf32>
    %124 = vector.multi_reduction <maximumf>, %123, %cst_71 [0] : vector<64x64xf32> to vector<64xf32>
    %125 = vector.shape_cast %124 : vector<64xf32> to vector<1x64xf32>
    %126 = vector.broadcast %125 : vector<1x64xf32> to vector<64x64xf32>
    %127 = arith.subf %123, %126 : vector<64x64xf32>
    %128 = math.exp %127 : vector<64x64xf32>
    %cst_72 = arith.constant dense<0.000000e+00> : vector<64xf32>
    %129 = vector.multi_reduction <add>, %128, %cst_72 [0] : vector<64x64xf32> to vector<64xf32>
    %130 = vector.shape_cast %129 : vector<64xf32> to vector<1x64xf32>
    %131 = arith.truncf %128 : vector<64x64xf32> to vector<64x64xbf16>
    %cst_73 = arith.constant dense<0.000000e+00> : vector<8x64xf32>
    %132 = tpu.matmul %120, %131, %cst_73 {dimension_numbers = #tpu.dot_dimension_numbers<[1], [0], [0], [1], [0, 0, 1, 1], [], []>} : vector<8x64xbf16>, vector<64x64xbf16>, vector<8x64xf32> -> vector<8x64xf32>
    %133 = tpu.reciprocal %130 : vector<1x64xf32> -> vector<1x64xf32>
    %134 = vector.broadcast %133 : vector<1x64xf32> to vector<8x64xf32>
    %135 = arith.mulf %132, %134 : vector<8x64xf32>
    %c16_74 = arith.constant 16 : index
    %c64_75 = arith.constant 64 : index
    %136 = vector.load %arg7[%c16_74, %c64_75] : memref<64x128xf32, #tpu.memory_space<vmem>>, vector<8x64xf32>
    tpu.vector_store %arg7[%c16_74, %c64_75], %135 {strides = array<i32>} : memref<64x128xf32, #tpu.memory_space<vmem>>, vector<8x64xf32>,
    %c72 = arith.constant 72 : index
    %c0_76 = arith.constant 0 : index
    %137 = vector.load %arg6[%c72, %c0_76] : memref<192x128xf32, #tpu.memory_space<vmem>>, vector<8x64xf32>
    %138 = arith.truncf %137 : vector<8x64xf32> to vector<8x64xbf16>
    %c80 = arith.constant 80 : index
    %c0_77 = arith.constant 0 : index
    %139 = vector.load %arg6[%c80, %c0_77] : memref<192x128xf32, #tpu.memory_space<vmem>>, vector<8x64xf32>
    %140 = arith.truncf %139 : vector<8x64xf32> to vector<8x64xbf16>
    %c88 = arith.constant 88 : index
    %c0_78 = arith.constant 0 : index
    %141 = vector.load %arg6[%c88, %c0_78] : memref<192x128xf32, #tpu.memory_space<vmem>>, vector<8x64xf32>
    %142 = arith.truncf %141 : vector<8x64xf32> to vector<8x64xbf16>
    %cst_79 = arith.constant dense<0.000000e+00> : vector<64x64xf32>
    %143 = tpu.matmul %140, %138, %cst_79 {dimension_numbers = #tpu.dot_dimension_numbers<[0], [0], [1], [1], [0, 1, 1, 1], [], []>} : vector<8x64xbf16>, vector<8x64xbf16>, vector<64x64xf32> -> vector<64x64xf32>
    %cst_80 = arith.constant 0.353553385 : f32
    %144 = vector.broadcast %cst_80 : f32 to vector<64x64xf32>
    %145 = arith.mulf %143, %144 : vector<64x64xf32>
    %cst_81 = arith.constant dense<0xFF800000> : vector<64xf32>
    %146 = vector.multi_reduction <maximumf>, %145, %cst_81 [0] : vector<64x64xf32> to vector<64xf32>
    %147 = vector.shape_cast %146 : vector<64xf32> to vector<1x64xf32>
    %148 = vector.broadcast %147 : vector<1x64xf32> to vector<64x64xf32>
    %149 = arith.subf %145, %148 : vector<64x64xf32>
    %150 = math.exp %149 : vector<64x64xf32>
    %cst_82 = arith.constant dense<0.000000e+00> : vector<64xf32>
    %151 = vector.multi_reduction <add>, %150, %cst_82 [0] : vector<64x64xf32> to vector<64xf32>
    %152 = vector.shape_cast %151 : vector<64xf32> to vector<1x64xf32>
    %153 = arith.truncf %150 : vector<64x64xf32> to vector<64x64xbf16>
    %cst_83 = arith.constant dense<0.000000e+00> : vector<8x64xf32>
    %154 = tpu.matmul %142, %153, %cst_83 {dimension_numbers = #tpu.dot_dimension_numbers<[1], [0], [0], [1], [0, 0, 1, 1], [], []>} : vector<8x64xbf16>, vector<64x64xbf16>, vector<8x64xf32> -> vector<8x64xf32>
    %155 = tpu.reciprocal %152 : vector<1x64xf32> -> vector<1x64xf32>
    %156 = vector.broadcast %155 : vector<1x64xf32> to vector<8x64xf32>
    %157 = arith.mulf %154, %156 : vector<8x64xf32>
    %c24_84 = arith.constant 24 : index
    %c0_85 = arith.constant 0 : index
    %158 = vector.load %arg7[%c24_84, %c0_85] : memref<64x128xf32, #tpu.memory_space<vmem>>, vector<8x64xf32>
    tpu.vector_store %arg7[%c24_84, %c0_85], %157 {strides = array<i32>} : memref<64x128xf32, #tpu.memory_space<vmem>>, vector<8x64xf32>,
    %c72_86 = arith.constant 72 : index
    %c64_87 = arith.constant 64 : index
    %159 = vector.load %arg6[%c72_86, %c64_87] : memref<192x128xf32, #tpu.memory_space<vmem>>, vector<8x64xf32>
    %160 = arith.truncf %159 : vector<8x64xf32> to vector<8x64xbf16>
    %c80_88 = arith.constant 80 : index
    %c64_89 = arith.constant 64 : index
    %161 = vector.load %arg6[%c80_88, %c64_89] : memref<192x128xf32, #tpu.memory_space<vmem>>, vector<8x64xf32>
    %162 = arith.truncf %161 : vector<8x64xf32> to vector<8x64xbf16>
    %c88_90 = arith.constant 88 : index
    %c64_91 = arith.constant 64 : index
    %163 = vector.load %arg6[%c88_90, %c64_91] : memref<192x128xf32, #tpu.memory_space<vmem>>, vector<8x64xf32>
    %164 = arith.truncf %163 : vector<8x64xf32> to vector<8x64xbf16>
    %cst_92 = arith.constant dense<0.000000e+00> : vector<64x64xf32>
    %165 = tpu.matmul %162, %160, %cst_92 {dimension_numbers = #tpu.dot_dimension_numbers<[0], [0], [1], [1], [0, 1, 1, 1], [], []>} : vector<8x64xbf16>, vector<8x64xbf16>, vector<64x64xf32> -> vector<64x64xf32>
    %cst_93 = arith.constant 0.353553385 : f32
    %166 = vector.broadcast %cst_93 : f32 to vector<64x64xf32>
    %167 = arith.mulf %165, %166 : vector<64x64xf32>
    %cst_94 = arith.constant dense<0xFF800000> : vector<64xf32>
    %168 = vector.multi_reduction <maximumf>, %167, %cst_94 [0] : vector<64x64xf32> to vector<64xf32>
    %169 = vector.shape_cast %168 : vector<64xf32> to vector<1x64xf32>
    %170 = vector.broadcast %169 : vector<1x64xf32> to vector<64x64xf32>
    %171 = arith.subf %167, %170 : vector<64x64xf32>
    %172 = math.exp %171 : vector<64x64xf32>
    %cst_95 = arith.constant dense<0.000000e+00> : vector<64xf32>
    %173 = vector.multi_reduction <add>, %172, %cst_95 [0] : vector<64x64xf32> to vector<64xf32>
    %174 = vector.shape_cast %173 : vector<64xf32> to vector<1x64xf32>
    %175 = arith.truncf %172 : vector<64x64xf32> to vector<64x64xbf16>
    %cst_96 = arith.constant dense<0.000000e+00> : vector<8x64xf32>
    %176 = tpu.matmul %164, %175, %cst_96 {dimension_numbers = #tpu.dot_dimension_numbers<[1], [0], [0], [1], [0, 0, 1, 1], [], []>} : vector<8x64xbf16>, vector<64x64xbf16>, vector<8x64xf32> -> vector<8x64xf32>
    %177 = tpu.reciprocal %174 : vector<1x64xf32> -> vector<1x64xf32>
    %178 = vector.broadcast %177 : vector<1x64xf32> to vector<8x64xf32>
    %179 = arith.mulf %176, %178 : vector<8x64xf32>
    %c24_97 = arith.constant 24 : index
    %c64_98 = arith.constant 64 : index
    %180 = vector.load %arg7[%c24_97, %c64_98] : memref<64x128xf32, #tpu.memory_space<vmem>>, vector<8x64xf32>
    tpu.vector_store %arg7[%c24_97, %c64_98], %179 {strides = array<i32>} : memref<64x128xf32, #tpu.memory_space<vmem>>, vector<8x64xf32>,
    %c96 = arith.constant 96 : index
    %c0_99 = arith.constant 0 : index
    %181 = vector.load %arg6[%c96, %c0_99] : memref<192x128xf32, #tpu.memory_space<vmem>>, vector<8x64xf32>
    %182 = arith.truncf %181 : vector<8x64xf32> to vector<8x64xbf16>
    %c104 = arith.constant 104 : index
    %c0_100 = arith.constant 0 : index
    %183 = vector.load %arg6[%c104, %c0_100] : memref<192x128xf32, #tpu.memory_space<vmem>>, vector<8x64xf32>
    %184 = arith.truncf %183 : vector<8x64xf32> to vector<8x64xbf16>
    %c112 = arith.constant 112 : index
    %c0_101 = arith.constant 0 : index
    %185 = vector.load %arg6[%c112, %c0_101] : memref<192x128xf32, #tpu.memory_space<vmem>>, vector<8x64xf32>
    %186 = arith.truncf %185 : vector<8x64xf32> to vector<8x64xbf16>
    %cst_102 = arith.constant dense<0.000000e+00> : vector<64x64xf32>
    %187 = tpu.matmul %184, %182, %cst_102 {dimension_numbers = #tpu.dot_dimension_numbers<[0], [0], [1], [1], [0, 1, 1, 1], [], []>} : vector<8x64xbf16>, vector<8x64xbf16>, vector<64x64xf32> -> vector<64x64xf32>
    %cst_103 = arith.constant 0.353553385 : f32
    %188 = vector.broadcast %cst_103 : f32 to vector<64x64xf32>
    %189 = arith.mulf %187, %188 : vector<64x64xf32>
    %cst_104 = arith.constant dense<0xFF800000> : vector<64xf32>
    %190 = vector.multi_reduction <maximumf>, %189, %cst_104 [0] : vector<64x64xf32> to vector<64xf32>
    %191 = vector.shape_cast %190 : vector<64xf32> to vector<1x64xf32>
    %192 = vector.broadcast %191 : vector<1x64xf32> to vector<64x64xf32>
    %193 = arith.subf %189, %192 : vector<64x64xf32>
    %194 = math.exp %193 : vector<64x64xf32>
    %cst_105 = arith.constant dense<0.000000e+00> : vector<64xf32>
    %195 = vector.multi_reduction <add>, %194, %cst_105 [0] : vector<64x64xf32> to vector<64xf32>
    %196 = vector.shape_cast %195 : vector<64xf32> to vector<1x64xf32>
    %197 = arith.truncf %194 : vector<64x64xf32> to vector<64x64xbf16>
    %cst_106 = arith.constant dense<0.000000e+00> : vector<8x64xf32>
    %198 = tpu.matmul %186, %197, %cst_106 {dimension_numbers = #tpu.dot_dimension_numbers<[1], [0], [0], [1], [0, 0, 1, 1], [], []>} : vector<8x64xbf16>, vector<64x64xbf16>, vector<8x64xf32> -> vector<8x64xf32>
    %199 = tpu.reciprocal %196 : vector<1x64xf32> -> vector<1x64xf32>
    %200 = vector.broadcast %199 : vector<1x64xf32> to vector<8x64xf32>
    %201 = arith.mulf %198, %200 : vector<8x64xf32>
    %c32_107 = arith.constant 32 : index
    %c0_108 = arith.constant 0 : index
    %202 = vector.load %arg7[%c32_107, %c0_108] : memref<64x128xf32, #tpu.memory_space<vmem>>, vector<8x64xf32>
    tpu.vector_store %arg7[%c32_107, %c0_108], %201 {strides = array<i32>} : memref<64x128xf32, #tpu.memory_space<vmem>>, vector<8x64xf32>,
    %c96_109 = arith.constant 96 : index
    %c64_110 = arith.constant 64 : index
    %203 = vector.load %arg6[%c96_109, %c64_110] : memref<192x128xf32, #tpu.memory_space<vmem>>, vector<8x64xf32>
    %204 = arith.truncf %203 : vector<8x64xf32> to vector<8x64xbf16>
    %c104_111 = arith.constant 104 : index
    %c64_112 = arith.constant 64 : index
    %205 = vector.load %arg6[%c104_111, %c64_112] : memref<192x128xf32, #tpu.memory_space<vmem>>, vector<8x64xf32>
    %206 = arith.truncf %205 : vector<8x64xf32> to vector<8x64xbf16>
    %c112_113 = arith.constant 112 : index
    %c64_114 = arith.constant 64 : index
    %207 = vector.load %arg6[%c112_113, %c64_114] : memref<192x128xf32, #tpu.memory_space<vmem>>, vector<8x64xf32>
    %208 = arith.truncf %207 : vector<8x64xf32> to vector<8x64xbf16>
    %cst_115 = arith.constant dense<0.000000e+00> : vector<64x64xf32>
    %209 = tpu.matmul %206, %204, %cst_115 {dimension_numbers = #tpu.dot_dimension_numbers<[0], [0], [1], [1], [0, 1, 1, 1], [], []>} : vector<8x64xbf16>, vector<8x64xbf16>, vector<64x64xf32> -> vector<64x64xf32>
    %cst_116 = arith.constant 0.353553385 : f32
    %210 = vector.broadcast %cst_116 : f32 to vector<64x64xf32>
    %211 = arith.mulf %209, %210 : vector<64x64xf32>
    %cst_117 = arith.constant dense<0xFF800000> : vector<64xf32>
    %212 = vector.multi_reduction <maximumf>, %211, %cst_117 [0] : vector<64x64xf32> to vector<64xf32>
    %213 = vector.shape_cast %212 : vector<64xf32> to vector<1x64xf32>
    %214 = vector.broadcast %213 : vector<1x64xf32> to vector<64x64xf32>
    %215 = arith.subf %211, %214 : vector<64x64xf32>
    %216 = math.exp %215 : vector<64x64xf32>
    %cst_118 = arith.constant dense<0.000000e+00> : vector<64xf32>
    %217 = vector.multi_reduction <add>, %216, %cst_118 [0] : vector<64x64xf32> to vector<64xf32>
    %218 = vector.shape_cast %217 : vector<64xf32> to vector<1x64xf32>
    %219 = arith.truncf %216 : vector<64x64xf32> to vector<64x64xbf16>
    %cst_119 = arith.constant dense<0.000000e+00> : vector<8x64xf32>
    %220 = tpu.matmul %208, %219, %cst_119 {dimension_numbers = #tpu.dot_dimension_numbers<[1], [0], [0], [1], [0, 0, 1, 1], [], []>} : vector<8x64xbf16>, vector<64x64xbf16>, vector<8x64xf32> -> vector<8x64xf32>
    %221 = tpu.reciprocal %218 : vector<1x64xf32> -> vector<1x64xf32>
    %222 = vector.broadcast %221 : vector<1x64xf32> to vector<8x64xf32>
    %223 = arith.mulf %220, %222 : vector<8x64xf32>
    %c32_120 = arith.constant 32 : index
    %c64_121 = arith.constant 64 : index
    %224 = vector.load %arg7[%c32_120, %c64_121] : memref<64x128xf32, #tpu.memory_space<vmem>>, vector<8x64xf32>
    tpu.vector_store %arg7[%c32_120, %c64_121], %223 {strides = array<i32>} : memref<64x128xf32, #tpu.memory_space<vmem>>, vector<8x64xf32>,
    %c120 = arith.constant 120 : index
    %c0_122 = arith.constant 0 : index
    %225 = vector.load %arg6[%c120, %c0_122] : memref<192x128xf32, #tpu.memory_space<vmem>>, vector<8x64xf32>
    %226 = arith.truncf %225 : vector<8x64xf32> to vector<8x64xbf16>
    %c128 = arith.constant 128 : index
    %c0_123 = arith.constant 0 : index
    %227 = vector.load %arg6[%c128, %c0_123] : memref<192x128xf32, #tpu.memory_space<vmem>>, vector<8x64xf32>
    %228 = arith.truncf %227 : vector<8x64xf32> to vector<8x64xbf16>
    %c136 = arith.constant 136 : index
    %c0_124 = arith.constant 0 : index
    %229 = vector.load %arg6[%c136, %c0_124] : memref<192x128xf32, #tpu.memory_space<vmem>>, vector<8x64xf32>
    %230 = arith.truncf %229 : vector<8x64xf32> to vector<8x64xbf16>
    %cst_125 = arith.constant dense<0.000000e+00> : vector<64x64xf32>
    %231 = tpu.matmul %228, %226, %cst_125 {dimension_numbers = #tpu.dot_dimension_numbers<[0], [0], [1], [1], [0, 1, 1, 1], [], []>} : vector<8x64xbf16>, vector<8x64xbf16>, vector<64x64xf32> -> vector<64x64xf32>
    %cst_126 = arith.constant 0.353553385 : f32
    %232 = vector.broadcast %cst_126 : f32 to vector<64x64xf32>
    %233 = arith.mulf %231, %232 : vector<64x64xf32>
    %cst_127 = arith.constant dense<0xFF800000> : vector<64xf32>
    %234 = vector.multi_reduction <maximumf>, %233, %cst_127 [0] : vector<64x64xf32> to vector<64xf32>
    %235 = vector.shape_cast %234 : vector<64xf32> to vector<1x64xf32>
    %236 = vector.broadcast %235 : vector<1x64xf32> to vector<64x64xf32>
    %237 = arith.subf %233, %236 : vector<64x64xf32>
    %238 = math.exp %237 : vector<64x64xf32>
    %cst_128 = arith.constant dense<0.000000e+00> : vector<64xf32>
    %239 = vector.multi_reduction <add>, %238, %cst_128 [0] : vector<64x64xf32> to vector<64xf32>
    %240 = vector.shape_cast %239 : vector<64xf32> to vector<1x64xf32>
    %241 = arith.truncf %238 : vector<64x64xf32> to vector<64x64xbf16>
    %cst_129 = arith.constant dense<0.000000e+00> : vector<8x64xf32>
    %242 = tpu.matmul %230, %241, %cst_129 {dimension_numbers = #tpu.dot_dimension_numbers<[1], [0], [0], [1], [0, 0, 1, 1], [], []>} : vector<8x64xbf16>, vector<64x64xbf16>, vector<8x64xf32> -> vector<8x64xf32>
    %243 = tpu.reciprocal %240 : vector<1x64xf32> -> vector<1x64xf32>
    %244 = vector.broadcast %243 : vector<1x64xf32> to vector<8x64xf32>
    %245 = arith.mulf %242, %244 : vector<8x64xf32>
    %c40_130 = arith.constant 40 : index
    %c0_131 = arith.constant 0 : index
    %246 = vector.load %arg7[%c40_130, %c0_131] : memref<64x128xf32, #tpu.memory_space<vmem>>, vector<8x64xf32>
    tpu.vector_store %arg7[%c40_130, %c0_131], %245 {strides = array<i32>} : memref<64x128xf32, #tpu.memory_space<vmem>>, vector<8x64xf32>,
    %c120_132 = arith.constant 120 : index
    %c64_133 = arith.constant 64 : index
    %247 = vector.load %arg6[%c120_132, %c64_133] : memref<192x128xf32, #tpu.memory_space<vmem>>, vector<8x64xf32>
    %248 = arith.truncf %247 : vector<8x64xf32> to vector<8x64xbf16>
    %c128_134 = arith.constant 128 : index
    %c64_135 = arith.constant 64 : index
    %249 = vector.load %arg6[%c128_134, %c64_135] : memref<192x128xf32, #tpu.memory_space<vmem>>, vector<8x64xf32>
    %250 = arith.truncf %249 : vector<8x64xf32> to vector<8x64xbf16>
    %c136_136 = arith.constant 136 : index
    %c64_137 = arith.constant 64 : index
    %251 = vector.load %arg6[%c136_136, %c64_137] : memref<192x128xf32, #tpu.memory_space<vmem>>, vector<8x64xf32>
    %252 = arith.truncf %251 : vector<8x64xf32> to vector<8x64xbf16>
    %cst_138 = arith.constant dense<0.000000e+00> : vector<64x64xf32>
    %253 = tpu.matmul %250, %248, %cst_138 {dimension_numbers = #tpu.dot_dimension_numbers<[0], [0], [1], [1], [0, 1, 1, 1], [], []>} : vector<8x64xbf16>, vector<8x64xbf16>, vector<64x64xf32> -> vector<64x64xf32>
    %cst_139 = arith.constant 0.353553385 : f32
    %254 = vector.broadcast %cst_139 : f32 to vector<64x64xf32>
    %255 = arith.mulf %253, %254 : vector<64x64xf32>
    %cst_140 = arith.constant dense<0xFF800000> : vector<64xf32>
    %256 = vector.multi_reduction <maximumf>, %255, %cst_140 [0] : vector<64x64xf32> to vector<64xf32>
    %257 = vector.shape_cast %256 : vector<64xf32> to vector<1x64xf32>
    %258 = vector.broadcast %257 : vector<1x64xf32> to vector<64x64xf32>
    %259 = arith.subf %255, %258 : vector<64x64xf32>
    %260 = math.exp %259 : vector<64x64xf32>
    %cst_141 = arith.constant dense<0.000000e+00> : vector<64xf32>
    %261 = vector.multi_reduction <add>, %260, %cst_141 [0] : vector<64x64xf32> to vector<64xf32>
    %262 = vector.shape_cast %261 : vector<64xf32> to vector<1x64xf32>
    %263 = arith.truncf %260 : vector<64x64xf32> to vector<64x64xbf16>
    %cst_142 = arith.constant dense<0.000000e+00> : vector<8x64xf32>
    %264 = tpu.matmul %252, %263, %cst_142 {dimension_numbers = #tpu.dot_dimension_numbers<[1], [0], [0], [1], [0, 0, 1, 1], [], []>} : vector<8x64xbf16>, vector<64x64xbf16>, vector<8x64xf32> -> vector<8x64xf32>
    %265 = tpu.reciprocal %262 : vector<1x64xf32> -> vector<1x64xf32>
    %266 = vector.broadcast %265 : vector<1x64xf32> to vector<8x64xf32>
    %267 = arith.mulf %264, %266 : vector<8x64xf32>
    %c40_143 = arith.constant 40 : index
    %c64_144 = arith.constant 64 : index
    %268 = vector.load %arg7[%c40_143, %c64_144] : memref<64x128xf32, #tpu.memory_space<vmem>>, vector<8x64xf32>
    tpu.vector_store %arg7[%c40_143, %c64_144], %267 {strides = array<i32>} : memref<64x128xf32, #tpu.memory_space<vmem>>, vector<8x64xf32>,
    %c144 = arith.constant 144 : index
    %c0_145 = arith.constant 0 : index
    %269 = vector.load %arg6[%c144, %c0_145] : memref<192x128xf32, #tpu.memory_space<vmem>>, vector<8x64xf32>
    %270 = arith.truncf %269 : vector<8x64xf32> to vector<8x64xbf16>
    %c152 = arith.constant 152 : index
    %c0_146 = arith.constant 0 : index
    %271 = vector.load %arg6[%c152, %c0_146] : memref<192x128xf32, #tpu.memory_space<vmem>>, vector<8x64xf32>
    %272 = arith.truncf %271 : vector<8x64xf32> to vector<8x64xbf16>
    %c160 = arith.constant 160 : index
    %c0_147 = arith.constant 0 : index
    %273 = vector.load %arg6[%c160, %c0_147] : memref<192x128xf32, #tpu.memory_space<vmem>>, vector<8x64xf32>
    %274 = arith.truncf %273 : vector<8x64xf32> to vector<8x64xbf16>
    %cst_148 = arith.constant dense<0.000000e+00> : vector<64x64xf32>
    %275 = tpu.matmul %272, %270, %cst_148 {dimension_numbers = #tpu.dot_dimension_numbers<[0], [0], [1], [1], [0, 1, 1, 1], [], []>} : vector<8x64xbf16>, vector<8x64xbf16>, vector<64x64xf32> -> vector<64x64xf32>
    %cst_149 = arith.constant 0.353553385 : f32
    %276 = vector.broadcast %cst_149 : f32 to vector<64x64xf32>
    %277 = arith.mulf %275, %276 : vector<64x64xf32>
    %cst_150 = arith.constant dense<0xFF800000> : vector<64xf32>
    %278 = vector.multi_reduction <maximumf>, %277, %cst_150 [0] : vector<64x64xf32> to vector<64xf32>
    %279 = vector.shape_cast %278 : vector<64xf32> to vector<1x64xf32>
    %280 = vector.broadcast %279 : vector<1x64xf32> to vector<64x64xf32>
    %281 = arith.subf %277, %280 : vector<64x64xf32>
    %282 = math.exp %281 : vector<64x64xf32>
    %cst_151 = arith.constant dense<0.000000e+00> : vector<64xf32>
    %283 = vector.multi_reduction <add>, %282, %cst_151 [0] : vector<64x64xf32> to vector<64xf32>
    %284 = vector.shape_cast %283 : vector<64xf32> to vector<1x64xf32>
    %285 = arith.truncf %282 : vector<64x64xf32> to vector<64x64xbf16>
    %cst_152 = arith.constant dense<0.000000e+00> : vector<8x64xf32>
    %286 = tpu.matmul %274, %285, %cst_152 {dimension_numbers = #tpu.dot_dimension_numbers<[1], [0], [0], [1], [0, 0, 1, 1], [], []>} : vector<8x64xbf16>, vector<64x64xbf16>, vector<8x64xf32> -> vector<8x64xf32>
    %287 = tpu.reciprocal %284 : vector<1x64xf32> -> vector<1x64xf32>
    %288 = vector.broadcast %287 : vector<1x64xf32> to vector<8x64xf32>
    %289 = arith.mulf %286, %288 : vector<8x64xf32>
    %c48_153 = arith.constant 48 : index
    %c0_154 = arith.constant 0 : index
    %290 = vector.load %arg7[%c48_153, %c0_154] : memref<64x128xf32, #tpu.memory_space<vmem>>, vector<8x64xf32>
    tpu.vector_store %arg7[%c48_153, %c0_154], %289 {strides = array<i32>} : memref<64x128xf32, #tpu.memory_space<vmem>>, vector<8x64xf32>,
    %c144_155 = arith.constant 144 : index
    %c64_156 = arith.constant 64 : index
    %291 = vector.load %arg6[%c144_155, %c64_156] : memref<192x128xf32, #tpu.memory_space<vmem>>, vector<8x64xf32>
    %292 = arith.truncf %291 : vector<8x64xf32> to vector<8x64xbf16>
    %c152_157 = arith.constant 152 : index
    %c64_158 = arith.constant 64 : index
    %293 = vector.load %arg6[%c152_157, %c64_158] : memref<192x128xf32, #tpu.memory_space<vmem>>, vector<8x64xf32>
    %294 = arith.truncf %293 : vector<8x64xf32> to vector<8x64xbf16>
    %c160_159 = arith.constant 160 : index
    %c64_160 = arith.constant 64 : index
    %295 = vector.load %arg6[%c160_159, %c64_160] : memref<192x128xf32, #tpu.memory_space<vmem>>, vector<8x64xf32>
    %296 = arith.truncf %295 : vector<8x64xf32> to vector<8x64xbf16>
    %cst_161 = arith.constant dense<0.000000e+00> : vector<64x64xf32>
    %297 = tpu.matmul %294, %292, %cst_161 {dimension_numbers = #tpu.dot_dimension_numbers<[0], [0], [1], [1], [0, 1, 1, 1], [], []>} : vector<8x64xbf16>, vector<8x64xbf16>, vector<64x64xf32> -> vector<64x64xf32>
    %cst_162 = arith.constant 0.353553385 : f32
    %298 = vector.broadcast %cst_162 : f32 to vector<64x64xf32>
    %299 = arith.mulf %297, %298 : vector<64x64xf32>
    %cst_163 = arith.constant dense<0xFF800000> : vector<64xf32>
    %300 = vector.multi_reduction <maximumf>, %299, %cst_163 [0] : vector<64x64xf32> to vector<64xf32>
    %301 = vector.shape_cast %300 : vector<64xf32> to vector<1x64xf32>
    %302 = vector.broadcast %301 : vector<1x64xf32> to vector<64x64xf32>
    %303 = arith.subf %299, %302 : vector<64x64xf32>
    %304 = math.exp %303 : vector<64x64xf32>
    %cst_164 = arith.constant dense<0.000000e+00> : vector<64xf32>
    %305 = vector.multi_reduction <add>, %304, %cst_164 [0] : vector<64x64xf32> to vector<64xf32>
    %306 = vector.shape_cast %305 : vector<64xf32> to vector<1x64xf32>
    %307 = arith.truncf %304 : vector<64x64xf32> to vector<64x64xbf16>
    %cst_165 = arith.constant dense<0.000000e+00> : vector<8x64xf32>
    %308 = tpu.matmul %296, %307, %cst_165 {dimension_numbers = #tpu.dot_dimension_numbers<[1], [0], [0], [1], [0, 0, 1, 1], [], []>} : vector<8x64xbf16>, vector<64x64xbf16>, vector<8x64xf32> -> vector<8x64xf32>
    %309 = tpu.reciprocal %306 : vector<1x64xf32> -> vector<1x64xf32>
    %310 = vector.broadcast %309 : vector<1x64xf32> to vector<8x64xf32>
    %311 = arith.mulf %308, %310 : vector<8x64xf32>
    %c48_166 = arith.constant 48 : index
    %c64_167 = arith.constant 64 : index
    %312 = vector.load %arg7[%c48_166, %c64_167] : memref<64x128xf32, #tpu.memory_space<vmem>>, vector<8x64xf32>
    tpu.vector_store %arg7[%c48_166, %c64_167], %311 {strides = array<i32>} : memref<64x128xf32, #tpu.memory_space<vmem>>, vector<8x64xf32>,
    %c168 = arith.constant 168 : index
    %c0_168 = arith.constant 0 : index
    %313 = vector.load %arg6[%c168, %c0_168] : memref<192x128xf32, #tpu.memory_space<vmem>>, vector<8x64xf32>
    %314 = arith.truncf %313 : vector<8x64xf32> to vector<8x64xbf16>
    %c176 = arith.constant 176 : index
    %c0_169 = arith.constant 0 : index
    %315 = vector.load %arg6[%c176, %c0_169] : memref<192x128xf32, #tpu.memory_space<vmem>>, vector<8x64xf32>
    %316 = arith.truncf %315 : vector<8x64xf32> to vector<8x64xbf16>
    %c184 = arith.constant 184 : index
    %c0_170 = arith.constant 0 : index
    %317 = vector.load %arg6[%c184, %c0_170] : memref<192x128xf32, #tpu.memory_space<vmem>>, vector<8x64xf32>
    %318 = arith.truncf %317 : vector<8x64xf32> to vector<8x64xbf16>
    %cst_171 = arith.constant dense<0.000000e+00> : vector<64x64xf32>
    %319 = tpu.matmul %316, %314, %cst_171 {dimension_numbers = #tpu.dot_dimension_numbers<[0], [0], [1], [1], [0, 1, 1, 1], [], []>} : vector<8x64xbf16>, vector<8x64xbf16>, vector<64x64xf32> -> vector<64x64xf32>
    %cst_172 = arith.constant 0.353553385 : f32
    %320 = vector.broadcast %cst_172 : f32 to vector<64x64xf32>
    %321 = arith.mulf %319, %320 : vector<64x64xf32>
    %cst_173 = arith.constant dense<0xFF800000> : vector<64xf32>
    %322 = vector.multi_reduction <maximumf>, %321, %cst_173 [0] : vector<64x64xf32> to vector<64xf32>
    %323 = vector.shape_cast %322 : vector<64xf32> to vector<1x64xf32>
    %324 = vector.broadcast %323 : vector<1x64xf32> to vector<64x64xf32>
    %325 = arith.subf %321, %324 : vector<64x64xf32>
    %326 = math.exp %325 : vector<64x64xf32>
    %cst_174 = arith.constant dense<0.000000e+00> : vector<64xf32>
    %327 = vector.multi_reduction <add>, %326, %cst_174 [0] : vector<64x64xf32> to vector<64xf32>
    %328 = vector.shape_cast %327 : vector<64xf32> to vector<1x64xf32>
    %329 = arith.truncf %326 : vector<64x64xf32> to vector<64x64xbf16>
    %cst_175 = arith.constant dense<0.000000e+00> : vector<8x64xf32>
    %330 = tpu.matmul %318, %329, %cst_175 {dimension_numbers = #tpu.dot_dimension_numbers<[1], [0], [0], [1], [0, 0, 1, 1], [], []>} : vector<8x64xbf16>, vector<64x64xbf16>, vector<8x64xf32> -> vector<8x64xf32>
    %331 = tpu.reciprocal %328 : vector<1x64xf32> -> vector<1x64xf32>
    %332 = vector.broadcast %331 : vector<1x64xf32> to vector<8x64xf32>
    %333 = arith.mulf %330, %332 : vector<8x64xf32>
    %c56_176 = arith.constant 56 : index
    %c0_177 = arith.constant 0 : index
    %334 = vector.load %arg7[%c56_176, %c0_177] : memref<64x128xf32, #tpu.memory_space<vmem>>, vector<8x64xf32>
    tpu.vector_store %arg7[%c56_176, %c0_177], %333 {strides = array<i32>} : memref<64x128xf32, #tpu.memory_space<vmem>>, vector<8x64xf32>,
    %c168_178 = arith.constant 168 : index
    %c64_179 = arith.constant 64 : index
    %335 = vector.load %arg6[%c168_178, %c64_179] : memref<192x128xf32, #tpu.memory_space<vmem>>, vector<8x64xf32>
    %336 = arith.truncf %335 : vector<8x64xf32> to vector<8x64xbf16>
    %c176_180 = arith.constant 176 : index
    %c64_181 = arith.constant 64 : index
    %337 = vector.load %arg6[%c176_180, %c64_181] : memref<192x128xf32, #tpu.memory_space<vmem>>, vector<8x64xf32>
    %338 = arith.truncf %337 : vector<8x64xf32> to vector<8x64xbf16>
    %c184_182 = arith.constant 184 : index
    %c64_183 = arith.constant 64 : index
    %339 = vector.load %arg6[%c184_182, %c64_183] : memref<192x128xf32, #tpu.memory_space<vmem>>, vector<8x64xf32>
    %340 = arith.truncf %339 : vector<8x64xf32> to vector<8x64xbf16>
    %cst_184 = arith.constant dense<0.000000e+00> : vector<64x64xf32>
    %341 = tpu.matmul %338, %336, %cst_184 {dimension_numbers = #tpu.dot_dimension_numbers<[0], [0], [1], [1], [0, 1, 1, 1], [], []>} : vector<8x64xbf16>, vector<8x64xbf16>, vector<64x64xf32> -> vector<64x64xf32>
    %cst_185 = arith.constant 0.353553385 : f32
    %342 = vector.broadcast %cst_185 : f32 to vector<64x64xf32>
    %343 = arith.mulf %341, %342 : vector<64x64xf32>
    %cst_186 = arith.constant dense<0xFF800000> : vector<64xf32>
    %344 = vector.multi_reduction <maximumf>, %343, %cst_186 [0] : vector<64x64xf32> to vector<64xf32>
    %345 = vector.shape_cast %344 : vector<64xf32> to vector<1x64xf32>
    %346 = vector.broadcast %345 : vector<1x64xf32> to vector<64x64xf32>
    %347 = arith.subf %343, %346 : vector<64x64xf32>
    %348 = math.exp %347 : vector<64x64xf32>
    %cst_187 = arith.constant dense<0.000000e+00> : vector<64xf32>
    %349 = vector.multi_reduction <add>, %348, %cst_187 [0] : vector<64x64xf32> to vector<64xf32>
    %350 = vector.shape_cast %349 : vector<64xf32> to vector<1x64xf32>
    %351 = arith.truncf %348 : vector<64x64xf32> to vector<64x64xbf16>
    %cst_188 = arith.constant dense<0.000000e+00> : vector<8x64xf32>
    %352 = tpu.matmul %340, %351, %cst_188 {dimension_numbers = #tpu.dot_dimension_numbers<[1], [0], [0], [1], [0, 0, 1, 1], [], []>} : vector<8x64xbf16>, vector<64x64xbf16>, vector<8x64xf32> -> vector<8x64xf32>
    %353 = tpu.reciprocal %350 : vector<1x64xf32> -> vector<1x64xf32>
    %354 = vector.broadcast %353 : vector<1x64xf32> to vector<8x64xf32>
    %355 = arith.mulf %352, %354 : vector<8x64xf32>
    %c56_189 = arith.constant 56 : index
    %c64_190 = arith.constant 64 : index
    %356 = vector.load %arg7[%c56_189, %c64_190] : memref<64x128xf32, #tpu.memory_space<vmem>>, vector<8x64xf32>
    tpu.vector_store %arg7[%c56_189, %c64_190], %355 {strides = array<i32>} : memref<64x128xf32, #tpu.memory_space<vmem>>, vector<8x64xf32>,
    %c0_191 = arith.constant 0 : index
    %c0_192 = arith.constant 0 : index
    %357 = vector.load %arg3[%c0_191, %c0_192] : memref<64x64xbf16, #tpu.memory_space<vmem>>, vector<64x64xbf16>
    %c0_193 = arith.constant 0 : index
    %c0_194 = arith.constant 0 : index
    %358 = vector.load %arg7[%c0_193, %c0_194] : memref<64x128xf32, #tpu.memory_space<vmem>>, vector<64x128xf32>
    %359 = arith.truncf %358 : vector<64x128xf32> to vector<64x128xbf16>
    %cst_195 = arith.constant dense<0.000000e+00> : vector<64x128xf32>
    %360 = tpu.matmul %357, %359, %cst_195 {dimension_numbers = #tpu.dot_dimension_numbers<[1], [0], [0], [1], [0, 0, 1, 1], [], []>} : vector<64x64xbf16>, vector<64x128xbf16>, vector<64x128xf32> -> vector<64x128xf32>
    %c0_196 = arith.constant 0 : index
    %c0_197 = arith.constant 0 : index
    %361 = vector.load %arg4[%c0_196, %c0_197] : memref<64x1xf32, #tpu.memory_space<vmem>>, vector<64x1xf32>
    %362 = vector.broadcast %361 : vector<64x1xf32> to vector<64x128xf32>
    %363 = arith.addf %360, %362 : vector<64x128xf32>
    %c0_198 = arith.constant 0 : index
    %c0_199 = arith.constant 0 : index
    %c0_200 = arith.constant 0 : index
    %364 = vector.load %arg5[%c0_198, %c0_199, %c0_200] : memref<1x64x128xf32, #tpu.memory_space<vmem>>, vector<1x64x128xf32>
    %365 = vector.shape_cast %364 : vector<1x64x128xf32> to vector<64x128xf32>
    %366 = vector.shape_cast %363 : vector<64x128xf32> to vector<1x64x128xf32>
    tpu.vector_store %arg5[%c0_198, %c0_199, %c0_200], %366 {strides = array<i32>} : memref<1x64x128xf32, #tpu.memory_space<vmem>>, vector<1x64x128xf32>,
    return
  }
  func.func @transform_0(%arg0: i32) -> (i32, i32, i32) {
    %c0_i32 = arith.constant 0 : i32
    %c0_i32_0 = arith.constant 0 : i32
    %c0_i32_1 = arith.constant 0 : i32
    return %arg0, %c0_i32, %c0_i32_0 : i32, i32, i32
  }
  func.func @transform_1(%arg0: i32) -> (i32, i32) {
    %c0_i32 = arith.constant 0 : i32
    %c0_i32_0 = arith.constant 0 : i32
    %c0_i32_1 = arith.constant 0 : i32
    return %c0_i32, %c0_i32_0 : i32, i32
  }
  func.func @transform_2(%arg0: i32) -> (i32, i32) {
    %c0_i32 = arith.constant 0 : i32
    %c0_i32_0 = arith.constant 0 : i32
    %c0_i32_1 = arith.constant 0 : i32
    return %c0_i32, %c0_i32_0 : i32, i32
  }
  func.func @transform_3(%arg0: i32) -> (i32, i32) {
    %c0_i32 = arith.constant 0 : i32
    %c0_i32_0 = arith.constant 0 : i32
    %c0_i32_1 = arith.constant 0 : i32
    return %c0_i32, %c0_i32_0 : i32, i32
  }
  func.func @transform_4(%arg0: i32) -> (i32, i32, i32) {
    %c0_i32 = arith.constant 0 : i32
    %c0_i32_0 = arith.constant 0 : i32
    %c0_i32_1 = arith.constant 0 : i32
    return %arg0, %c0_i32, %c0_i32_0 : i32, i32, i32
  }
}

</mosaic_0001>

<bundles_post_ra>
// kernel: tpu_custom_call.1
= control target key start
LH: loop header
LB: loop body
LE: loop exit
PB: predicated region body
PF: predicated region fallthrough
CT: control target
= control target key end

     0   :  { %vm135_vm0 = vcmask 523264   ;;  %s7327_s0 = inlined_call_operand.vmem [shape: bf16[1,64,128], index: 0, kind: input, shape index: {}]   ;;  %s7328_s1 = inlined_call_operand.vmem [shape: bf16[192,64], index: 1, kind: input, shape index: {}]   ;;  %s7329_s2 = inlined_call_operand.vmem [shape: bf16[64,64], index: 2, kind: input, shape index: {}]   ;;  %s7330_s3 = inlined_call_operand.vmem [shape: f32[64,1], index: 3, kind: input, shape index: {}]   ;;  %s7331_s4 = inlined_call_operand.hbm [shape: f32[1,64,128], index: 4, kind: output, shape index: {}]  }
   0x1   :  { %v4970_v0 = vld [vmem:[%s7327_s0] sm:$0xff]   ;;  %v4971_v1 = vld [vmem:[%s7327_s0 + $0x8] sm:$0xff]   ;;  %v4972_v2 = vld [vmem:[%s7327_s0 + $0x10] sm:$0xff]  }
   0x2   :  { %4545 = vmatprep.subr.bf16.mxu0 %v4970_v0  ;;  %v4974_v3 = vld [vmem:[%s7328_s1] sm:$0xff]   ;;  %v4973_v4 = vld [vmem:[%s7327_s0 + $0x18] sm:$0xff]   ;;  %v4975_v5 = vld [vmem:[%s7328_s1 + $0x8] sm:$0xff]  }
   0x3   :  { %4546 = vmatpush3.bf16.msra.mxu0 %v4970_v0  ;;  %4553 = vmatprep.mubr.msk.bf16.mxu0 %vm135_vm0, %v4974_v3  ;;  %v4976_v6 = vld [vmem:[%s7328_s1 + $0x10] sm:$0xff]  }
   0x4   :  { %4547 = vmatprep.subr.bf16.mxu0 %v4971_v1 }
   0x7   :  { %4548 = vmatpush3.bf16.msra.mxu0 %v4971_v1 }
   0x8   :  { %4549 = vmatprep.subr.bf16.mxu0 %v4972_v2 }
   0xb   :  { %4550 = vmatpush3.bf16.msra.mxu0 %v4972_v2 }
   0xc   :  { %4551 = vmatprep.subr.bf16.mxu0 %v4973_v4 }
   0xf   :  { %4552 = vmatpush3.bf16.msra.mxu0 %v4973_v4 }
  0x10   :  { %9 = vsyncpa [#allocation5], 0  ;;  %v4977_v7 = vld [vmem:[%s7328_s1 + $0x18] sm:$0xff]   ;;  %v4978_v8 = vld [vmem:[%s7328_s1 + $0x20] sm:$0xff]   ;;  %vm360_vm1 = vcmask 1043456   ;;  %s5302_s14 = smov 64  }
  0x11   :  { %v4979_v9 = vld [vmem:[%s7328_s1 + $0x28] sm:$0xff]   ;;  %v4980_v10 = vld [vmem:[%s7328_s1 + $0x30] sm:$0xff]   ;;  %v4981_v11 = vld [vmem:[%s7328_s1 + $0x38] sm:$0xff]   ;;  %vm347_vm2 = vcmask 64512   ;;  %v7332_v60 = vmov 0.0   ;;  %vm5304_vm3 = vmmov 0  }
  0x12   :  { %4554 = vmatmul.mubr.msk.bf16.vlgmr.msra.gmra.mrb[0].mxu0 %vm135_vm0, %v4975_v5  ;;  %v4982_v12 = vld [vmem:[%s7328_s1 + $0x40] sm:$0xff]   ;;  %v4983_v22 = vld [vmem:[%s7328_s1 + $0x48] sm:$0xff]   ;;  %v4984_v54 = vld [vmem:[%s7328_s1 + $0x50] sm:$0xff]   ;;  %vm792_vm4 = vcmask 1048064  }
  0x13   :  { %4557 = vmatprep.mubr.msk.bf16.mxu0 %vm135_vm0, %v4976_v6  ;;  %v4985_v55 = vld [vmem:[%s7328_s1 + $0x58] sm:$0xff]  }
  0x1a   :  { %4558 = vmatmul.mubr.msk.bf16.gmra.mrb[4].mxu0 %vm135_vm0, %v4977_v7 }
  0x1b   :  { %4561 = vmatprep.mubr.msk.bf16.mxu0 %vm135_vm0, %v4978_v8 }
  0x22   :  { %4562 = vmatmul.mubr.msk.bf16.gmra.mrb[8].mxu0 %vm135_vm0, %v4979_v9 }
  0x23   :  { %4565 = vmatprep.mubr.msk.bf16.mxu0 %vm135_vm0, %v4980_v10 }
  0x2a   :  { %4566 = vmatmul.mubr.msk.bf16.gmra.mrb[12].mxu0 %vm135_vm0, %v4981_v11 }
  0x2b   :  { %4569 = vmatprep.mubr.msk.bf16.mxu0 %vm135_vm0, %v4982_v12 }
  0x32   :  { %4570 = vmatmul.mubr.msk.bf16.gmra.mrb[16].mxu0 %vm135_vm0, %v4983_v22 }
  0x33   :  { %4573 = vmatprep.mubr.msk.bf16.mxu0 %vm135_vm0, %v4984_v54 }
  0x3a   :  { %4574 = vmatmul.mubr.msk.bf16.gmra.mrb[20].mxu0 %vm135_vm0, %v4985_v55 }
  0xe5   :  { %v4555_v13 = vpop.f32.mrb[0].mxu0 }
  0xe6   :  { %v206_v14 = vpop.f32.mrb[1].mxu0  ;;  %v5390_v23 = vpack.c.bf16 %v4555_v13, %v4555_v13 }
  0xe7   :  { %v326_v15 = vpack.c.bf16 %v206_v14, %v206_v14  ;;  %v4556_v16 = vpop.f32.mrb[2].mxu0 }
  0xe8   :  { %v209_v17 = vpop.f32.mrb[3].mxu0  ;;  %v5396_v27 = vpack.c.bf16 %v4556_v16, %v4556_v16 }
  0xe9   :  { %v328_v18 = vpack.c.bf16 %v209_v17, %v209_v17  ;;  %580 = vrot.lane.b32.xlu1 %v326_v15, %s5302_s14  ;;  %4945 = vmatprep.subr.msk.bf16.mxu1 %vm360_vm1, %v326_v15  ;;  %v362_v19 = vsel %vm360_vm1, %v326_v15, 0 }
  0xea   :  { %4578 = vmatpush3.bf16.msra.mxu1 %v362_v19 }
  0xeb   :  { %331 = vxpose.xlu0.c.b16.start.end [1/1] (short) (narrow) %v328_v18, 64  ;;  %4587 = vmatprep.subr.bf16.mxu1 %v7332_v60 }
  0xed   :  { %v4559_v20 = vpop.f32.mrb[4].mxu0 }
  0xee   :  { %v222_v21 = vpop.f32.mrb[5].mxu0  ;;  %v5410_v42 = vpack.c.bf16 %v4559_v20, %v4559_v20 }
  0xef   :  { %v797_v24 = vpack.c.bf16 %v222_v21, %v222_v21  ;;  %v4560_v25 = vpop.f32.mrb[6].mxu0 }
  0xf0   :  { %v5394_v26 = vpop.f32.mrb[7].mxu0  ;;  %v1263_v29 = vpack.c.bf16 %v4560_v25, %v4560_v25 }
  0xf5   :  { %v4563_v32 = vpop.f32.mrb[8].mxu0 }
  0xf6   :  { %v5403_v33 = vpop.f32.mrb[9].mxu0  ;;  %v1729_v41 = vpack.c.bf16 %v4563_v32, %v4563_v32 }
  0xf7   :  { %v5405_v34 = vpop.f32.mrb[10].mxu0 }
  0xf8   :  { %v241_v36 = vpop.f32.mrb[11].mxu0 }
  0xf9   :  { %v5413_v43 = vpack.c.bf16 %v241_v36, %v241_v36 }
  0xfd   :  { %v5408_v37 = vpop.f32.mrb[12].mxu0 }
  0xfe   :  { %v254_v38 = vpop.f32.mrb[13].mxu0 }
  0xff   :  { %v4568_v39 = vpop.f32.mrb[14].mxu0  ;;  %v5417_v45 = vpack.c.bf16 %v254_v38, %v254_v38 }
 0x100   :  { %560 = vrot.lane.b32.xlu0 %v328_v18, %s5302_s14  ;;  %v257_v40 = vpop.f32.mrb[15].mxu0  ;;  %v5475_v8 = vpack.c.bf16 %v4568_v39, %v4568_v39 }
 0x101   :  { %v5425_v46 = vpack.c.bf16 %v257_v40, %v257_v40 }
 0x102   :  { %7353 = vst [vmem:[#allocation7_spill] sm:$0xff] %v5475_v8 }
 0x104   :  { %741 = vrot.lane.b32.xlu0 %v5390_v23, %s5302_s14 }
 0x105   :  { %v5449_v56 = vpop.f32.mrb[16].mxu0 }
 0x106   :  { %v270_v57 = vpop.f32.mrb[17].mxu0 }
 0x107   :  { %v5469_v3 = vpop.f32.mrb[18].mxu0  ;;  %v2661_v9 = vpack.c.bf16 %v270_v57, %v270_v57 }
 0x122   :  { %800 = vxpose.xlu0.c.b16.start.end [1/1] (short) (narrow) %v797_v24, 64 }
 0x137   :  { %1047 = vrot.lane.b32.xlu0 %v5396_v27, %s5302_s14 }
 0x151   :  { %v339_v28 = vpop.trf.xlu0 }
 0x152   :  { %4579 = vmatprep.mubr.msk.bf16.mxu1 %vm347_vm2, %v339_v28 }
 0x155   :  { %v340_v30 = vpop.trf.xlu0  ;;  %1266 = vxpose.xlu0.c.b16.start.end [1/1] (short) (narrow) %v1263_v29, 64 }
 0x156   :  { %4580 = vmatmul.mubr.msk.bf16.vlgmr.msra.gmra.mrb[0].mxu1 %vm347_vm2, %v340_v30 }
 0x159   :  { %v341_v31 = vpop.trf.xlu0 }
 0x15a   :  { %4583 = vmatprep.mubr.msk.bf16.mxu1 %vm347_vm2, %v341_v31 }
 0x15b   :  { %v5451_v58 = vpop.permute.xlu1 %580 }
 0x15d   :  { %v342_v35 = vpop.trf.xlu0 }
 0x15e   :  { %4584 = vmatmul.mubr.msk.bf16.gmra.mrb[4].mxu1 %vm347_vm2, %v342_v35 }
 0x15f   :  { %4595 = vmatprep.mubr.msk.bf16.mxu1 %vm5304_vm3, %v7332_v60 }
 0x16a   :  { %1959 = vrot.lane.b32.xlu0 %v1729_v41, %s5302_s14 }
 0x16e   :  { %1513 = vrot.lane.b32.xlu0 %v5410_v42, %s5302_s14 }
 0x172   :  { %v561_v44 = vpop.permute.xlu0 %560  ;;  %1979 = vrot.lane.b32.xlu0 %v5413_v43, %s5302_s14 }
 0x173   :  { %563 = vxpose.xlu1.c.b16.start.end [1/1] (short) (narrow) %v561_v44, 64 }
 0x176   :  { %2445 = vrot.lane.b32.xlu0 %v5417_v45, %s5302_s14  ;;  %v5429_v47 = vpop.permute.xlu0 %741 }
 0x183   :  { %1027 = vrot.lane.b32.xlu1 %v797_v24, %s5302_s14 }
 0x187   :  { %1493 = vrot.lane.b32.xlu1 %v1263_v29, %s5302_s14 }
 0x188   :  { %v5431_v48 = vpop.trf.xlu0 }
 0x18b   :  { %2425 = vrot.lane.b32.xlu1 %v5425_v46, %s5302_s14 }
 0x18c   :  { %v5433_v49 = vpop.trf.xlu0 }
 0x190   :  { %v5435_v50 = vpop.trf.xlu0 }
 0x194   :  { %v5437_v51 = vpop.trf.xlu0 }
 0x1a9   :  { %v1048_v52 = vpop.permute.xlu0 %1047 }
 0x1aa   :  { %v1062_v53 = vsel %vm360_vm1, %v1048_v52, 0  ;;  %4948 = vmatprep.subr.msk.bf16.mxu0 %vm360_vm1, %v1048_v52 }
 0x1ab   :  { %4644 = vmatpush3.bf16.msra.mxu0 %v1062_v53 }
 0x1ac   :  { %4653 = vmatprep.subr.bf16.mxu0 %v7332_v60 }
 0x1bb   :  { %v5465_v1 = vpop.trf.xlu0 }
 0x1bf   :  { %v5467_v2 = vpop.trf.xlu0 }
 0x1c3   :  { %v5471_v4 = vpop.trf.xlu0 }
 0x1c7   :  { %v5473_v5 = vpop.trf.xlu0 }
 0x1d9   :  { %v5453_v59 = vpop.trf.xlu1 }
 0x1dc   :  { %v1960_v6 = vpop.permute.xlu0 %1959 }
 0x1dd   :  { %v5457_v61 = vpop.trf.xlu1  ;;  %1962 = vxpose.xlu0.c.b16.start.end [1/1] (short) (narrow) %v1960_v6, 64 }
 0x1e1   :  { %v5459_v62 = vpop.trf.xlu1 }
 0x1e5   :  { %v5463_v63 = vpop.trf.xlu1 }
 0x1f2   :  { %2911 = vrot.lane.b32.xlu0 %v5475_v8, %s5302_s14 }
 0x1f5   :  { %v1028_v0 = vpop.permute.xlu1 %1027 }
 0x1f6   :  { %1030 = vxpose.xlu1.c.b16.start.end [1/1] (short) (narrow) %v1028_v0, 64 }
 0x1f9   :  { %v1494_v7 = vpop.permute.xlu1 %1493 }
 0x1fd   :  { %v2426_v55 = vpop.permute.xlu1 %2425 }
 0x203   :  { %1732 = vxpose.xlu1.c.b16.start.end [1/1] (short) (narrow) %v1729_v41, 64 }
 0x210   :  { %1496 = vxpose.xlu1.c.b16.start.end [1/1] (short) (narrow) %v1494_v7, 64  ;;  %2428 = vxpose.xlu0.c.b16.start.end [1/1] (short) (narrow) %v2426_v55, 64  ;;  %v3127_v55 = vpack.c.bf16 %v5469_v3, %v5469_v3 }
 0x220   :  { %2891 = vrot.lane.b32.xlu1 %v2661_v9, %s5302_s14 }
 0x229   :  { %v4581_v10 = vpop.f32.mrb[0].mxu1 }
 0x22a   :  { %v398_v11 = vpop.f32.mrb[1].mxu1  ;;  %v431_v14 = vmul.f32 0.35355338, %v4581_v10 }
 0x22b   :  { %v4582_v12 = vpop.f32.mrb[2].mxu1  ;;  %v429_v15 = vmul.f32 0.35355338, %v398_v11 }
 0x22c   :  { %v401_v13 = vpop.f32.mrb[3].mxu1  ;;  %v432_v17 = vmul.f32 0.35355338, %v4582_v12  ;;  %v439_v24 = vsel %vm135_vm0, %v431_v14, -inf }
 0x22d   :  { %v430_v20 = vmul.f32 0.35355338, %v401_v13  ;;  %v437_v30 = vsel %vm135_vm0, %v429_v15, -inf }
 0x22e   :  { %v440_v36 = vsel %vm135_vm0, %v432_v17, -inf }
 0x22f   :  { %v438_v40 = vsel %vm135_vm0, %v430_v20, -inf }
 0x231   :  { %v4585_v16 = vpop.f32.mrb[4].mxu1 }
 0x232   :  { %v435_v18 = vmul.f32 0.35355338, %v4585_v16  ;;  %v414_v19 = vpop.f32.mrb[5].mxu1 }
 0x233   :  { %v433_v21 = vmul.f32 0.35355338, %v414_v19  ;;  %v4586_v22 = vpop.f32.mrb[6].mxu1 }
 0x234   :  { %v445_v25 = vsel %vm135_vm0, %v435_v18, -inf  ;;  %v436_v28 = vmul.f32 0.35355338, %v4586_v22  ;;  %v417_v29 = vpop.f32.mrb[7].mxu1 }
 0x235   :  { %v446_v31 = vmax.f32 %v439_v24, %v445_v25  ;;  %v441_v32 = vsel %vm135_vm0, %v433_v21, -inf  ;;  %v434_v35 = vmul.f32 0.35355338, %v417_v29 }
 0x236   :  { %v442_v38 = vmax.f32 %v437_v30, %v441_v32  ;;  %v447_v39 = vsel %vm135_vm0, %v436_v28, -inf }
 0x237   :  { %v448_v41 = vmax.f32 %v440_v36, %v447_v39  ;;  %v443_v44 = vsel %vm135_vm0, %v434_v35, -inf }
 0x238   :  { %v444_v52 = vmax.f32 %v438_v40, %v443_v44 }
 0x239   :  { %v450_v53 = vmax.f32 %v446_v31, %v448_v41 }
 0x23a   :  { %v449_v54 = vmax.f32 %v442_v38, %v444_v52 }
 0x23c   :  { %v451_v57 = vmax.f32 %v449_v54, %v450_v53 }
 0x23e   :  { %v452_v0 = vrot.slane %v451_v57, 4 }
 0x240   :  { %v453_v6 = vmax.f32 %v451_v57, %v452_v0 }
 0x242   :  { %v454_v7 = vrot.slane %v453_v6, 2 }
 0x243   :  { %2198 = vxpose.xlu1.c.b16.start.end [1/1] (short) (narrow) %v5425_v46, 64 }
 0x244   :  { %v455_v10 = vmax.f32 %v453_v6, %v454_v7 }
 0x246   :  { %v456_v11 = vrot.slane %v455_v10, 1 }
 0x248   :  { %v457_v12 = vmax.f32 %v455_v10, %v456_v11 }
 0x24a   :  { %v458_v13 = vsub.f32 %v429_v15, %v457_v12  ;;  %v459_v16 = vsub.f32 %v430_v20, %v457_v12  ;;  %v460_v19 = vsub.f32 %v431_v14, %v457_v12  ;;  %v461_v22 = vsub.f32 %v432_v17, %v457_v12  ;;  %v5489_v14 = vpop.f32.mrb[19].mxu0 }
 0x24b   :  { %v462_v24 = vsub.f32 %v433_v21, %v457_v12  ;;  %v463_v25 = vsub.f32 %v434_v35, %v457_v12  ;;  %v464_v29 = vsub.f32 %v435_v18, %v457_v12  ;;  %v465_v30 = vsub.f32 %v436_v28, %v457_v12 }
 0x24c   :  { %v466_v31 = vmul.f32 1.442695, %v458_v13  ;;  %v468_v32 = vmul.f32 1.442695, %v459_v16  ;;  %v470_v36 = vmul.f32 1.442695, %v460_v19 }
 0x24d   :  { %v472_v38 = vmul.f32 1.442695, %v461_v22  ;;  %v474_v39 = vmul.f32 1.442695, %v462_v24  ;;  %v476_v40 = vmul.f32 1.442695, %v463_v25 }
 0x24e   :  { %4990 = vpow2.f32 %v466_v31  ;;  %v478_v46 = vmul.f32 1.442695, %v464_v29  ;;  %v480_v15 = vmul.f32 1.442695, %v465_v30 }
 0x24f   :  { %4992 = vpow2.f32 %v468_v32 }
 0x250   :  { %4994 = vpow2.f32 %v470_v36  ;;  %2664 = vxpose.xlu1.c.b16.start.end [1/1] (short) (narrow) %v2661_v9, 64 }
 0x251   :  { %4996 = vpow2.f32 %v472_v38  ;;  %v595_v38 = vsel %vm360_vm1, %v5451_v58, 0 }
 0x252   :  { %4998 = vpow2.f32 %v474_v39 }
 0x253   :  { %5000 = vpow2.f32 %v476_v40 }
 0x254   :  { %5002 = vpow2.f32 %v478_v46 }
 0x255   :  { %5004 = vpow2.f32 %v480_v15 }
 0x258   :  { %v4991_v17 = vpop.eup %4990 }
 0x259   :  { %v4993_v18 = vpop.eup %4992  ;;  %v482_v20 = vsel %vm135_vm0, %v4991_v17, 0.0 }
 0x25a   :  { %v4995_v21 = vpop.eup %4994  ;;  %v483_v28 = vsel %vm135_vm0, %v4993_v18, 0.0  ;;  %v503_v35 = vpack.c.bf16 %v4993_v18, %v4991_v17 }
 0x25b   :  { %v4997_v41 = vpop.eup %4996  ;;  %v484_v44 = vadd.f32 %v483_v28, %v482_v20  ;;  %v485_v9 = vsel %vm135_vm0, %v4995_v21, 0.0 }
 0x25c   :  { %v4999_v52 = vpop.eup %4998  ;;  %4588 = vmatpush3.bf16.msra.mxu1 %v503_v35  ;;  %v504_v53 = vpack.c.bf16 %v4997_v41, %v4995_v21  ;;  %v1038_v54 = vpop.trf.xlu1  ;;  %v487_v7 = vsel %vm135_vm0, %v4997_v41, 0.0 }
 0x25d   :  { %v5001_v57 = vpop.eup %5000  ;;  %v486_v0 = vadd.f32 %v485_v9, %v484_v44  ;;  %4589 = vmatprep.subr.bf16.mxu1 %v7332_v60  ;;  %4645 = vmatprep.mubr.msk.bf16.mxu0 %vm347_vm2, %v1038_v54  ;;  %v489_v13 = vsel %vm135_vm0, %v4999_v52, 0.0 }
 0x25e   :  { %v5003_v6 = vpop.eup %5002  ;;  %v505_v10 = vpack.c.bf16 %v5001_v57, %v4999_v52  ;;  %v491_v22 = vsel %vm135_vm0, %v5001_v57, 0.0 }
 0x25f   :  { %v5005_v11 = vpop.eup %5004  ;;  %v488_v12 = vadd.f32 %v487_v7, %v486_v0  ;;  %v493_v25 = vsel %vm135_vm0, %v5003_v6, 0.0  ;;  %v5569_v0 = vpop.permute.xlu0 %1513 }
 0x260   :  { %4590 = vmatpush3.bf16.msra.mxu1 %v504_v53  ;;  %v506_v16 = vpack.c.bf16 %v5005_v11, %v5003_v6  ;;  %v1039_v19 = vpop.trf.xlu1  ;;  %3357 = vrot.lane.b32.xlu1 %v3127_v55, %s5302_s14  ;;  %v495_v31 = vsel %vm135_vm0, %v5005_v11, 0.0  ;;  %v5583_v11 = vpack.c.bf16 %v5403_v33, %v5403_v33 }
 0x261   :  { %v490_v3 = vadd.f32 %v489_v13, %v488_v12  ;;  %4591 = vmatprep.subr.bf16.mxu1 %v7332_v60  ;;  %4646 = vmatmul.mubr.msk.bf16.vlgmr.msra.gmra.mrb[24].mxu0 %vm347_vm2, %v1039_v19  ;;  %v5591_v13 = vpack.c.bf16 %v5405_v34, %v5405_v34 }
 0x262   :  { %7362 = vst [vmem:[#allocation16_spill] sm:$0xff] %v5583_v11 }
 0x263   :  { %v492_v24 = vadd.f32 %v491_v22, %v490_v3  ;;  %7363 = vst [vmem:[#allocation17_spill] sm:$0xff] %v5591_v13 }
 0x264   :  { %4592 = vmatpush3.bf16.msra.mxu1 %v505_v10  ;;  %v1040_v29 = vpop.trf.xlu1  ;;  %v5579_v10 = vpack.c.bf16 %v5394_v26, %v5394_v26  ;;  %v5599_v26 = vpack.c.bf16 %v5489_v14, %v5489_v14 }
 0x265   :  { %v494_v30 = vadd.f32 %v493_v25, %v492_v24  ;;  %4593 = vmatprep.subr.bf16.mxu1 %v7332_v60  ;;  %4649 = vmatprep.mubr.msk.bf16.mxu0 %vm347_vm2, %v1040_v29 }
 0x266   :  { %7364 = vst [vmem:[#allocation18_spill] sm:$0xff] %v5599_v26 }
 0x267   :  { %v5508_v32 = vadd.f32 %v495_v31, %v494_v30 }
 0x268   :  { %4594 = vmatpush3.bf16.msra.mxu1 %v506_v16  ;;  %v1041_v36 = vpop.trf.xlu1 }
 0x269   :  { %4946 = vmatprep.subr.msk.bf16.mxu1 %vm360_vm1, %v5451_v58  ;;  %4650 = vmatmul.mubr.msk.bf16.gmra.mrb[28].mxu0 %vm347_vm2, %v1041_v36  ;;  %v497_v29 = vrot.slane %v5508_v32, 4 }
 0x26a   :  { %4661 = vmatprep.mubr.msk.bf16.mxu0 %vm5304_vm3, %v7332_v60 }
 0x26b   :  { %4596 = vmatmul.mubr.msk.bf16.vlgmr.msra.gmra.mrb[8].mxu1 %vm135_vm0, %v5390_v23  ;;  %v498_v31 = vadd.f32 %v497_v29, %v5508_v32 }
 0x26c   :  { %4600 = vmatpush3.bf16.msra.mxu1 %v595_v38  ;;  %4601 = vmatprep.mubr.msk.bf16.mxu1 %vm347_vm2, %v5453_v59  ;;  %v5521_v39 = vpop.trf.xlu1 }
 0x26d   :  { %4609 = vmatprep.subr.bf16.mxu1 %v7332_v60  ;;  %v499_v36 = vrot.slane %v498_v31, 2 }
 0x270   :  { %v5524_v40 = vpop.trf.xlu1 }
 0x273   :  { %4602 = vmatmul.mubr.msk.bf16.vlgmr.msra.gmra.mrb[12].mxu1 %vm347_vm2, %v5457_v61  ;;  %v4575_v61 = vpop.f32.mrb[20].mxu0 }
 0x274   :  { %4605 = vmatprep.mubr.msk.bf16.mxu1 %vm347_vm2, %v5459_v62  ;;  %v5530_v58 = vpop.trf.xlu1  ;;  %v3593_v17 = vpack.c.bf16 %v4575_v61, %v4575_v61  ;;  %v286_v53 = vpop.f32.mrb[21].mxu0 }
 0x275   :  { %v4576_v54 = vpop.f32.mrb[22].mxu0  ;;  %v5607_v19 = vpack.c.bf16 %v286_v53, %v286_v53 }
 0x276   :  { %3823 = vrot.lane.b32.xlu1 %v3593_v17, %s5302_s14  ;;  %v289_v57 = vpop.f32.mrb[23].mxu0  ;;  %v5613_v3 = vpack.c.bf16 %v4576_v54, %v4576_v54 }
 0x277   :  { %7365 = vst [vmem:[#allocation19_spill] sm:$0xff] %v5607_v19  ;;  %v5609_v34 = vpack.c.bf16 %v289_v57, %v289_v57  ;;  %v5639_v57 = vpack.c.bf16 %v5408_v37, %v5408_v37 }
 0x278   :  { %v5532_v46 = vpop.trf.xlu1  ;;  %7367 = vst [vmem:[#allocation21_spill] sm:$0xff] %v5613_v3 }
 0x279   :  { %7366 = vst [vmem:[#allocation20_spill] sm:$0xff] %v5609_v34  ;;  %7376 = vst [vmem:[#allocation30_spill] sm:$0xff] %v5639_v57 }
 0x27b   :  { %4606 = vmatmul.mubr.msk.bf16.gmra.mrb[16].mxu1 %vm347_vm2, %v5463_v63  ;;  %v5549_v63 = vpack.c.bf16 %v5449_v56, %v5449_v56 }
 0x27c   :  { %v5536_v23 = vpop.trf.xlu1  ;;  %4617 = vmatprep.mubr.msk.bf16.mxu1 %vm5304_vm3, %v7332_v60 }
 0x27d   :  { %7354 = vst [vmem:[#allocation8_spill] sm:$0xff] %v5549_v63 }
 0x280   :  { %v5540_v59 = vpop.trf.xlu1 }
 0x284   :  { %v5542_v15 = vpop.trf.xlu1 }
 0x288   :  { %v5545_v62 = vpop.trf.xlu1 }
 0x292   :  { %v2892_v18 = vpop.permute.xlu1 %2891 }
 0x293   :  { %2894 = vxpose.xlu0.c.b16.start.end [1/1] (short) (narrow) %v2892_v18, 64 }
 0x299   :  { %3130 = vxpose.xlu1.c.b16.start.end [1/1] (short) (narrow) %v3127_v55, 64  ;;  %v5571_v55 = vpop.permute.xlu0 %1979 }
 0x29d   :  { %v5573_v6 = vpop.permute.xlu0 %2445 }
 0x2a1   :  { %v5575_v7 = vpop.trf.xlu0 }
 0x2a5   :  { %v5587_v12 = vpop.trf.xlu0 }
 0x2a8   :  { %3377 = vrot.lane.b32.xlu0 %v5549_v63, %s5302_s14 }
 0x2a9   :  { %v5553_v20 = vpop.trf.xlu1  ;;  %v5595_v16 = vpop.trf.xlu0  ;;  %3843 = vrot.lane.b32.xlu1 %v5609_v34, %s5302_s14 }
 0x2ad   :  { %v5555_v21 = vpop.trf.xlu1  ;;  %v5603_v33 = vpop.trf.xlu0 }
 0x2ae   :  { %7355 = vst [vmem:[#allocation9_spill] sm:$0xff] %v5555_v21 }
 0x2b1   :  { %v5557_v28 = vpop.trf.xlu1  ;;  %v5617_v14 = vpop.permute.xlu0 %2911 }
 0x2b2   :  { %7356 = vst [vmem:[#allocation10_spill] sm:$0xff] %v5557_v28  ;;  %7368 = vst [vmem:[#allocation22_spill] sm:$0xff] %v5617_v14 }
 0x2b5   :  { %v5559_v35 = vpop.trf.xlu1  ;;  %v5621_v22 = vpop.trf.xlu0 }
 0x2b6   :  { %7357 = vst [vmem:[#allocation11_spill] sm:$0xff] %v5559_v35  ;;  %7369 = vst [vmem:[#allocation23_spill] sm:$0xff] %v5621_v22 }
 0x2b9   :  { %v5561_v41 = vpop.trf.xlu1  ;;  %v5623_v24 = vpop.trf.xlu0 }
 0x2ba   :  { %7358 = vst [vmem:[#allocation12_spill] sm:$0xff] %v5561_v41  ;;  %7370 = vst [vmem:[#allocation24_spill] sm:$0xff] %v5623_v24 }
 0x2bd   :  { %v5563_v44 = vpop.trf.xlu1  ;;  %v5625_v25 = vpop.trf.xlu0 }
 0x2be   :  { %7359 = vst [vmem:[#allocation13_spill] sm:$0xff] %v5563_v44  ;;  %7371 = vst [vmem:[#allocation25_spill] sm:$0xff] %v5625_v25 }
 0x2c1   :  { %v5565_v52 = vpop.trf.xlu1  ;;  %v5628_v30 = vpop.trf.xlu0 }
 0x2c2   :  { %7360 = vst [vmem:[#allocation14_spill] sm:$0xff] %v5565_v52  ;;  %7372 = vst [vmem:[#allocation26_spill] sm:$0xff] %v5628_v30 }
 0x2c5   :  { %v5567_v56 = vpop.trf.xlu1 }
 0x2c6   :  { %7361 = vst [vmem:[#allocation15_spill] sm:$0xff] %v5567_v56 }
 0x2d2   :  { %v3358_v9 = vpop.permute.xlu1 %3357 }
 0x2d3   :  { %3360 = vxpose.xlu0.c.b16.start.end [1/1] (short) (narrow) %v3358_v9, 64 }
 0x2e0   :  { %3596 = vxpose.xlu0.c.b16.start.end [1/1] (short) (narrow) %v3593_v17, 64  ;;  %v500_v17 = vadd.f32 %v499_v36, %v498_v31 }
 0x2e2   :  { %v501_v9 = vrot.slane %v500_v17, 1 }
 0x2e4   :  { %v502_v53 = vadd.f32 %v501_v9, %v500_v17 }
 0x2e6   :  { %5006 = vrcp.f32 %v502_v53 }
 0x2e8   :  { %v3824_v38 = vpop.permute.xlu1 %3823 }
 0x2e9   :  { %3826 = vxpose.xlu1.c.b16.start.end [1/1] (short) (narrow) %v3824_v38, 64 }
 0x2f5   :  { %1208 = vrot.lane.b32.xlu0 %v5579_v10, %s5302_s14 }
 0x2f9   :  { %1674 = vrot.lane.b32.xlu0 %v5583_v11, %s5302_s14  ;;  %v5631_v61 = vpop.trf.xlu0  ;;  %2606 = vrot.lane.b32.xlu1 %v5639_v57, %s5302_s14  ;;  %v5007_v11 = vpop.eup %5006 }
 0x2fa   :  { %7373 = vst [vmem:[#allocation27_spill] sm:$0xff] %v5631_v61 }
 0x2fd   :  { %2140 = vrot.lane.b32.xlu0 %v5591_v13, %s5302_s14  ;;  %v5633_v18 = vpop.trf.xlu0 }
 0x2fe   :  { %7374 = vst [vmem:[#allocation28_spill] sm:$0xff] %v5633_v18 }
 0x301   :  { %3072 = vrot.lane.b32.xlu0 %v5599_v26, %s5302_s14  ;;  %v5635_v54 = vpop.trf.xlu0 }
 0x302   :  { %7375 = vst [vmem:[#allocation29_spill] sm:$0xff] %v5635_v54 }
 0x305   :  { %3538 = vrot.lane.b32.xlu0 %v5607_v19, %s5302_s14  ;;  %v5641_v19 = vpop.trf.xlu0 }
 0x306   :  { %7377 = vst [vmem:[#allocation31_spill] sm:$0xff] %v5641_v19 }
 0x309   :  { %4004 = vrot.lane.b32.xlu0 %v5613_v3, %s5302_s14 }
 0x31a   :  { %v5657_v13 = vpop.permute.xlu0 %3377 }
 0x31b   :  { %7378 = vst [vmem:[#allocation32_spill] sm:$0xff] %v5657_v13 }
 0x334   :  { %v4647_v60 = vpop.f32.mrb[24].mxu0 }
 0x335   :  { %v1098_v3 = vpop.f32.mrb[25].mxu0  ;;  %v5645_v31 = vmul.f32 0.35355338, %v4647_v60 }
 0x336   :  { %v4648_v32 = vpop.f32.mrb[26].mxu0  ;;  %v5647_v36 = vmul.f32 0.35355338, %v1098_v3 }
 0x337   :  { %v1101_v29 = vpop.f32.mrb[27].mxu0  ;;  %v5649_v38 = vmul.f32 0.35355338, %v4648_v32  ;;  %v1139_v9 = vsel %vm135_vm0, %v5645_v31, -inf }
 0x338   :  { %v5651_v17 = vmul.f32 0.35355338, %v1101_v29  ;;  %v1137_v60 = vsel %vm135_vm0, %v5647_v36, -inf }
 0x339   :  { %v1140_v19 = vsel %vm135_vm0, %v5649_v38, -inf  ;;  %v5680_v41 = vpop.trf.xlu0 }
 0x33a   :  { %v1138_v61 = vsel %vm135_vm0, %v5651_v17, -inf  ;;  %7379 = vst [vmem:[#allocation33_spill] sm:$0xff] %v5680_v41 }
 0x33c   :  { %v4651_v37 = vpop.f32.mrb[28].mxu0 }
 0x33d   :  { %v5655_v53 = vmul.f32 0.35355338, %v4651_v37  ;;  %v1114_v26 = vpop.f32.mrb[29].mxu0 }
 0x33e   :  { %v544_v34 = vpop.f32.mrb[8].mxu1  ;;  %v5661_v3 = vmul.f32 0.35355338, %v1114_v26  ;;  %v4652_v32 = vpop.f32.mrb[30].mxu0 }
 0x33f   :  { %v551_v57 = vmul.f32 %v5007_v11, %v544_v34  ;;  %v4597_v29 = vpop.f32.mrb[9].mxu1  ;;  %v1145_v37 = vsel %vm135_vm0, %v5655_v53, -inf  ;;  %v5667_v54 = vmul.f32 0.35355338, %v4652_v32  ;;  %v1117_v18 = vpop.f32.mrb[31].mxu0 }
 0x340   :  { %v547_v13 = vpop.f32.mrb[10].mxu1  ;;  %v1146_v56 = vmax.f32 %v1139_v9, %v1145_v37  ;;  %v1141_v26 = vsel %vm135_vm0, %v5661_v3, -inf  ;;  %v5673_v63 = vmul.f32 0.35355338, %v1117_v18 }
 0x341   :  { %552 = vst.msk [vmem:[#allocation3] sm:$0xff] %vm135_vm0, %v551_v57  ;;  %v4598_v11 = vpop.f32.mrb[11].mxu1  ;;  %v1142_v34 = vmax.f32 %v1137_v60, %v1141_v26  ;;  %v1147_v29 = vsel %vm135_vm0, %v5667_v54, -inf }
 0x342   :  { %v1148_v32 = vmax.f32 %v1140_v19, %v1147_v29  ;;  %v1143_v13 = vsel %vm135_vm0, %v5673_v63, -inf  ;;  %v5682_v11 = vpop.trf.xlu0 }
 0x343   :  { %v1144_v52 = vmax.f32 %v1138_v61, %v1143_v13  ;;  %7380 = vst [vmem:[#allocation34_spill] sm:$0xff] %v5682_v11 }
 0x344   :  { %v1150_v44 = vmax.f32 %v1146_v56, %v1148_v32 }
 0x345   :  { %v1149_v9 = vmax.f32 %v1142_v34, %v1144_v52 }
 0x346   :  { %v4603_v37 = vpop.f32.mrb[12].mxu1 }
 0x347   :  { %v631_v30 = vpop.f32.mrb[13].mxu1  ;;  %v1151_v18 = vmax.f32 %v1149_v9, %v1150_v44  ;;  %v5684_v26 = vmul.f32 0.35355338, %v4603_v37  ;;  %v5696_v9 = vpop.trf.xlu0 }
 0x348   :  { %v4604_v14 = vpop.f32.mrb[14].mxu1  ;;  %v5686_v29 = vmul.f32 0.35355338, %v631_v30  ;;  %7381 = vst [vmem:[#allocation35_spill] sm:$0xff] %v5696_v9 }
 0x349   :  { %v634_v25 = vpop.f32.mrb[15].mxu1  ;;  %v1152_v57 = vrot.slane %v1151_v18, 4  ;;  %v5688_v61 = vmul.f32 0.35355338, %v4604_v14  ;;  %v672_v37 = vsel %vm135_vm0, %v5684_v26, -inf }
 0x34a   :  { %v5692_v32 = vmul.f32 0.35355338, %v634_v25 }
 0x34b   :  { %v1153_v60 = vmax.f32 %v1151_v18, %v1152_v57  ;;  %v670_v57 = vsel %vm135_vm0, %v5686_v29, -inf }
 0x34c   :  { %v671_v41 = vsel %vm135_vm0, %v5692_v32, -inf }
 0x34d   :  { %v1154_v19 = vrot.slane %v1153_v60, 2 }
 0x34e   :  { %v4607_v24 = vpop.f32.mrb[16].mxu1 }
 0x34f   :  { %v5690_v56 = vmul.f32 0.35355338, %v4607_v24  ;;  %v647_v52 = vpop.f32.mrb[17].mxu1  ;;  %v1155_v34 = vmax.f32 %v1153_v60, %v1154_v19 }
 0x350   :  { %v5694_v44 = vmul.f32 0.35355338, %v647_v52  ;;  %v4608_v13 = vpop.f32.mrb[18].mxu1  ;;  %v673_v52 = vsel %vm135_vm0, %v5688_v61, -inf }
 0x351   :  { %v678_v30 = vsel %vm135_vm0, %v5690_v56, -inf  ;;  %v5702_v18 = vmul.f32 0.35355338, %v4608_v13  ;;  %v650_v14 = vpop.f32.mrb[19].mxu1  ;;  %v1156_v24 = vrot.slane %v1155_v34, 1 }
 0x352   :  { %v679_v25 = vmax.f32 %v672_v37, %v678_v30  ;;  %v674_v60 = vsel %vm135_vm0, %v5694_v44, -inf  ;;  %v5708_v19 = vmul.f32 0.35355338, %v650_v14 }
 0x353   :  { %v675_v9 = vmax.f32 %v670_v57, %v674_v60  ;;  %v680_v11 = vsel %vm135_vm0, %v5702_v18, -inf  ;;  %v1157_v13 = vmax.f32 %v1155_v34, %v1156_v24  ;;  %v5724_v24 = vpop.trf.xlu0 }
 0x354   :  { %v681_v22 = vmax.f32 %v673_v52, %v680_v11  ;;  %v676_v37 = vsel %vm135_vm0, %v5708_v19, -inf }
 0x355   :  { %v677_v30 = vmax.f32 %v671_v41, %v676_v37  ;;  %v1158_v35 = vsub.f32 %v5647_v36, %v1157_v13  ;;  %v1159_v14 = vsub.f32 %v5651_v17, %v1157_v13  ;;  %v1160_v8 = vsub.f32 %v5645_v31, %v1157_v13 }
 0x356   :  { %v683_v28 = vmax.f32 %v679_v25, %v681_v22  ;;  %v1161_v57 = vsub.f32 %v5649_v38, %v1157_v13  ;;  %v1162_v60 = vsub.f32 %v5661_v3, %v1157_v13  ;;  %v1163_v34 = vsub.f32 %v5673_v63, %v1157_v13 }
 0x357   :  { %v682_v11 = vmax.f32 %v675_v9, %v677_v30  ;;  %v1164_v52 = vsub.f32 %v5655_v53, %v1157_v13  ;;  %v1166_v21 = vmul.f32 1.442695, %v1158_v35  ;;  %v1168_v41 = vmul.f32 1.442695, %v1159_v14  ;;  %v5728_v25 = vpop.trf.xlu0 }
 0x358   :  { %v1170_v37 = vmul.f32 1.442695, %v1160_v8  ;;  %v1165_v36 = vsub.f32 %v5667_v54, %v1157_v13  ;;  %v1172_v31 = vmul.f32 1.442695, %v1161_v57  ;;  %v1174_v38 = vmul.f32 1.442695, %v1162_v60 }
 0x359   :  { %v684_v17 = vmax.f32 %v682_v11, %v683_v28  ;;  %5008 = vpow2.f32 %v1166_v21  ;;  %v1176_v3 = vmul.f32 1.442695, %v1163_v34  ;;  %v1178_v9 = vmul.f32 1.442695, %v1164_v52 }
 0x35a   :  { %5010 = vpow2.f32 %v1168_v41  ;;  %v1180_v35 = vmul.f32 1.442695, %v1165_v36 }
 0x35b   :  { %v685_v22 = vrot.slane %v684_v17, 4  ;;  %5012 = vpow2.f32 %v1170_v37  ;;  %v5730_v54 = vpop.trf.xlu0 }
 0x35c   :  { %5014 = vpow2.f32 %v1172_v31 }
 0x35d   :  { %v686_v63 = vmax.f32 %v684_v17, %v685_v22  ;;  %5016 = vpow2.f32 %v1174_v38 }
 0x35e   :  { %5018 = vpow2.f32 %v1176_v3 }
 0x35f   :  { %v687_v30 = vrot.slane %v686_v63, 2  ;;  %5020 = vpow2.f32 %v1178_v9  ;;  %v7382_v9 = vmov 0.0  }
 0x360   :  { %5022 = vpow2.f32 %v1180_v35 }
 0x361   :  { %v688_v8 = vmax.f32 %v686_v63, %v687_v30  ;;  %v5743_v30 = vpop.trf.xlu0 }
 0x363   :  { %v5009_v21 = vpop.eup %5008  ;;  %v689_v28 = vrot.slane %v688_v8, 1 }
 0x364   :  { %v5011_v53 = vpop.eup %5010  ;;  %v1182_v13 = vsel %vm135_vm0, %v5009_v21, 0.0 }
 0x365   :  { %v5013_v14 = vpop.eup %5012  ;;  %v690_v57 = vmax.f32 %v688_v8, %v689_v28  ;;  %v1183_v60 = vsel %vm135_vm0, %v5011_v53, 0.0  ;;  %v1203_v34 = vpack.c.bf16 %v5011_v53, %v5009_v21 }
 0x366   :  { %v1184_v11 = vadd.f32 %v1183_v60, %v1182_v13  ;;  %v1185_v52 = vsel %vm135_vm0, %v5013_v14, 0.0  ;;  %v5015_v41 = vpop.eup %5014 }
 0x367   :  { %v691_v37 = vsub.f32 %v5686_v29, %v690_v57  ;;  %v692_v36 = vsub.f32 %v5692_v32, %v690_v57  ;;  %v693_v17 = vsub.f32 %v5684_v26, %v690_v57  ;;  %v694_v31 = vsub.f32 %v5688_v61, %v690_v57  ;;  %4654 = vmatpush3.bf16.msra.mxu0 %v1203_v34  ;;  %v5017_v35 = vpop.eup %5016 }
 0x368   :  { %v695_v22 = vsub.f32 %v5694_v44, %v690_v57  ;;  %v696_v38 = vsub.f32 %v5708_v19, %v690_v57  ;;  %v697_v3 = vsub.f32 %v5690_v56, %v690_v57  ;;  %v1186_v63 = vadd.f32 %v1185_v52, %v1184_v11  ;;  %4655 = vmatprep.subr.bf16.mxu0 %v7382_v9  ;;  %v5019_v21 = vpop.eup %5018 }
 0x369   :  { %v699_v29 = vmul.f32 1.442695, %v691_v37  ;;  %v701_v8 = vmul.f32 1.442695, %v692_v36  ;;  %v703_v32 = vmul.f32 1.442695, %v693_v17  ;;  %v698_v26 = vsub.f32 %v5702_v18, %v690_v57  ;;  %v5021_v53 = vpop.eup %5020 }
 0x36a   :  { %v705_v61 = vmul.f32 1.442695, %v694_v31  ;;  %v1204_v28 = vpack.c.bf16 %v5015_v41, %v5013_v14  ;;  %v707_v44 = vmul.f32 1.442695, %v695_v22  ;;  %v1187_v19 = vsel %vm135_vm0, %v5015_v41, 0.0  ;;  %v5748_v34 = vpop.eup %5022  ;;  %v5752_v41 = vpop.trf.xlu0 }
 0x36b   :  { %5024 = vpow2.f32 %v699_v29  ;;  %v1189_v56 = vsel %vm135_vm0, %v5017_v35, 0.0  ;;  %v709_v13 = vmul.f32 1.442695, %v696_v38  ;;  %v1188_v60 = vadd.f32 %v1187_v19, %v1186_v63 }
 0x36c   :  { %5026 = vpow2.f32 %v701_v8  ;;  %4656 = vmatpush3.bf16.msra.mxu0 %v1204_v28  ;;  %v711_v11 = vmul.f32 1.442695, %v697_v3  ;;  %v1191_v18 = vsel %vm135_vm0, %v5019_v21, 0.0  ;;  %v1205_v14 = vpack.c.bf16 %v5019_v21, %v5017_v35 }
 0x36d   :  { %5028 = vpow2.f32 %v703_v32  ;;  %4657 = vmatprep.subr.bf16.mxu0 %v7382_v9  ;;  %v1190_v57 = vadd.f32 %v1189_v56, %v1188_v60  ;;  %v713_v52 = vmul.f32 1.442695, %v698_v26  ;;  %v1193_v37 = vsel %vm135_vm0, %v5021_v53, 0.0 }
 0x36e   :  { %5030 = vpow2.f32 %v705_v61  ;;  %v1206_v17 = vpack.c.bf16 %v5748_v34, %v5021_v53  ;;  %v1209_v22 = vpop.permute.xlu0 %1208 }
 0x36f   :  { %5032 = vpow2.f32 %v707_v44  ;;  %v1192_v36 = vadd.f32 %v1191_v18, %v1190_v57 }
 0x370   :  { %5034 = vpow2.f32 %v709_v13  ;;  %4658 = vmatpush3.bf16.msra.mxu0 %v1205_v14 }
 0x371   :  { %5036 = vpow2.f32 %v711_v11  ;;  %4659 = vmatprep.subr.bf16.mxu0 %v7382_v9  ;;  %v1194_v31 = vadd.f32 %v1193_v37, %v1192_v36 }
 0x372   :  { %5038 = vpow2.f32 %v713_v52 }
 0x374   :  { %4660 = vmatpush3.bf16.msra.mxu0 %v1206_v17 }
 0x375   :  { %v5025_v38 = vpop.eup %5024  ;;  %4675 = vmatprep.subr.bf16.mxu0 %v7382_v9 }
 0x376   :  { %v5027_v3 = vpop.eup %5026  ;;  %v715_v63 = vsel %vm135_vm0, %v5025_v38, 0.0 }
 0x377   :  { %v5029_v35 = vpop.eup %5028  ;;  %v716_v29 = vsel %vm135_vm0, %v5027_v3, 0.0  ;;  %v736_v8 = vpack.c.bf16 %v5027_v3, %v5025_v38  ;;  %4662 = vmatmul.mubr.msk.bf16.vlgmr.msra.gmra.mrb[32].mxu0 %vm135_vm0, %v1209_v22  ;;  %v829_v3 = vsel %vm360_vm1, %v5396_v27, 0 }
 0x378   :  { %v5031_v32 = vpop.eup %5030  ;;  %v717_v26 = vadd.f32 %v716_v29, %v715_v63  ;;  %4683 = vmatprep.mubr.msk.bf16.mxu0 %vm5304_vm3, %v7382_v9  ;;  %v718_v61 = vsel %vm135_vm0, %v5029_v35, 0.0 }
 0x379   :  { %v5033_v21 = vpop.eup %5032  ;;  %4610 = vmatpush3.bf16.msra.mxu1 %v736_v8  ;;  %v737_v28 = vpack.c.bf16 %v5031_v32, %v5029_v35  ;;  %v720_v53 = vsel %vm135_vm0, %v5031_v32, 0.0 }
 0x37a   :  { %v5035_v44 = vpop.eup %5034  ;;  %v719_v19 = vadd.f32 %v718_v61, %v717_v26  ;;  %4611 = vmatprep.subr.bf16.mxu1 %v7382_v9  ;;  %v722_v18 = vsel %vm135_vm0, %v5033_v21, 0.0 }
 0x37b   :  { %v5037_v56 = vpop.eup %5036  ;;  %v738_v13 = vpack.c.bf16 %v5035_v44, %v5033_v21  ;;  %v724_v52 = vsel %vm135_vm0, %v5035_v44, 0.0 }
 0x37c   :  { %v5039_v60 = vpop.eup %5038  ;;  %v721_v11 = vadd.f32 %v720_v53, %v719_v19  ;;  %v726_v36 = vsel %vm135_vm0, %v5037_v56, 0.0 }
 0x37d   :  { %4612 = vmatpush3.bf16.msra.mxu1 %v737_v28  ;;  %v739_v14 = vpack.c.bf16 %v5039_v60, %v5037_v56  ;;  %v728_v22 = vsel %vm135_vm0, %v5039_v60, 0.0 }
 0x37e   :  { %v723_v57 = vadd.f32 %v722_v18, %v721_v11  ;;  %4613 = vmatprep.subr.bf16.mxu1 %v7382_v9 }
 0x380   :  { %v725_v37 = vadd.f32 %v724_v52, %v723_v57 }
 0x381   :  { %4614 = vmatpush3.bf16.msra.mxu1 %v738_v13 }
 0x382   :  { %v727_v17 = vadd.f32 %v726_v36, %v725_v37  ;;  %4615 = vmatprep.subr.bf16.mxu1 %v7382_v9 }
 0x384   :  { %v729_v38 = vadd.f32 %v728_v22, %v727_v17 }
 0x385   :  { %4616 = vmatpush3.bf16.msra.mxu1 %v739_v14 }
 0x386   :  { %4947 = vmatprep.subr.msk.bf16.mxu1 %vm360_vm1, %v5396_v27  ;;  %v1195_v27 = vsel %vm135_vm0, %v5748_v34, 0.0  ;;  %v730_v32 = vrot.slane %v729_v38, 4 }
 0x388   :  { %4618 = vmatmul.mubr.msk.bf16.vlgmr.msra.gmra.mrb[20].mxu1 %vm135_vm0, %v5429_v47  ;;  %v1196_v47 = vadd.f32 %v1195_v27, %v1194_v31  ;;  %v731_v26 = vadd.f32 %v730_v32, %v729_v38 }
 0x389   :  { %4622 = vmatpush3.bf16.msra.mxu1 %v829_v3  ;;  %4623 = vmatprep.mubr.msk.bf16.mxu1 %vm347_vm2, %v5431_v48 }
 0x38a   :  { %4631 = vmatprep.subr.bf16.mxu1 %v7382_v9  ;;  %v1197_v63 = vrot.slane %v1196_v47, 4 }
 0x38c   :  { %v1198_v48 = vadd.f32 %v1197_v63, %v1196_v47 }
 0x38e   :  { %v1199_v35 = vrot.slane %v1198_v48, 2 }
 0x390   :  { %4624 = vmatmul.mubr.msk.bf16.vlgmr.msra.gmra.mrb[24].mxu1 %vm347_vm2, %v5433_v49  ;;  %v1200_v29 = vadd.f32 %v1199_v35, %v1198_v48 }
 0x391   :  { %4627 = vmatprep.mubr.msk.bf16.mxu1 %vm347_vm2, %v5435_v50  ;;  %v732_v50 = vrot.slane %v731_v26, 2 }
 0x392   :  { %v1201_v8 = vrot.slane %v1200_v29, 1 }
 0x393   :  { %v733_v21 = vadd.f32 %v732_v50, %v731_v26 }
 0x394   :  { %v1202_v49 = vadd.f32 %v1201_v8, %v1200_v29 }
 0x396   :  { %5040 = vrcp.f32 %v1202_v49 }
 0x398   :  { %4628 = vmatmul.mubr.msk.bf16.gmra.mrb[28].mxu1 %vm347_vm2, %v5437_v51  ;;  %v734_v51 = vrot.slane %v733_v21, 1 }
 0x399   :  { %4639 = vmatprep.mubr.msk.bf16.mxu1 %vm5304_vm3, %v7382_v9 }
 0x39a   :  { %v735_v53 = vadd.f32 %v734_v51, %v733_v21 }
 0x39c   :  { %5042 = vrcp.f32 %v735_v53 }
 0x3a0   :  { %v5041_v61 = vpop.eup %5040 }
 0x3a6   :  { %v5043_v31 = vpop.eup %5042 }
 0x44a   :  { %v1247_v28 = vpop.f32.mrb[32].mxu0 }
 0x44b   :  { %v1254_v44 = vmul.f32 %v5041_v61, %v1247_v28  ;;  %v4663_v19 = vpop.f32.mrb[33].mxu0 }
 0x44c   :  { %v1250_v56 = vpop.f32.mrb[34].mxu0 }
 0x44d   :  { %v4664_v34 = vpop.f32.mrb[35].mxu0  ;;  %1256 = vrot.lane.b32.xlu1 %v1254_v44, %s5302_s14 }
 0x45b   :  { %v780_v13 = vpop.f32.mrb[20].mxu1 }
 0x45c   :  { %v787_v60 = vmul.f32 %v5043_v31, %v780_v13  ;;  %v4619_v11 = vpop.f32.mrb[21].mxu1 }
 0x45d   :  { %v783_v18 = vpop.f32.mrb[22].mxu1 }
 0x45e   :  { %v4620_v14 = vpop.f32.mrb[23].mxu1  ;;  %789 = vrot.lane.b32.xlu0 %v787_v60, %s5302_s14 }
 0x463   :  { %v4625_v57 = vpop.f32.mrb[24].mxu1 }
 0x464   :  { %v865_v52 = vpop.f32.mrb[25].mxu1  ;;  %v898_v17 = vmul.f32 0.35355338, %v4625_v57 }
 0x465   :  { %v4626_v37 = vpop.f32.mrb[26].mxu1  ;;  %v896_v22 = vmul.f32 0.35355338, %v865_v52 }
 0x466   :  { %v868_v36 = vpop.f32.mrb[27].mxu1  ;;  %v899_v3 = vmul.f32 0.35355338, %v4626_v37  ;;  %v906_v29 = vsel %vm135_vm0, %v898_v17, -inf }
 0x467   :  { %v897_v63 = vmul.f32 0.35355338, %v868_v36  ;;  %v904_v26 = vsel %vm135_vm0, %v896_v22, -inf }
 0x468   :  { %v907_v51 = vsel %vm135_vm0, %v899_v3, -inf }
 0x469   :  { %v905_v19 = vsel %vm135_vm0, %v897_v63, -inf }
 0x46b   :  { %v4629_v38 = vpop.f32.mrb[28].mxu1 }
 0x46c   :  { %v902_v27 = vmul.f32 0.35355338, %v4629_v38  ;;  %v881_v47 = vpop.f32.mrb[29].mxu1 }
 0x46d   :  { %v900_v48 = vmul.f32 0.35355338, %v881_v47  ;;  %v4630_v35 = vpop.f32.mrb[30].mxu1 }
 0x46e   :  { %v912_v8 = vsel %vm135_vm0, %v902_v27, -inf  ;;  %v903_v32 = vmul.f32 0.35355338, %v4630_v35  ;;  %v884_v49 = vpop.f32.mrb[31].mxu1 }
 0x46f   :  { %v913_v50 = vmax.f32 %v906_v29, %v912_v8  ;;  %v908_v21 = vsel %vm135_vm0, %v900_v48, -inf  ;;  %v901_v61 = vmul.f32 0.35355338, %v884_v49 }
 0x470   :  { %v909_v28 = vmax.f32 %v904_v26, %v908_v21  ;;  %v914_v44 = vsel %vm135_vm0, %v903_v32, -inf }
 0x471   :  { %v915_v56 = vmax.f32 %v907_v51, %v914_v44  ;;  %v910_v53 = vsel %vm135_vm0, %v901_v61, -inf }
 0x472   :  { %v911_v34 = vmax.f32 %v905_v19, %v910_v53 }
 0x473   :  { %v917_v31 = vmax.f32 %v913_v50, %v915_v56 }
 0x474   :  { %v916_v13 = vmax.f32 %v909_v28, %v911_v34 }
 0x476   :  { %v918_v60 = vmax.f32 %v916_v13, %v917_v31 }
 0x478   :  { %v919_v11 = vrot.slane %v918_v60, 4 }
 0x47a   :  { %v920_v18 = vmax.f32 %v918_v60, %v919_v11 }
 0x47c   :  { %v921_v14 = vrot.slane %v920_v18, 2 }
 0x47e   :  { %v922_v57 = vmax.f32 %v920_v18, %v921_v14 }
 0x480   :  { %v923_v52 = vrot.slane %v922_v57, 1 }
 0x482   :  { %v924_v37 = vmax.f32 %v922_v57, %v923_v52 }
 0x484   :  { %v925_v36 = vsub.f32 %v896_v22, %v924_v37  ;;  %v926_v38 = vsub.f32 %v897_v63, %v924_v37  ;;  %v927_v47 = vsub.f32 %v898_v17, %v924_v37  ;;  %v928_v35 = vsub.f32 %v899_v3, %v924_v37 }
 0x485   :  { %v929_v29 = vsub.f32 %v900_v48, %v924_v37  ;;  %v930_v8 = vsub.f32 %v901_v61, %v924_v37  ;;  %v931_v49 = vsub.f32 %v902_v27, %v924_v37  ;;  %v932_v26 = vsub.f32 %v903_v32, %v924_v37 }
 0x486   :  { %v933_v21 = vmul.f32 1.442695, %v925_v36  ;;  %v935_v51 = vmul.f32 1.442695, %v926_v38  ;;  %v937_v44 = vmul.f32 1.442695, %v927_v47 }
 0x487   :  { %v939_v50 = vmul.f32 1.442695, %v928_v35  ;;  %v941_v28 = vmul.f32 1.442695, %v929_v29  ;;  %v943_v19 = vmul.f32 1.442695, %v930_v8 }
 0x488   :  { %5044 = vpow2.f32 %v933_v21  ;;  %v945_v56 = vmul.f32 1.442695, %v931_v49  ;;  %v947_v53 = vmul.f32 1.442695, %v932_v26 }
 0x489   :  { %5046 = vpow2.f32 %v935_v51  ;;  %v1295_v51 = vsel %vm360_vm1, %v5410_v42, 0 }
 0x48a   :  { %5048 = vpow2.f32 %v937_v44  ;;  %v1528_v44 = vsel %vm360_vm1, %v5569_v0, 0 }
 0x48b   :  { %5050 = vpow2.f32 %v939_v50  ;;  %v7397_v50 = vld [vmem:[#allocation8_spill] sm:$0xff] }
 0x48c   :  { %5052 = vpow2.f32 %v941_v28  ;;  %v7398_v28 = vld [vmem:[#allocation15_spill] sm:$0xff] }
 0x48d   :  { %5054 = vpow2.f32 %v943_v19  ;;  %v7399_v19 = vld [vmem:[#allocation27_spill] sm:$0xff] }
 0x48e   :  { %5056 = vpow2.f32 %v945_v56  ;;  %v7400_v56 = vld [vmem:[#allocation28_spill] sm:$0xff] }
 0x48f   :  { %5058 = vpow2.f32 %v947_v53  ;;  %v3159_v53 = vsel %vm360_vm1, %v7397_v50, 0 }
 0x492   :  { %v5045_v17 = vpop.eup %5044 }
 0x493   :  { %v5047_v22 = vpop.eup %5046  ;;  %v949_v3 = vsel %vm135_vm0, %v5045_v17, 0.0 }
 0x494   :  { %v5049_v27 = vpop.eup %5048  ;;  %v950_v63 = vsel %vm135_vm0, %v5047_v22, 0.0  ;;  %v970_v48 = vpack.c.bf16 %v5047_v22, %v5045_v17  ;;  %v7401_v17 = vld [vmem:[#allocation29_spill] sm:$0xff]  ;;  %v7402_v22 = vld [vmem:[#allocation32_spill] sm:$0xff] }
 0x495   :  { %v5051_v32 = vpop.eup %5050  ;;  %v951_v61 = vadd.f32 %v950_v63, %v949_v3  ;;  %v952_v31 = vsel %vm135_vm0, %v5049_v27, 0.0  ;;  %v3138_v3 = vpop.trf.xlu1 }
 0x496   :  { %v5053_v34 = vpop.eup %5052  ;;  %4632 = vmatpush3.bf16.msra.mxu1 %v970_v48  ;;  %v971_v13 = vpack.c.bf16 %v5051_v32, %v5049_v27  ;;  %v954_v14 = vsel %vm135_vm0, %v5051_v32, 0.0  ;;  %v7403_v27 = vld [vmem:[#allocation31_spill] sm:$0xff]  ;;  %v3392_v48 = vsel %vm360_vm1, %v7402_v22, 0 }
 0x497   :  { %v5055_v60 = vpop.eup %5054  ;;  %v953_v11 = vadd.f32 %v952_v31, %v951_v61  ;;  %4633 = vmatprep.subr.bf16.mxu1 %v7382_v9  ;;  %v956_v36 = vsel %vm135_vm0, %v5053_v34, 0.0  ;;  %v7404_v61 = vld [vmem:[#allocation20_spill] sm:$0xff]  ;;  %v7405_v31 = vld [vmem:[#allocation33_spill] sm:$0xff] }
 0x498   :  { %v5057_v18 = vpop.eup %5056  ;;  %v972_v57 = vpack.c.bf16 %v5055_v60, %v5053_v34  ;;  %v958_v35 = vsel %vm135_vm0, %v5055_v60, 0.0  ;;  %v3625_v60 = vsel %vm360_vm1, %v7404_v61, 0 }
 0x499   :  { %v5059_v52 = vpop.eup %5058  ;;  %v955_v37 = vadd.f32 %v954_v14, %v953_v11  ;;  %v960_v8 = vsel %vm135_vm0, %v5057_v18, 0.0  ;;  %v3139_v63 = vpop.trf.xlu1 }
 0x49a   :  { %4634 = vmatpush3.bf16.msra.mxu1 %v971_v13  ;;  %v973_v38 = vpack.c.bf16 %v5059_v52, %v5057_v18  ;;  %v962_v26 = vsel %vm135_vm0, %v5059_v52, 0.0  ;;  %v7406_v13 = vld [vmem:[#allocation34_spill] sm:$0xff]  ;;  %v7407_v18 = vld [vmem:[#allocation35_spill] sm:$0xff] }
 0x49b   :  { %v957_v47 = vadd.f32 %v956_v36, %v955_v37  ;;  %4635 = vmatprep.subr.bf16.mxu1 %v7382_v9 }
 0x49d   :  { %v959_v29 = vadd.f32 %v958_v35, %v957_v47  ;;  %v3140_v32 = vpop.trf.xlu1 }
 0x49e   :  { %4636 = vmatpush3.bf16.msra.mxu1 %v972_v57 }
 0x49f   :  { %v961_v49 = vadd.f32 %v960_v8, %v959_v29  ;;  %4637 = vmatprep.subr.bf16.mxu1 %v7382_v9 }
 0x4a1   :  { %v5812_v21 = vadd.f32 %v962_v26, %v961_v49  ;;  %v3141_v34 = vpop.trf.xlu1 }
 0x4a2   :  { %4638 = vmatpush3.bf16.msra.mxu1 %v973_v38 }
 0x4a3   :  { %4949 = vmatprep.subr.msk.bf16.mxu1 %vm360_vm1, %v5410_v42  ;;  %v5834_v42 = vpop.permute.xlu0 %1674 }
 0x4a5   :  { %4640 = vmatmul.mubr.msk.bf16.vlgmr.msra.gmra.mrb[32].mxu1 %vm135_vm0, %v5579_v10  ;;  %v7394_v10 = vld [vmem:[#allocation12_spill] sm:$0xff]  ;;  %v3844_v11 = vpop.permute.xlu1 %3843 }
 0x4a6   :  { %4666 = vmatpush3.bf16.msra.mxu1 %v1295_v51  ;;  %4667 = vmatprep.mubr.msk.bf16.mxu1 %vm347_vm2, %v5465_v1  ;;  %v3858_v14 = vsel %vm360_vm1, %v3844_v11, 0 }
 0x4a7   :  { %4950 = vmatprep.subr.msk.bf16.mxu1 %vm360_vm1, %v5569_v0  ;;  %v5838_v1 = vpop.permute.xlu0 %2140 }
 0x4a9   :  { %v3834_v57 = vpop.trf.xlu1 }
 0x4ad   :  { %4668 = vmatmul.mubr.msk.bf16.vlgmr.msra.gmra.mrb[36].mxu1 %vm347_vm2, %v5467_v2  ;;  %v1761_v2 = vsel %vm360_vm1, %v5413_v43, 0  ;;  %v3835_v52 = vpop.trf.xlu1 }
 0x4ae   :  { %4688 = vmatpush3.bf16.msra.mxu1 %v1528_v44  ;;  %4671 = vmatprep.mubr.msk.bf16.mxu1 %vm347_vm2, %v5471_v4  ;;  %v5848_v4 = vpop.permute.xlu0 %3072 }
 0x4af   :  { %4951 = vmatprep.subr.msk.bf16.mxu1 %vm360_vm1, %v5413_v43  ;;  %v1994_v43 = vsel %vm360_vm1, %v5571_v55, 0 }
 0x4b1   :  { %v3836_v37 = vpop.trf.xlu1 }
 0x4b5   :  { %4672 = vmatmul.mubr.msk.bf16.gmra.mrb[40].mxu1 %vm347_vm2, %v5473_v5  ;;  %v5850_v5 = vpop.permute.xlu0 %3538  ;;  %v3837_v38 = vpop.trf.xlu1 }
 0x4b6   :  { %4689 = vmatprep.mubr.msk.bf16.mxu1 %vm347_vm2, %v5536_v23  ;;  %7383 = vst [vmem:[#allocation36_spill] sm:$0xff] %v5850_v5 }
 0x4b9   :  { %v5856_v23 = vpop.permute.xlu0 %4004 }
 0x4ba   :  { %7384 = vst [vmem:[#allocation37_spill] sm:$0xff] %v5856_v23 }
 0x4bd   :  { %4690 = vmatmul.mubr.msk.bf16.vlgmr.msra.gmra.mrb[44].mxu1 %vm347_vm2, %v5540_v59 }
 0x4be   :  { %4710 = vmatpush3.bf16.msra.mxu1 %v1761_v2  ;;  %4693 = vmatprep.mubr.msk.bf16.mxu1 %vm347_vm2, %v5542_v15  ;;  %v7388_v15 = vld [vmem:[#allocation11_spill] sm:$0xff] }
 0x4bf   :  { %4952 = vmatprep.subr.msk.bf16.mxu1 %vm360_vm1, %v5571_v55  ;;  %v7391_v55 = vld [vmem:[#allocation25_spill] sm:$0xff] }
 0x4c5   :  { %4694 = vmatmul.mubr.msk.bf16.gmra.mrb[48].mxu1 %vm347_vm2, %v5545_v62  ;;  %v7389_v62 = vld [vmem:[#allocation23_spill] sm:$0xff] }
 0x4c6   :  { %4711 = vmatprep.mubr.msk.bf16.mxu1 %vm347_vm2, %v5521_v39  ;;  %v2227_v39 = vsel %vm360_vm1, %v5417_v45, 0 }
 0x4cd   :  { %4712 = vmatmul.mubr.msk.bf16.vlgmr.msra.gmra.mrb[52].mxu1 %vm347_vm2, %v5524_v40  ;;  %v2460_v40 = vsel %vm360_vm1, %v5573_v6, 0 }
 0x4ce   :  { %4732 = vmatpush3.bf16.msra.mxu1 %v1994_v43  ;;  %4715 = vmatprep.mubr.msk.bf16.mxu1 %vm347_vm2, %v5530_v58  ;;  %v7385_v58 = vld [vmem:[#allocation9_spill] sm:$0xff] }
 0x4cf   :  { %4953 = vmatprep.subr.msk.bf16.mxu1 %vm360_vm1, %v5417_v45  ;;  %v7386_v45 = vld [vmem:[#allocation10_spill] sm:$0xff] }
 0x4d0   :  { %v790_v59 = vpop.permute.xlu0 %789 }
 0x4d1   :  { %793 = vst.msk [vmem:[#allocation3] sm:$0xff] %vm792_vm4, %v790_v59 }
 0x4d5   :  { %4716 = vmatmul.mubr.msk.bf16.gmra.mrb[56].mxu1 %vm347_vm2, %v5532_v46  ;;  %v7387_v46 = vld [vmem:[#allocation7_spill] sm:$0xff] }
 0x4d6   :  { %4733 = vmatprep.mubr.msk.bf16.mxu1 %vm347_vm2, %v5575_v7  ;;  %v2693_v0 = vsel %vm360_vm1, %v7387_v46, 0  ;;  %v7393_v7 = vld [vmem:[#allocation26_spill] sm:$0xff] }
 0x4dd   :  { %4734 = vmatmul.mubr.msk.bf16.vlgmr.msra.gmra.mrb[60].mxu1 %vm347_vm2, %v5587_v12 }
 0x4de   :  { %4754 = vmatpush3.bf16.msra.mxu1 %v2227_v39  ;;  %4737 = vmatprep.mubr.msk.bf16.mxu1 %vm347_vm2, %v5595_v16  ;;  %v7395_v16 = vld [vmem:[#allocation13_spill] sm:$0xff]  ;;  %v4064_v39 = vld [vmem:[#allocation3] sm:$0xff] }
 0x4df   :  { %4954 = vmatprep.subr.msk.bf16.mxu1 %vm360_vm1, %v5573_v6  ;;  %v7392_v6 = vld [vmem:[#allocation22_spill] sm:$0xff] }
 0x4e0   :  { %v2926_v12 = vsel %vm360_vm1, %v7392_v6, 0 }
 0x4e5   :  { %4738 = vmatmul.mubr.msk.bf16.gmra.mrb[64].mxu1 %vm347_vm2, %v5603_v33  ;;  %v7396_v33 = vld [vmem:[#allocation14_spill] sm:$0xff] }
 0x4e6   :  { %4755 = vmatprep.mubr.msk.bf16.mxu1 %vm347_vm2, %v5553_v20  ;;  %v7390_v20 = vld [vmem:[#allocation24_spill] sm:$0xff] }
 0x4ed   :  { %4756 = vmatmul.mubr.msk.bf16.vlgmr.msra.gmra.mrb[68].mxu1 %vm347_vm2, %v7385_v58 }
 0x4ee   :  { %4776 = vmatpush3.bf16.msra.mxu1 %v2460_v40  ;;  %4759 = vmatprep.mubr.msk.bf16.mxu1 %vm347_vm2, %v7386_v45 }
 0x4ef   :  { %4955 = vmatprep.subr.msk.bf16.mxu1 %vm360_vm1, %v7387_v46 }
 0x4f5   :  { %4760 = vmatmul.mubr.msk.bf16.gmra.mrb[72].mxu1 %vm347_vm2, %v7388_v15 }
 0x4f6   :  { %4777 = vmatprep.mubr.msk.bf16.mxu1 %vm347_vm2, %v7389_v62 }
 0x4fd   :  { %4778 = vmatmul.mubr.msk.bf16.vlgmr.msra.gmra.mrb[76].mxu1 %vm347_vm2, %v7390_v20 }
 0x4fe   :  { %4798 = vmatpush3.bf16.msra.mxu1 %v2693_v0  ;;  %4781 = vmatprep.mubr.msk.bf16.mxu1 %vm347_vm2, %v7391_v55 }
 0x4ff   :  { %4956 = vmatprep.subr.msk.bf16.mxu1 %vm360_vm1, %v7392_v6 }
 0x505   :  { %4782 = vmatmul.mubr.msk.bf16.gmra.mrb[80].mxu1 %vm347_vm2, %v7393_v7 }
 0x506   :  { %4799 = vmatprep.mubr.msk.bf16.mxu1 %vm347_vm2, %v7394_v10 }
 0x50d   :  { %4800 = vmatmul.mubr.msk.bf16.vlgmr.msra.gmra.mrb[84].mxu1 %vm347_vm2, %v7395_v16 }
 0x50e   :  { %4820 = vmatpush3.bf16.msra.mxu1 %v2926_v12  ;;  %4803 = vmatprep.mubr.msk.bf16.mxu1 %vm347_vm2, %v7396_v33 }
 0x50f   :  { %4957 = vmatprep.subr.msk.bf16.mxu1 %vm360_vm1, %v7397_v50 }
 0x515   :  { %4804 = vmatmul.mubr.msk.bf16.gmra.mrb[88].mxu1 %vm347_vm2, %v7398_v28 }
 0x516   :  { %4821 = vmatprep.mubr.msk.bf16.mxu1 %vm347_vm2, %v7399_v19 }
 0x51d   :  { %4822 = vmatmul.mubr.msk.bf16.vlgmr.msra.gmra.mrb[92].mxu1 %vm347_vm2, %v7400_v56 }
 0x51e   :  { %4842 = vmatpush3.bf16.msra.mxu1 %v3159_v53  ;;  %4825 = vmatprep.mubr.msk.bf16.mxu1 %vm347_vm2, %v7401_v17 }
 0x51f   :  { %4958 = vmatprep.subr.msk.bf16.mxu1 %vm360_vm1, %v7402_v22 }
 0x525   :  { %4826 = vmatmul.mubr.msk.bf16.gmra.mrb[96].mxu1 %vm347_vm2, %v7403_v27 }
 0x526   :  { %4843 = vmatprep.mubr.msk.bf16.mxu1 %vm347_vm2, %v3138_v3 }
 0x52d   :  { %4844 = vmatmul.mubr.msk.bf16.vlgmr.msra.gmra.mrb[100].mxu1 %vm347_vm2, %v3139_v63 }
 0x52e   :  { %4864 = vmatpush3.bf16.msra.mxu1 %v3392_v48  ;;  %4847 = vmatprep.mubr.msk.bf16.mxu1 %vm347_vm2, %v3140_v32 }
 0x52f   :  { %4959 = vmatprep.subr.msk.bf16.mxu1 %vm360_vm1, %v7404_v61 }
 0x535   :  { %4848 = vmatmul.mubr.msk.bf16.gmra.mrb[104].mxu1 %vm347_vm2, %v3141_v34 }
 0x536   :  { %4865 = vmatprep.mubr.msk.bf16.mxu1 %vm347_vm2, %v7405_v31 }
 0x53d   :  { %4866 = vmatmul.mubr.msk.bf16.vlgmr.msra.gmra.mrb[108].mxu1 %vm347_vm2, %v7406_v13 }
 0x53e   :  { %4886 = vmatpush3.bf16.msra.mxu1 %v3625_v60  ;;  %4869 = vmatprep.mubr.msk.bf16.mxu1 %vm347_vm2, %v7407_v18 }
 0x53f   :  { %4960 = vmatprep.subr.msk.bf16.mxu1 %vm360_vm1, %v3844_v11 }
 0x545   :  { %4870 = vmatmul.mubr.msk.bf16.gmra.mrb[112].mxu1 %vm347_vm2, %v5724_v24  ;;  %v964_v24 = vrot.slane %v5812_v21, 4 }
 0x546   :  { %4887 = vmatprep.mubr.msk.bf16.mxu1 %vm347_vm2, %v5728_v25 }
 0x547   :  { %v965_v25 = vadd.f32 %v964_v24, %v5812_v21 }
 0x54d   :  { %4888 = vmatmul.mubr.msk.bf16.vlgmr.msra.gmra.mrb[116].mxu1 %vm347_vm2, %v5730_v54  ;;  %v966_v54 = vrot.slane %v965_v25, 2 }
 0x54e   :  { %4908 = vmatpush3.bf16.msra.mxu1 %v3858_v14  ;;  %4891 = vmatprep.mubr.msk.bf16.mxu1 %vm347_vm2, %v5743_v30 }
 0x54f   :  { %v967_v36 = vadd.f32 %v966_v54, %v965_v25 }
 0x551   :  { %v968_v30 = vrot.slane %v967_v36, 1 }
 0x553   :  { %v969_v47 = vadd.f32 %v968_v30, %v967_v36 }
 0x555   :  { %4892 = vmatmul.mubr.msk.bf16.gmra.mrb[120].mxu1 %vm347_vm2, %v5752_v41  ;;  %5060 = vrcp.f32 %v969_v47  ;;  %v5963_v41 = vpop.permute.xlu1 %2606 }
 0x556   :  { %4909 = vmatprep.mubr.msk.bf16.mxu1 %vm347_vm2, %v3834_v57 }
 0x559   :  { %v1257_v21 = vpop.permute.xlu1 %1256 }
 0x55d   :  { %4910 = vmatmul.mubr.msk.bf16.vlgmr.msra.gmra.mrb[124].mxu1 %vm347_vm2, %v3835_v52 }
 0x55e   :  { %4913 = vmatprep.mubr.msk.bf16.mxu1 %vm347_vm2, %v3836_v37 }
 0x55f   :  { %v5061_v35 = vpop.eup %5060 }
 0x565   :  { %4914 = vmatmul.mubr.msk.bf16.gmra.mrb[128].mxu1 %vm347_vm2, %v3837_v38 }
 0x578   :  { %v1011_v29 = vpop.f32.mrb[32].mxu1 }
 0x579   :  { %v1018_v8 = vmul.f32 %v5061_v35, %v1011_v29  ;;  %v4641_v49 = vpop.f32.mrb[33].mxu1 }
 0x57a   :  { %v1014_v26 = vpop.f32.mrb[34].mxu1 }
 0x57b   :  { %1019 = vst.msk [vmem:[#allocation3 + $0x8] sm:$0xff] %vm135_vm0, %v1018_v8  ;;  %v4642_v51 = vpop.f32.mrb[35].mxu1 }
 0x57c   :  { %1259 = vst.msk [vmem:[#allocation3 + $0x8] sm:$0xff] %vm792_vm4, %v1257_v21 }
 0x580   :  { %v4669_v44 = vpop.f32.mrb[36].mxu1 }
 0x581   :  { %v1331_v2 = vpop.f32.mrb[37].mxu1  ;;  %v5967_v45 = vmul.f32 0.35355338, %v4669_v44 }
 0x582   :  { %v4670_v43 = vpop.f32.mrb[38].mxu1  ;;  %v5969_v46 = vmul.f32 0.35355338, %v1331_v2 }
 0x583   :  { %v1334_v59 = vpop.f32.mrb[39].mxu1  ;;  %v4065_v40 = vld [vmem:[#allocation3 + $0x8] sm:$0xff]  ;;  %v5971_v62 = vmul.f32 0.35355338, %v4670_v43  ;;  %v1372_v10 = vsel %vm135_vm0, %v5967_v45, -inf }
 0x584   :  { %v4072_v58 = vpack.c.bf16 %v4065_v40, %v4064_v39  ;;  %v5975_v55 = vmul.f32 0.35355338, %v1334_v59  ;;  %v1370_v50 = vsel %vm135_vm0, %v5969_v46, -inf }
 0x585   :  { %v1373_v53 = vsel %vm135_vm0, %v5971_v62, -inf }
 0x586   :  { %4929 = vmatprep.subr.bf16.mxu1 %v4072_v58  ;;  %v1371_v3 = vsel %vm135_vm0, %v5975_v55, -inf }
 0x587   :  { %4930 = vmatpush3.bf16.msra.mxu1 %v4072_v58 }
 0x588   :  { %v4673_v15 = vpop.f32.mrb[40].mxu1 }
 0x589   :  { %v5973_v20 = vmul.f32 0.35355338, %v4673_v15  ;;  %v1347_v0 = vpop.f32.mrb[41].mxu1 }
 0x58a   :  { %v5977_v6 = vmul.f32 0.35355338, %v1347_v0  ;;  %v4674_v7 = vpop.f32.mrb[42].mxu1 }
 0x58b   :  { %v1378_v12 = vsel %vm135_vm0, %v5973_v20, -inf  ;;  %v5983_v16 = vmul.f32 0.35355338, %v4674_v7  ;;  %v1350_v33 = vpop.f32.mrb[43].mxu1 }
 0x58c   :  { %v1379_v28 = vmax.f32 %v1372_v10, %v1378_v12  ;;  %v1374_v19 = vsel %vm135_vm0, %v5977_v6, -inf  ;;  %v5989_v56 = vmul.f32 0.35355338, %v1350_v33 }
 0x58d   :  { %v1375_v17 = vmax.f32 %v1370_v50, %v1374_v19  ;;  %v1380_v22 = vsel %vm135_vm0, %v5983_v16, -inf }
 0x58e   :  { %v1381_v27 = vmax.f32 %v1373_v53, %v1380_v22  ;;  %v1376_v63 = vsel %vm135_vm0, %v5989_v56, -inf }
 0x58f   :  { %v1377_v48 = vmax.f32 %v1371_v3, %v1376_v63 }
 0x590   :  { %v1383_v32 = vmax.f32 %v1379_v28, %v1381_v27  ;;  %v4691_v61 = vpop.f32.mrb[44].mxu1 }
 0x591   :  { %v1382_v34 = vmax.f32 %v1375_v17, %v1377_v48  ;;  %v1564_v31 = vpop.f32.mrb[45].mxu1  ;;  %v5999_v57 = vmul.f32 0.35355338, %v4691_v61 }
 0x592   :  { %v4692_v13 = vpop.f32.mrb[46].mxu1  ;;  %v6001_v24 = vmul.f32 0.35355338, %v1564_v31 }
 0x593   :  { %v1384_v60 = vmax.f32 %v1382_v34, %v1383_v32  ;;  %v1567_v11 = vpop.f32.mrb[47].mxu1  ;;  %v6003_v37 = vmul.f32 0.35355338, %v4692_v13  ;;  %v1605_v29 = vsel %vm135_vm0, %v5999_v57, -inf }
 0x594   :  { %v6007_v38 = vmul.f32 0.35355338, %v1567_v11  ;;  %v1603_v21 = vsel %vm135_vm0, %v6001_v24, -inf }
 0x595   :  { %v1385_v18 = vrot.slane %v1384_v60, 4  ;;  %v1606_v59 = vsel %vm135_vm0, %v6003_v37, -inf }
 0x596   :  { %v1604_v58 = vsel %vm135_vm0, %v6007_v38, -inf }
 0x597   :  { %v1386_v14 = vmax.f32 %v1384_v60, %v1385_v18 }
 0x598   :  { %v4695_v52 = vpop.f32.mrb[48].mxu1 }
 0x599   :  { %v1387_v25 = vrot.slane %v1386_v14, 2  ;;  %v6005_v54 = vmul.f32 0.35355338, %v4695_v52  ;;  %v1580_v36 = vpop.f32.mrb[49].mxu1 }
 0x59a   :  { %v6009_v30 = vmul.f32 0.35355338, %v1580_v36  ;;  %v4696_v47 = vpop.f32.mrb[50].mxu1 }
 0x59b   :  { %v1388_v35 = vmax.f32 %v1386_v14, %v1387_v25  ;;  %v1611_v8 = vsel %vm135_vm0, %v6005_v54, -inf  ;;  %v6015_v49 = vmul.f32 0.35355338, %v4696_v47  ;;  %v1583_v26 = vpop.f32.mrb[51].mxu1 }
 0x59c   :  { %v1612_v51 = vmax.f32 %v1605_v29, %v1611_v8  ;;  %v1607_v44 = vsel %vm135_vm0, %v6009_v30, -inf  ;;  %v6021_v2 = vmul.f32 0.35355338, %v1583_v26 }
 0x59d   :  { %v1389_v43 = vrot.slane %v1388_v35, 1  ;;  %v1608_v39 = vmax.f32 %v1603_v21, %v1607_v44  ;;  %v1613_v40 = vsel %vm135_vm0, %v6015_v49, -inf }
 0x59e   :  { %v1614_v15 = vmax.f32 %v1606_v59, %v1613_v40  ;;  %v1609_v0 = vsel %vm135_vm0, %v6021_v2, -inf }
 0x59f   :  { %v1390_v7 = vmax.f32 %v1388_v35, %v1389_v43  ;;  %v1610_v10 = vmax.f32 %v1604_v58, %v1609_v0 }
 0x5a0   :  { %v1616_v12 = vmax.f32 %v1612_v51, %v1614_v15  ;;  %v4713_v33 = vpop.f32.mrb[52].mxu1 }
 0x5a1   :  { %v1391_v50 = vsub.f32 %v5969_v46, %v1390_v7  ;;  %v1392_v28 = vsub.f32 %v5975_v55, %v1390_v7  ;;  %v1393_v19 = vsub.f32 %v5967_v45, %v1390_v7  ;;  %v1394_v53 = vsub.f32 %v5971_v62, %v1390_v7  ;;  %v1797_v17 = vpop.f32.mrb[53].mxu1 }
 0x5a2   :  { %v1395_v22 = vsub.f32 %v5977_v6, %v1390_v7  ;;  %v1396_v3 = vsub.f32 %v5989_v56, %v1390_v7  ;;  %v1397_v27 = vsub.f32 %v5973_v20, %v1390_v7  ;;  %v1615_v63 = vmax.f32 %v1608_v39, %v1610_v10  ;;  %v4714_v48 = vpop.f32.mrb[54].mxu1 }
 0x5a3   :  { %v1399_v32 = vmul.f32 1.442695, %v1391_v50  ;;  %v1401_v61 = vmul.f32 1.442695, %v1392_v28  ;;  %v1403_v34 = vmul.f32 1.442695, %v1393_v19  ;;  %v1398_v46 = vsub.f32 %v5983_v16, %v1390_v7 }
 0x5a4   :  { %v1405_v31 = vmul.f32 1.442695, %v1394_v53  ;;  %v1617_v55 = vmax.f32 %v1615_v63, %v1616_v12  ;;  %v1407_v45 = vmul.f32 1.442695, %v1395_v22  ;;  %v6039_v13 = vmul.f32 0.35355338, %v4713_v33 }
 0x5a5   :  { %5062 = vpow2.f32 %v1399_v32  ;;  %v1409_v62 = vmul.f32 1.442695, %v1396_v3  ;;  %v1800_v60 = vpop.f32.mrb[55].mxu1  ;;  %v1411_v56 = vmul.f32 1.442695, %v1397_v27 }
 0x5a6   :  { %5064 = vpow2.f32 %v1401_v61  ;;  %v1618_v6 = vrot.slane %v1617_v55, 4  ;;  %v6041_v20 = vmul.f32 0.35355338, %v1797_v17  ;;  %v6043_v18 = vmul.f32 0.35355338, %v4714_v48 }
 0x5a7   :  { %5066 = vpow2.f32 %v1403_v34  ;;  %v1838_v16 = vsel %vm135_vm0, %v6039_v13, -inf  ;;  %v1413_v36 = vmul.f32 1.442695, %v1398_v46  ;;  %v6049_v35 = vmul.f32 0.35355338, %v1800_v60 }
 0x5a8   :  { %5068 = vpow2.f32 %v1405_v31  ;;  %v1619_v11 = vmax.f32 %v1617_v55, %v1618_v6  ;;  %v4717_v14 = vpop.f32.mrb[56].mxu1  ;;  %v1836_v26 = vsel %vm135_vm0, %v6041_v20, -inf  ;;  %v1839_v58 = vsel %vm135_vm0, %v6043_v18, -inf }
 0x5a9   :  { %5070 = vpow2.f32 %v1407_v45  ;;  %v6047_v52 = vmul.f32 0.35355338, %v4717_v14  ;;  %v1813_v25 = vpop.f32.mrb[57].mxu1  ;;  %v1837_v10 = vsel %vm135_vm0, %v6049_v35, -inf }
 0x5aa   :  { %5072 = vpow2.f32 %v1409_v62  ;;  %v1620_v47 = vrot.slane %v1619_v11, 2  ;;  %v6051_v29 = vmul.f32 0.35355338, %v1813_v25  ;;  %v4718_v8 = vpop.f32.mrb[58].mxu1 }
 0x5ab   :  { %5074 = vpow2.f32 %v1411_v56  ;;  %v1844_v21 = vsel %vm135_vm0, %v6047_v52, -inf  ;;  %v6057_v51 = vmul.f32 0.35355338, %v4718_v8  ;;  %v1816_v44 = vpop.f32.mrb[59].mxu1 }
 0x5ac   :  { %v1621_v43 = vmax.f32 %v1619_v11, %v1620_v47  ;;  %v1845_v59 = vmax.f32 %v1838_v16, %v1844_v21  ;;  %v1840_v39 = vsel %vm135_vm0, %v6051_v29, -inf  ;;  %v6061_v40 = vmul.f32 0.35355338, %v1816_v44 }
 0x5ad   :  { %v1841_v15 = vmax.f32 %v1836_v26, %v1840_v39  ;;  %v1846_v0 = vsel %vm135_vm0, %v6057_v51, -inf  ;;  %5076 = vpow2.f32 %v1413_v36 }
 0x5ae   :  { %v1622_v7 = vrot.slane %v1621_v43, 1  ;;  %v1847_v12 = vmax.f32 %v1839_v58, %v1846_v0  ;;  %v1842_v33 = vsel %vm135_vm0, %v6061_v40, -inf }
 0x5af   :  { %v5063_v50 = vpop.eup %5062  ;;  %v1843_v28 = vmax.f32 %v1837_v10, %v1842_v33 }
 0x5b0   :  { %v5065_v19 = vpop.eup %5064  ;;  %v1415_v53 = vsel %vm135_vm0, %v5063_v50, 0.0  ;;  %v6072_v17 = vmax.f32 %v1621_v43, %v1622_v7  ;;  %v1849_v22 = vmax.f32 %v1845_v59, %v1847_v12  ;;  %v4735_v3 = vpop.f32.mrb[60].mxu1 }
 0x5b1   :  { %v5067_v27 = vpop.eup %5066  ;;  %v1416_v63 = vsel %vm135_vm0, %v5065_v19, 0.0  ;;  %v1848_v48 = vmax.f32 %v1841_v15, %v1843_v28  ;;  %v6075_v32 = vmul.f32 0.35355338, %v4735_v3  ;;  %v2030_v61 = vpop.f32.mrb[61].mxu1  ;;  %v1436_v34 = vpack.c.bf16 %v5065_v19, %v5063_v50 }
 0x5b2   :  { %v5069_v46 = vpop.eup %5068  ;;  %v1417_v31 = vadd.f32 %v1416_v63, %v1415_v53  ;;  %v1418_v55 = vsel %vm135_vm0, %v5067_v27, 0.0  ;;  %v1624_v45 = vsub.f32 %v6001_v24, %v6072_v17  ;;  %v1625_v62 = vsub.f32 %v6007_v38, %v6072_v17  ;;  %v4736_v6 = vpop.f32.mrb[62].mxu1 }
 0x5b3   :  { %v6082_v60 = vpop.eup %5070  ;;  %v1420_v56 = vsel %vm135_vm0, %v5069_v46, 0.0  ;;  %v1626_v11 = vsub.f32 %v5999_v57, %v6072_v17  ;;  %v1627_v14 = vsub.f32 %v6003_v37, %v6072_v17  ;;  %v1628_v16 = vsub.f32 %v6009_v30, %v6072_v17  ;;  %4676 = vmatpush3.bf16.msra.mxu0 %v1436_v34  ;;  %v2033_v25 = vpop.f32.mrb[63].mxu1 }
 0x5b4   :  { %v5073_v24 = vpop.eup %5072  ;;  %v1419_v36 = vadd.f32 %v1418_v55, %v1417_v31  ;;  %v1422_v38 = vsel %vm135_vm0, %v6082_v60, 0.0  ;;  %v1629_v47 = vsub.f32 %v6021_v2, %v6072_v17  ;;  %v1630_v8 = vsub.f32 %v6005_v54, %v6072_v17  ;;  %4677 = vmatprep.subr.bf16.mxu0 %v7382_v9 }
 0x5b5   :  { %v6098_v57 = vpop.eup %5074  ;;  %v1424_v37 = vsel %vm135_vm0, %v5073_v24, 0.0  ;;  %v1632_v30 = vmul.f32 1.442695, %v1624_v45  ;;  %v1634_v26 = vmul.f32 1.442695, %v1625_v62  ;;  %v1850_v21 = vmax.f32 %v1848_v48, %v1849_v22 }
 0x5b6   :  { %v1421_v44 = vadd.f32 %v1420_v56, %v1419_v36  ;;  %v1426_v43 = vsel %vm135_vm0, %v6098_v57, 0.0  ;;  %v1636_v59 = vmul.f32 1.442695, %v1626_v11  ;;  %v1638_v39 = vmul.f32 1.442695, %v1627_v14 }
 0x5b7   :  { %5078 = vpow2.f32 %v1632_v30  ;;  %v1640_v2 = vmul.f32 1.442695, %v1628_v16  ;;  %v1642_v58 = vmul.f32 1.442695, %v1629_v47  ;;  %v1644_v15 = vmul.f32 1.442695, %v1630_v8  ;;  %v5077_v28 = vpop.eup %5076 }
 0x5b8   :  { %v1423_v54 = vadd.f32 %v1422_v38, %v1421_v44  ;;  %5080 = vpow2.f32 %v1634_v26  ;;  %v1851_v0 = vrot.slane %v1850_v21, 4  ;;  %v2071_v7 = vsel %vm135_vm0, %v6075_v32, -inf  ;;  %v4739_v10 = vpop.f32.mrb[64].mxu1 }
 0x5b9   :  { %5082 = vpow2.f32 %v1636_v59  ;;  %v6105_v12 = vmul.f32 0.35355338, %v2030_v61  ;;  %v6107_v33 = vmul.f32 0.35355338, %v4736_v6  ;;  %v6109_v50 = vmul.f32 0.35355338, %v2033_v25 }
 0x5ba   :  { %v1425_v19 = vadd.f32 %v1424_v37, %v1423_v54  ;;  %5084 = vpow2.f32 %v1638_v39  ;;  %v1852_v53 = vmax.f32 %v1850_v21, %v1851_v0  ;;  %v1437_v22 = vpack.c.bf16 %v5069_v46, %v5067_v27  ;;  %v2046_v3 = vpop.f32.mrb[65].mxu1 }
 0x5bb   :  { %5086 = vpow2.f32 %v1640_v2  ;;  %v2069_v63 = vsel %vm135_vm0, %v6105_v12, -inf  ;;  %v2072_v48 = vsel %vm135_vm0, %v6107_v33, -inf  ;;  %v2070_v61 = vsel %vm135_vm0, %v6109_v50, -inf  ;;  %v4740_v34 = vpop.f32.mrb[66].mxu1 }
 0x5bc   :  { %v6117_v31 = vadd.f32 %v1426_v43, %v1425_v19  ;;  %5088 = vpow2.f32 %v1642_v58  ;;  %v1853_v55 = vrot.slane %v1852_v53, 2  ;;  %4678 = vmatpush3.bf16.msra.mxu0 %v1437_v22  ;;  %v6119_v45 = vmul.f32 0.35355338, %v4739_v10  ;;  %v2049_v27 = vpop.f32.mrb[67].mxu1 }
 0x5bd   :  { %5090 = vpow2.f32 %v1644_v15  ;;  %4679 = vmatprep.subr.bf16.mxu0 %v7382_v9  ;;  %v6122_v46 = vmul.f32 0.35355338, %v2046_v3  ;;  %v1438_v62 = vpack.c.bf16 %v5073_v24, %v6082_v60  ;;  %v6125_v6 = vmul.f32 0.35355338, %v4740_v34 }
 0x5be   :  { %v1854_v56 = vmax.f32 %v1852_v53, %v1853_v55  ;;  %v2077_v11 = vsel %vm135_vm0, %v6119_v45, -inf  ;;  %v6129_v14 = vmul.f32 0.35355338, %v2049_v27  ;;  %v1439_v16 = vpack.c.bf16 %v5077_v28, %v6098_v57 }
 0x5bf   :  { %v2078_v25 = vmax.f32 %v2071_v7, %v2077_v11  ;;  %v2073_v36 = vsel %vm135_vm0, %v6122_v46, -inf  ;;  %v2079_v38 = vsel %vm135_vm0, %v6125_v6, -inf  ;;  %v1631_v60 = vsub.f32 %v6015_v49, %v6072_v17 }
 0x5c0   :  { %v1855_v24 = vrot.slane %v1854_v56, 1  ;;  %v2074_v47 = vmax.f32 %v2069_v63, %v2073_v36  ;;  %4680 = vmatpush3.bf16.msra.mxu0 %v1438_v62  ;;  %v2080_v8 = vmax.f32 %v2072_v48, %v2079_v38  ;;  %v2075_v37 = vsel %vm135_vm0, %v6129_v14, -inf  ;;  %v4757_v30 = vpop.f32.mrb[68].mxu1  ;;  %v7408_v38 = vld [vmem:[#allocation16_spill] sm:$0xff] }
 0x5c1   :  { %v5079_v26 = vpop.eup %5078  ;;  %v2076_v57 = vmax.f32 %v2070_v61, %v2075_v37  ;;  %4681 = vmatprep.subr.bf16.mxu0 %v7382_v9  ;;  %v6141_v21 = vmul.f32 0.35355338, %v4757_v30  ;;  %v2263_v44 = vpop.f32.mrb[69].mxu1  ;;  %v6143_v43 = vmul.f32 1.442695, %v1631_v60  ;;  %v6146_v59 = vsel %vm135_vm0, %v5077_v28, 0.0 }
 0x5c2   :  { %v5081_v49 = vpop.eup %5080  ;;  %v1648_v17 = vsel %vm135_vm0, %v5079_v26, 0.0  ;;  %v6149_v39 = vmax.f32 %v1854_v56, %v1855_v24  ;;  %v2082_v2 = vmax.f32 %v2078_v25, %v2080_v8  ;;  %v6151_v58 = vmul.f32 0.35355338, %v2263_v44  ;;  %v4758_v15 = vpop.f32.mrb[70].mxu1 }
 0x5c3   :  { %v5083_v54 = vpop.eup %5082  ;;  %v1649_v0 = vsel %vm135_vm0, %v5081_v49, 0.0  ;;  %v2081_v7 = vmax.f32 %v2074_v47, %v2076_v57  ;;  %v6156_v10 = vsel %vm135_vm0, %v6141_v21, -inf  ;;  %v1669_v19 = vpack.c.bf16 %v5081_v49, %v5079_v26  ;;  %v2266_v28 = vpop.f32.mrb[71].mxu1 }
 0x5c4   :  { %v5085_v53 = vpop.eup %5084  ;;  %v1650_v22 = vadd.f32 %v1649_v0, %v1648_v17  ;;  %v1651_v3 = vsel %vm135_vm0, %v5083_v54, 0.0  ;;  %v1857_v63 = vsub.f32 %v6041_v20, %v6149_v39  ;;  %v1858_v48 = vsub.f32 %v6049_v35, %v6149_v39  ;;  %4682 = vmatpush3.bf16.msra.mxu0 %v1439_v16 }
 0x5c5   :  { %v6163_v61 = vpop.eup %5086  ;;  %v1653_v34 = vsel %vm135_vm0, %v5085_v53, 0.0  ;;  %v1859_v55 = vsub.f32 %v6039_v13, %v6149_v39  ;;  %v1860_v27 = vsub.f32 %v6043_v18, %v6149_v39  ;;  %v1861_v62 = vsub.f32 %v6051_v29, %v6149_v39  ;;  %4697 = vmatprep.subr.bf16.mxu0 %v7382_v9 }
 0x5c6   :  { %v5089_v20 = vpop.eup %5088  ;;  %v1652_v56 = vadd.f32 %v1651_v3, %v1650_v22  ;;  %v1655_v35 = vsel %vm135_vm0, %v6163_v61, 0.0  ;;  %v1862_v11 = vsub.f32 %v6061_v40, %v6149_v39  ;;  %v1863_v16 = vsub.f32 %v6047_v52, %v6149_v39 }
 0x5c7   :  { %v6179_v13 = vpop.eup %5090  ;;  %v1657_v18 = vsel %vm135_vm0, %v5089_v20, 0.0  ;;  %v1865_v25 = vmul.f32 1.442695, %v1857_v63  ;;  %v1867_v36 = vmul.f32 1.442695, %v1858_v48  ;;  %v2083_v29 = vmax.f32 %v2081_v7, %v2082_v2  ;;  %4684 = vmatmul.mubr.msk.bf16.vlgmr.msra.gmra.mrb[36].mxu0 %vm135_vm0, %v7408_v38 }
 0x5c8   :  { %v1654_v60 = vadd.f32 %v1653_v34, %v1652_v56  ;;  %v1659_v24 = vsel %vm135_vm0, %v6179_v13, 0.0  ;;  %v1869_v47 = vmul.f32 1.442695, %v1859_v55  ;;  %v1871_v8 = vmul.f32 1.442695, %v1860_v27  ;;  %4698 = vmatpush3.bf16.msra.mxu0 %v1669_v19  ;;  %v4761_v40 = vpop.f32.mrb[72].mxu1  ;;  %4705 = vmatprep.mubr.msk.bf16.mxu0 %vm5304_vm3, %v7382_v9 }
 0x5c9   :  { %5092 = vpow2.f32 %v1865_v25  ;;  %v1873_v52 = vmul.f32 1.442695, %v1861_v62  ;;  %v1875_v37 = vmul.f32 1.442695, %v1862_v11  ;;  %v1877_v30 = vmul.f32 1.442695, %v1863_v16  ;;  %4699 = vmatprep.subr.bf16.mxu0 %v7382_v9 }
 0x5ca   :  { %v1656_v26 = vadd.f32 %v1655_v35, %v1654_v60  ;;  %5094 = vpow2.f32 %v1867_v36  ;;  %v2084_v57 = vrot.slane %v2083_v29, 4  ;;  %v2302_v44 = vsel %vm135_vm0, %v6151_v58, -inf  ;;  %v2279_v49 = vpop.f32.mrb[73].mxu1 }
 0x5cb   :  { %5096 = vpow2.f32 %v1869_v47  ;;  %v6191_v17 = vmul.f32 0.35355338, %v4758_v15  ;;  %v6193_v2 = vmul.f32 0.35355338, %v2266_v28  ;;  %v1670_v0 = vpack.c.bf16 %v5085_v53, %v5083_v54  ;;  %v4762_v7 = vpop.f32.mrb[74].mxu1 }
 0x5cc   :  { %v1658_v19 = vadd.f32 %v1657_v18, %v1656_v26  ;;  %5098 = vpow2.f32 %v1871_v8  ;;  %v2085_v22 = vmax.f32 %v2083_v29, %v2084_v57  ;;  %v6195_v3 = vmul.f32 0.35355338, %v4761_v40  ;;  %v2282_v63 = vpop.f32.mrb[75].mxu1 }
 0x5cd   :  { %5100 = vpow2.f32 %v1873_v52  ;;  %v2305_v48 = vsel %vm135_vm0, %v6191_v17, -inf  ;;  %v2303_v34 = vsel %vm135_vm0, %v6193_v2, -inf  ;;  %4700 = vmatpush3.bf16.msra.mxu0 %v1670_v0  ;;  %v6201_v15 = vmul.f32 0.35355338, %v2279_v49 }
 0x5ce   :  { %v6203_v28 = vadd.f32 %v1659_v24, %v1658_v19  ;;  %5102 = vpow2.f32 %v1875_v37  ;;  %v2086_v54 = vrot.slane %v2085_v22, 2  ;;  %v2310_v53 = vsel %vm135_vm0, %v6195_v3, -inf  ;;  %4701 = vmatprep.subr.bf16.mxu0 %v7382_v9 }
 0x5cf   :  { %5104 = vpow2.f32 %v1877_v30  ;;  %v2311_v55 = vmax.f32 %v6156_v10, %v2310_v53  ;;  %v2306_v27 = vsel %vm135_vm0, %v6201_v15, -inf  ;;  %v1671_v62 = vpack.c.bf16 %v5089_v20, %v6163_v61 }
 0x5d0   :  { %7409 = vst [vmem:[#allocation9_spill] sm:$0xff] %v6203_v28  ;;  %v2087_v56 = vmax.f32 %v2085_v22, %v2086_v54  ;;  %v2307_v35 = vmax.f32 %v2302_v44, %v2306_v27  ;;  %v6212_v11 = vmul.f32 0.35355338, %v4762_v7  ;;  %v6214_v16 = vmul.f32 0.35355338, %v2282_v63  ;;  %v4779_v18 = vpop.f32.mrb[76].mxu1 }
 0x5d1   :  { %4702 = vmatpush3.bf16.msra.mxu0 %v1671_v62  ;;  %5106 = vpow2.f32 %v6143_v43  ;;  %v6217_v25 = vmul.f32 0.35355338, %v4779_v18  ;;  %v2496_v36 = vpop.f32.mrb[77].mxu1  ;;  %v6223_v29 = vadd.f32 %v6146_v59, %v6117_v31 }
 0x5d2   :  { %v2088_v61 = vrot.slane %v2087_v56, 1  ;;  %v2312_v20 = vsel %vm135_vm0, %v6212_v11, -inf  ;;  %v2308_v38 = vsel %vm135_vm0, %v6214_v16, -inf  ;;  %4703 = vmatprep.subr.bf16.mxu0 %v7382_v9  ;;  %v6230_v43 = vmul.f32 0.35355338, %v2496_v36  ;;  %v4780_v60 = vpop.f32.mrb[78].mxu1 }
 0x5d3   :  { %7410 = vst [vmem:[#allocation10_spill] sm:$0xff] %v6223_v29  ;;  %v6232_v24 = vpop.eup %5092  ;;  %v2313_v47 = vmax.f32 %v2305_v48, %v2312_v20  ;;  %v2309_v8 = vmax.f32 %v2303_v34, %v2308_v38  ;;  %v6236_v31 = vsel %vm135_vm0, %v6217_v25, -inf  ;;  %v6238_v59 = vmul.f32 0.35355338, %v4780_v60  ;;  %v2499_v40 = vpop.f32.mrb[79].mxu1 }
 0x5d4   :  { %v6240_v52 = vpop.eup %5094  ;;  %v1881_v37 = vsel %vm135_vm0, %v6232_v24, 0.0  ;;  %v6244_v30 = vmax.f32 %v2087_v56, %v2088_v61  ;;  %v6248_v26 = vsel %vm135_vm0, %v6230_v43, -inf  ;;  %v6250_v57 = vmul.f32 0.35355338, %v2499_v40 }
 0x5d5   :  { %v6252_v44 = vpop.eup %5096  ;;  %v1882_v49 = vsel %vm135_vm0, %v6240_v52, 0.0  ;;  %v2315_v0 = vmax.f32 %v2311_v55, %v2313_v47  ;;  %v2314_v7 = vmax.f32 %v2307_v35, %v2309_v8 }
 0x5d6   :  { %v6258_v22 = vpop.eup %5098  ;;  %v1883_v63 = vadd.f32 %v1882_v49, %v1881_v37  ;;  %v1884_v48 = vsel %vm135_vm0, %v6252_v44, 0.0  ;;  %v2090_v34 = vsub.f32 %v6105_v12, %v6244_v30  ;;  %v2091_v54 = vsub.f32 %v6109_v50, %v6244_v30 }
 0x5d7   :  { %v6266_v53 = vpop.eup %5100  ;;  %v1886_v55 = vsel %vm135_vm0, %v6258_v22, 0.0  ;;  %v2092_v27 = vsub.f32 %v6075_v32, %v6244_v30  ;;  %v2093_v62 = vsub.f32 %v6107_v33, %v6244_v30  ;;  %v2094_v56 = vsub.f32 %v6122_v46, %v6244_v30 }
 0x5d8   :  { %v6276_v35 = vpop.eup %5102  ;;  %v1885_v12 = vadd.f32 %v1884_v48, %v1883_v63  ;;  %v1888_v50 = vsel %vm135_vm0, %v6266_v53, 0.0  ;;  %v2095_v18 = vsub.f32 %v6129_v14, %v6244_v30  ;;  %v2096_v36 = vsub.f32 %v6119_v45, %v6244_v30  ;;  %v4783_v61 = vpop.f32.mrb[80].mxu1 }
 0x5d9   :  { %v6284_v32 = vpop.eup %5104  ;;  %v1890_v33 = vsel %vm135_vm0, %v6276_v35, 0.0  ;;  %v2098_v20 = vmul.f32 1.442695, %v2090_v34  ;;  %v2100_v46 = vmul.f32 1.442695, %v2091_v54  ;;  %v2316_v38 = vmax.f32 %v2314_v7, %v2315_v0  ;;  %v2512_v60 = vpop.f32.mrb[81].mxu1 }
 0x5da   :  { %v1887_v47 = vadd.f32 %v1886_v55, %v1885_v12  ;;  %v1892_v8 = vsel %vm135_vm0, %v6284_v32, 0.0  ;;  %v2102_v40 = vmul.f32 1.442695, %v2092_v27  ;;  %v2104_v37 = vmul.f32 1.442695, %v2093_v62  ;;  %v4784_v14 = vpop.f32.mrb[82].mxu1 }
 0x5db   :  { %v6290_v49 = vpop.eup %5106  ;;  %5108 = vpow2.f32 %v2098_v20  ;;  %v2106_v45 = vmul.f32 1.442695, %v2094_v56  ;;  %v2108_v63 = vmul.f32 1.442695, %v2095_v18  ;;  %v2110_v48 = vmul.f32 1.442695, %v2096_v36 }
 0x5dc   :  { %7411 = vst [vmem:[#allocation7_spill] sm:$0xff] %v6290_v49  ;;  %v1889_v10 = vadd.f32 %v1888_v50, %v1887_v47  ;;  %5110 = vpow2.f32 %v2100_v46  ;;  %v2317_v19 = vrot.slane %v2316_v38, 4  ;;  %v1672_v0 = vpack.c.bf16 %v6290_v49, %v6179_v13  ;;  %v2515_v7 = vpop.f32.mrb[83].mxu1 }
 0x5dd   :  { %5112 = vpow2.f32 %v2102_v40  ;;  %v2538_v34 = vsel %vm135_vm0, %v6238_v59, -inf  ;;  %v2536_v54 = vsel %vm135_vm0, %v6250_v57, -inf  ;;  %v1903_v55 = vpack.c.bf16 %v6258_v22, %v6252_v44 }
 0x5de   :  { %v1891_v27 = vadd.f32 %v1890_v33, %v1889_v10  ;;  %5114 = vpow2.f32 %v2104_v37  ;;  %v2318_v62 = vmax.f32 %v2316_v38, %v2317_v19  ;;  %4704 = vmatpush3.bf16.msra.mxu0 %v1672_v0  ;;  %v6300_v56 = vmul.f32 0.35355338, %v4783_v61 }
 0x5df   :  { %5116 = vpow2.f32 %v2106_v45  ;;  %4719 = vmatprep.subr.bf16.mxu0 %v7382_v9  ;;  %v6303_v13 = vmul.f32 0.35355338, %v2512_v60  ;;  %v1904_v12 = vpack.c.bf16 %v6276_v35, %v6266_v53  ;;  %v6307_v50 = vmul.f32 0.35355338, %v4784_v14 }
 0x5e0   :  { %v6309_v18 = vadd.f32 %v1892_v8, %v1891_v27  ;;  %5118 = vpow2.f32 %v2108_v63  ;;  %v2319_v44 = vrot.slane %v2318_v62, 2  ;;  %v2543_v10 = vsel %vm135_vm0, %v6300_v56, -inf  ;;  %v4801_v19 = vpop.f32.mrb[84].mxu1 }
 0x5e1   :  { %5120 = vpow2.f32 %v2110_v48  ;;  %4706 = vmatmul.mubr.msk.bf16.vlgmr.msra.gmra.mrb[40].mxu0 %vm135_vm0, %v5834_v42  ;;  %v2544_v22 = vmax.f32 %v6236_v31, %v2543_v10  ;;  %v2539_v36 = vsel %vm135_vm0, %v6303_v13, -inf  ;;  %v2545_v61 = vsel %vm135_vm0, %v6307_v50, -inf  ;;  %v2729_v33 = vpop.f32.mrb[85].mxu1 }
 0x5e2   :  { %7412 = vst [vmem:[#allocation11_spill] sm:$0xff] %v6309_v18  ;;  %v2320_v20 = vmax.f32 %v2318_v62, %v2319_v44  ;;  %v7413_v46 = vpack.c.bf16 %v6240_v52, %v6232_v24  ;;  %v2540_v38 = vmax.f32 %v6248_v26, %v2539_v36  ;;  %v2546_v60 = vmax.f32 %v2538_v34, %v2545_v61  ;;  %v4802_v42 = vpop.f32.mrb[86].mxu1 }
 0x5e3   :  { %v6324_v47 = vmul.f32 0.35355338, %v2515_v7  ;;  %4727 = vmatprep.mubr.msk.bf16.mxu0 %vm5304_vm3, %v7382_v9  ;;  %v7414_v31 = vsub.f32 %v6057_v51, %v6149_v39  ;;  %v6332_v40 = vmul.f32 0.35355338, %v4801_v19  ;;  %v6334_v37 = vmul.f32 0.35355338, %v2729_v33 }
 0x5e4   :  { %4720 = vmatpush3.bf16.msra.mxu0 %v7413_v46  ;;  %v2097_v24 = vsub.f32 %v6125_v6, %v6244_v30  ;;  %v2321_v52 = vrot.slane %v2320_v20, 1  ;;  %v2548_v26 = vmax.f32 %v2544_v22, %v2546_v60  ;;  %v6340_v45 = vmul.f32 0.35355338, %v4802_v42  ;;  %v2732_v63 = vpop.f32.mrb[87].mxu1 }
 0x5e5   :  { %4721 = vmatprep.subr.bf16.mxu0 %v7382_v9  ;;  %v1879_v8 = vmul.f32 1.442695, %v7414_v31  ;;  %v2541_v14 = vsel %vm135_vm0, %v6324_v47, -inf  ;;  %v6342_v48 = vpop.eup %5108  ;;  %v6346_v51 = vsel %vm135_vm0, %v6332_v40, -inf  ;;  %v6350_v39 = vsel %vm135_vm0, %v6334_v37, -inf }
 0x5e6   :  { %v2542_v0 = vmax.f32 %v2536_v54, %v2541_v14  ;;  %v6352_v6 = vpop.eup %5110  ;;  %v2114_v30 = vsel %vm135_vm0, %v6342_v48, 0.0  ;;  %v6356_v7 = vmax.f32 %v2320_v20, %v2321_v52  ;;  %v6360_v34 = vsel %vm135_vm0, %v6340_v45, -inf }
 0x5e7   :  { %5122 = vpow2.f32 %v1879_v8  ;;  %v6362_v54 = vmul.f32 0.35355338, %v2732_v63  ;;  %v6364_v27 = vpop.eup %5112  ;;  %v2115_v62 = vsel %vm135_vm0, %v6352_v6, 0.0  ;;  %v6371_v19 = vmul.f32 1.442695, %v2097_v24 }
 0x5e8   :  { %4722 = vmatpush3.bf16.msra.mxu0 %v1903_v55  ;;  %v2547_v44 = vmax.f32 %v2540_v38, %v2542_v0  ;;  %v6373_v55 = vpop.eup %5114  ;;  %v2116_v22 = vadd.f32 %v2115_v62, %v2114_v30  ;;  %v2117_v36 = vsel %vm135_vm0, %v6364_v27, 0.0  ;;  %v2323_v61 = vsub.f32 %v6151_v58, %v6356_v7  ;;  %v4805_v20 = vpop.f32.mrb[88].mxu1 }
 0x5e9   :  { %4723 = vmatprep.subr.bf16.mxu0 %v7382_v9  ;;  %v2324_v33 = vsub.f32 %v6193_v2, %v6356_v7  ;;  %v6381_v46 = vpop.eup %5116  ;;  %v2119_v38 = vsel %vm135_vm0, %v6373_v55, 0.0  ;;  %v2325_v60 = vsub.f32 %v6141_v21, %v6356_v7  ;;  %v2326_v42 = vsub.f32 %v6191_v17, %v6356_v7  ;;  %v2745_v8 = vpop.f32.mrb[89].mxu1 }
 0x5ea   :  { %v2327_v31 = vsub.f32 %v6201_v15, %v6356_v7  ;;  %v6391_v58 = vpop.eup %5118  ;;  %v2118_v24 = vadd.f32 %v2117_v36, %v2116_v22  ;;  %v2121_v2 = vsel %vm135_vm0, %v6381_v46, 0.0  ;;  %v2328_v52 = vsub.f32 %v6214_v16, %v6356_v7  ;;  %v4806_v21 = vpop.f32.mrb[90].mxu1 }
 0x5eb   :  { %v2329_v14 = vsub.f32 %v6195_v3, %v6356_v7  ;;  %v6402_v17 = vpop.eup %5120  ;;  %v2123_v15 = vsel %vm135_vm0, %v6391_v58, 0.0  ;;  %v2331_v63 = vmul.f32 1.442695, %v2323_v61  ;;  %v2333_v0 = vmul.f32 1.442695, %v2324_v33  ;;  %v2748_v62 = vpop.f32.mrb[91].mxu1 }
 0x5ec   :  { %4724 = vmatpush3.bf16.msra.mxu0 %v1904_v12  ;;  %v2549_v30 = vmax.f32 %v2547_v44, %v2548_v26  ;;  %v2120_v16 = vadd.f32 %v2119_v38, %v2118_v24  ;;  %v2125_v3 = vsel %vm135_vm0, %v6402_v17, 0.0  ;;  %v2335_v22 = vmul.f32 1.442695, %v2325_v60 }
 0x5ed   :  { %4725 = vmatprep.subr.bf16.mxu0 %v7382_v9  ;;  %v2337_v36 = vmul.f32 1.442695, %v2326_v42  ;;  %5124 = vpow2.f32 %v2331_v63  ;;  %v2339_v53 = vmul.f32 1.442695, %v2327_v31  ;;  %v2341_v35 = vmul.f32 1.442695, %v2328_v52 }
 0x5ee   :  { %v2343_v12 = vmul.f32 1.442695, %v2329_v14  ;;  %v2122_v10 = vadd.f32 %v2121_v2, %v2120_v16  ;;  %5126 = vpow2.f32 %v2333_v0  ;;  %v2550_v18 = vrot.slane %v2549_v30, 4 }
 0x5ef   :  { %v2769_v61 = vsel %vm135_vm0, %v6362_v54, -inf  ;;  %5128 = vpow2.f32 %v2335_v22  ;;  %v2136_v44 = vpack.c.bf16 %v6373_v55, %v6364_v27  ;;  %v6415_v33 = vmul.f32 0.35355338, %v4805_v20 }
 0x5f0   :  { %v6417_v38 = vmul.f32 0.35355338, %v2745_v8  ;;  %v2124_v60 = vadd.f32 %v2123_v15, %v2122_v10  ;;  %5130 = vpow2.f32 %v2337_v36  ;;  %v2551_v42 = vmax.f32 %v2549_v30, %v2550_v18  ;;  %v4823_v24 = vpop.f32.mrb[92].mxu1  ;;  %v7417_v36 = vld [vmem:[#allocation17_spill] sm:$0xff] }
 0x5f1   :  { %v6411_v26 = vpop.eup %5122  ;;  %5132 = vpow2.f32 %v2339_v53  ;;  %v2776_v2 = vsel %vm135_vm0, %v6415_v33, -inf  ;;  %v2962_v14 = vpop.f32.mrb[93].mxu1  ;;  %v6432_v63 = vmul.f32 0.35355338, %v4806_v21  ;;  %v6434_v0 = vmul.f32 0.35355338, %v2748_v62 }
 0x5f2   :  { %7415 = vst [vmem:[#allocation23_spill] sm:$0xff] %v6411_v26  ;;  %v1905_v31 = vpack.c.bf16 %v6411_v26, %v6284_v32  ;;  %v2772_v52 = vsel %vm135_vm0, %v6417_v38, -inf  ;;  %v6427_v8 = vadd.f32 %v2125_v3, %v2124_v60  ;;  %5134 = vpow2.f32 %v2341_v35  ;;  %v4824_v32 = vpop.f32.mrb[94].mxu1 }
 0x5f3   :  { %v2552_v10 = vrot.slane %v2551_v42, 2  ;;  %v2777_v18 = vmax.f32 %v6346_v51, %v2776_v2  ;;  %5136 = vpow2.f32 %v2343_v12  ;;  %v2773_v15 = vmax.f32 %v6350_v39, %v2772_v52  ;;  %v2965_v30 = vpop.f32.mrb[95].mxu1 }
 0x5f4   :  { %7416 = vst [vmem:[#allocation24_spill] sm:$0xff] %v6427_v8  ;;  %4726 = vmatpush3.bf16.msra.mxu0 %v1905_v31  ;;  %5138 = vpow2.f32 %v6371_v19  ;;  %v6437_v3 = vmul.f32 0.35355338, %v4823_v24  ;;  %v6439_v22 = vmul.f32 0.35355338, %v2962_v14  ;;  %v2778_v51 = vsel %vm135_vm0, %v6432_v63, -inf }
 0x5f5   :  { %4741 = vmatprep.subr.bf16.mxu0 %v7382_v9  ;;  %v2553_v16 = vmax.f32 %v2551_v42, %v2552_v10  ;;  %v2774_v39 = vsel %vm135_vm0, %v6434_v0, -inf  ;;  %v6447_v21 = vmul.f32 0.35355338, %v4824_v32  ;;  %v6449_v62 = vmul.f32 0.35355338, %v2965_v30 }
 0x5f6   :  { %v7418_v19 = vpack.c.bf16 %v6352_v6, %v6342_v48  ;;  %v2779_v35 = vmax.f32 %v6360_v34, %v2778_v51  ;;  %v2775_v12 = vmax.f32 %v2769_v61, %v2774_v39  ;;  %v6459_v60 = vsel %vm135_vm0, %v6437_v3, -inf }
 0x5f7   :  { %4728 = vmatmul.mubr.msk.bf16.vlgmr.msra.gmra.mrb[44].mxu0 %vm135_vm0, %v7417_v36  ;;  %v2554_v53 = vrot.slane %v2553_v16, 1  ;;  %v6461_v42 = vpop.eup %5124  ;;  %v6466_v31 = vsel %vm135_vm0, %v6439_v22, -inf  ;;  %v6470_v48 = vsel %vm135_vm0, %v6447_v21, -inf  ;;  %v6474_v6 = vsel %vm135_vm0, %v6449_v62, -inf }
 0x5f8   :  { %4742 = vmatpush3.bf16.msra.mxu0 %v7418_v19  ;;  %4749 = vmatprep.mubr.msk.bf16.mxu0 %vm5304_vm3, %v7382_v9  ;;  %v2330_v34 = vsub.f32 %v6212_v11, %v6356_v7  ;;  %v6478_v61 = vpop.eup %5126  ;;  %v2347_v24 = vsel %vm135_vm0, %v6461_v42, 0.0  ;;  %v2781_v52 = vmax.f32 %v2777_v18, %v2779_v35  ;;  %v2780_v14 = vmax.f32 %v2773_v15, %v2775_v12  ;;  %v4827_v10 = vpop.f32.mrb[96].mxu1 }
 0x5f9   :  { %4743 = vmatprep.subr.bf16.mxu0 %v7382_v9  ;;  %v6482_v2 = vmax.f32 %v2553_v16, %v2554_v53  ;;  %v6484_v32 = vpop.eup %5128  ;;  %v2348_v30 = vsel %vm135_vm0, %v6478_v61, 0.0  ;;  %v6490_v51 = vmul.f32 0.35355338, %v4827_v10  ;;  %v2978_v11 = vpop.f32.mrb[97].mxu1 }
 0x5fa   :  { %v6492_v7 = vmul.f32 1.442695, %v2330_v34  ;;  %v6494_v39 = vpop.eup %5130  ;;  %v2349_v16 = vadd.f32 %v2348_v30, %v2347_v24  ;;  %v2350_v18 = vsel %vm135_vm0, %v6484_v32, 0.0  ;;  %v4828_v19 = vpop.f32.mrb[98].mxu1  ;;  %v2782_v20 = vmax.f32 %v2780_v14, %v2781_v52 }
 0x5fb   :  { %v2556_v15 = vsub.f32 %v6230_v43, %v6482_v2  ;;  %v2557_v53 = vsub.f32 %v6250_v57, %v6482_v2  ;;  %v6505_v35 = vpop.eup %5132  ;;  %v2352_v12 = vsel %vm135_vm0, %v6494_v39, 0.0  ;;  %v2558_v34 = vsub.f32 %v6217_v25, %v6482_v2  ;;  %v2981_v57 = vpop.f32.mrb[99].mxu1 }
 0x5fc   :  { %4744 = vmatpush3.bf16.msra.mxu0 %v2136_v44  ;;  %v2559_v24 = vsub.f32 %v6238_v59, %v6482_v2  ;;  %v2560_v43 = vsub.f32 %v6303_v13, %v6482_v2  ;;  %v6516_v27 = vpop.eup %5134  ;;  %v2351_v55 = vadd.f32 %v2350_v18, %v2349_v16  ;;  %v2354_v44 = vsel %vm135_vm0, %v6505_v35, 0.0 }
 0x5fd   :  { %4745 = vmatprep.subr.bf16.mxu0 %v7382_v9  ;;  %v2561_v10 = vsub.f32 %v6324_v47, %v6482_v2  ;;  %v2562_v25 = vsub.f32 %v6300_v56, %v6482_v2  ;;  %v6524_v30 = vpop.eup %5136  ;;  %v2356_v59 = vsel %vm135_vm0, %v6516_v27, 0.0  ;;  %v2564_v13 = vmul.f32 1.442695, %v2556_v15 }
 0x5fe   :  { %v2566_v36 = vmul.f32 1.442695, %v2557_v53  ;;  %v6528_v8 = vpop.eup %5138  ;;  %v2353_v16 = vadd.f32 %v2352_v12, %v2351_v55  ;;  %v2358_v18 = vsel %vm135_vm0, %v6524_v30, 0.0  ;;  %v2568_v26 = vmul.f32 1.442695, %v2558_v34 }
 0x5ff   :  { %7419 = vst [vmem:[#allocation25_spill] sm:$0xff] %v6528_v8  ;;  %v2570_v23 = vmul.f32 1.442695, %v2559_v24  ;;  %v7420_v47 = vpack.c.bf16 %v6391_v58, %v6381_v46  ;;  %5140 = vpow2.f32 %v2564_v13  ;;  %v2572_v56 = vmul.f32 1.442695, %v2560_v43 }
 0x600   :  { %v2574_v28 = vmul.f32 1.442695, %v2561_v10  ;;  %v2576_v49 = vmul.f32 1.442695, %v2562_v25  ;;  %v2355_v15 = vadd.f32 %v2354_v44, %v2353_v16  ;;  %5142 = vpow2.f32 %v2566_v36  ;;  %v4845_v53 = vpop.f32.mrb[100].mxu1 }
 0x601   :  { %4746 = vmatpush3.bf16.msra.mxu0 %v7420_v47  ;;  %v2783_v52 = vrot.slane %v2782_v20, 4  ;;  %v2138_v14 = vpack.c.bf16 %v6528_v8, %v6402_v17  ;;  %5144 = vpow2.f32 %v2568_v26  ;;  %v2369_v12 = vpack.c.bf16 %v6494_v39, %v6484_v32  ;;  %v3195_v34 = vpop.f32.mrb[101].mxu1 }
 0x602   :  { %4747 = vmatprep.subr.bf16.mxu0 %v7382_v9  ;;  %v3009_v46 = vsel %vm135_vm0, %v6490_v51, -inf  ;;  %v6542_v58 = vmul.f32 0.35355338, %v2978_v11  ;;  %v2357_v24 = vadd.f32 %v2356_v59, %v2355_v15  ;;  %5146 = vpow2.f32 %v2570_v23  ;;  %v4846_v55 = vpop.f32.mrb[102].mxu1 }
 0x603   :  { %v2784_v43 = vmax.f32 %v2782_v20, %v2783_v52  ;;  %v3010_v36 = vmax.f32 %v6459_v60, %v3009_v46  ;;  %5148 = vpow2.f32 %v2572_v56  ;;  %v2370_v26 = vpack.c.bf16 %v6516_v27, %v6505_v35  ;;  %v3198_v11 = vpop.f32.mrb[103].mxu1 }
 0x604   :  { %v3005_v17 = vsel %vm135_vm0, %v6542_v58, -inf  ;;  %v6550_v32 = vmul.f32 0.35355338, %v4828_v19  ;;  %v6552_v39 = vadd.f32 %v2358_v18, %v2357_v24  ;;  %5150 = vpow2.f32 %v2574_v28 }
 0x605   :  { %4748 = vmatpush3.bf16.msra.mxu0 %v2138_v14  ;;  %v2785_v23 = vrot.slane %v2784_v43, 2  ;;  %v3006_v20 = vmax.f32 %v6466_v31, %v3005_v17  ;;  %5152 = vpow2.f32 %v2576_v49  ;;  %v6559_v44 = vmul.f32 0.35355338, %v2981_v57 }
 0x606   :  { %4763 = vmatprep.subr.bf16.mxu0 %v7382_v9  ;;  %7421 = vst [vmem:[#allocation22_spill] sm:$0xff] %v6552_v39  ;;  %v3011_v60 = vsel %vm135_vm0, %v6550_v32, -inf  ;;  %v6561_v10 = vmul.f32 0.35355338, %v4845_v53  ;;  %v7422_v25 = vpack.c.bf16 %v6478_v61, %v6461_v42  ;;  %5154 = vpow2.f32 %v6492_v7 }
 0x607   :  { %v2786_v19 = vmax.f32 %v2784_v43, %v2785_v23  ;;  %v3012_v28 = vmax.f32 %v6470_v48, %v3011_v60  ;;  %v3007_v49 = vsel %vm135_vm0, %v6559_v44, -inf  ;;  %v6579_v42 = vmul.f32 0.35355338, %v4846_v55 }
 0x608   :  { %4750 = vmatmul.mubr.msk.bf16.vlgmr.msra.gmra.mrb[48].mxu0 %vm135_vm0, %v5838_v1  ;;  %v6570_v1 = vmul.f32 0.35355338, %v3195_v34  ;;  %v6577_v31 = vsel %vm135_vm0, %v6561_v10, -inf  ;;  %v6581_v61 = vmul.f32 0.35355338, %v3198_v11  ;;  %v3008_v57 = vmax.f32 %v6474_v6, %v3007_v49  ;;  %v4849_v13 = vpop.f32.mrb[104].mxu1 }
 0x609   :  { %4764 = vmatpush3.bf16.msra.mxu0 %v7422_v25  ;;  %4771 = vmatprep.mubr.msk.bf16.mxu0 %vm5304_vm3, %v7382_v9  ;;  %v2787_v48 = vrot.slane %v2786_v19, 1  ;;  %v3014_v7 = vmax.f32 %v3010_v36, %v3012_v28  ;;  %v6588_v16 = vpop.eup %5140  ;;  %v6592_v18 = vsel %vm135_vm0, %v6579_v42, -inf  ;;  %v6598_v56 = vmul.f32 0.35355338, %v4849_v13  ;;  %v3211_v15 = vpop.f32.mrb[105].mxu1 }
 0x60a   :  { %4765 = vmatprep.subr.bf16.mxu0 %v7382_v9  ;;  %v6586_v59 = vsel %vm135_vm0, %v6570_v1, -inf  ;;  %v6596_v47 = vsel %vm135_vm0, %v6581_v61, -inf  ;;  %v6602_v52 = vpop.eup %5142  ;;  %v2580_v14 = vsel %vm135_vm0, %v6588_v16, 0.0  ;;  %v3013_v46 = vmax.f32 %v3006_v20, %v3008_v57  ;;  %v4850_v24 = vpop.f32.mrb[106].mxu1 }
 0x60b   :  { %v6606_v53 = vmax.f32 %v2786_v19, %v2787_v48  ;;  %v6608_v34 = vmul.f32 0.35355338, %v3211_v15  ;;  %v6610_v43 = vpop.eup %5144  ;;  %v2581_v36 = vsel %vm135_vm0, %v6602_v52, 0.0  ;;  %v6619_v17 = vsel %vm135_vm0, %v6598_v56, -inf }
 0x60c   :  { %v6621_v11 = vmul.f32 0.35355338, %v4850_v24  ;;  %v6623_v23 = vpop.eup %5146  ;;  %v2582_v20 = vadd.f32 %v2581_v36, %v2580_v14  ;;  %v2583_v60 = vsel %vm135_vm0, %v6610_v43, 0.0 }
 0x60d   :  { %4766 = vmatpush3.bf16.msra.mxu0 %v2369_v12  ;;  %v3214_v12 = vpop.f32.mrb[107].mxu1  ;;  %v2789_v19 = vsub.f32 %v6334_v37, %v6606_v53  ;;  %v2790_v25 = vsub.f32 %v6362_v54, %v6606_v53  ;;  %v6631_v28 = vpop.eup %5148  ;;  %v2585_v49 = vsel %vm135_vm0, %v6623_v23, 0.0  ;;  %v2791_v48 = vsub.f32 %v6332_v40, %v6606_v53 }
 0x60e   :  { %4767 = vmatprep.subr.bf16.mxu0 %v7382_v9  ;;  %v2792_v57 = vsub.f32 %v6340_v45, %v6606_v53  ;;  %v2793_v13 = vsub.f32 %v6417_v38, %v6606_v53  ;;  %v6641_v15 = vpop.eup %5150  ;;  %v2584_v37 = vadd.f32 %v2583_v60, %v2582_v20  ;;  %v2587_v54 = vsel %vm135_vm0, %v6631_v28, 0.0 }
 0x60f   :  { %v2794_v14 = vsub.f32 %v6434_v0, %v6606_v53  ;;  %v2795_v24 = vsub.f32 %v6415_v33, %v6606_v53  ;;  %v6652_v40 = vpop.eup %5152  ;;  %v2589_v45 = vsel %vm135_vm0, %v6641_v15, 0.0  ;;  %v2797_v38 = vmul.f32 1.442695, %v2789_v19 }
 0x610   :  { %v2799_v36 = vmul.f32 1.442695, %v2790_v25  ;;  %v3015_v20 = vmax.f32 %v3013_v46, %v3014_v7  ;;  %v6657_v60 = vpop.eup %5154  ;;  %v2586_v0 = vadd.f32 %v2585_v49, %v2584_v37  ;;  %v2591_v33 = vsel %vm135_vm0, %v6652_v40, 0.0  ;;  %v4867_v35 = vpop.f32.mrb[108].mxu1 }
 0x611   :  { %4768 = vmatpush3.bf16.msra.mxu0 %v2370_v26  ;;  %7423 = vst [vmem:[#allocation26_spill] sm:$0xff] %v6657_v60  ;;  %v2801_v55 = vmul.f32 1.442695, %v2791_v48  ;;  %v2803_v6 = vmul.f32 1.442695, %v2792_v57  ;;  %5156 = vpow2.f32 %v2797_v38  ;;  %v2371_v7 = vpack.c.bf16 %v6657_v60, %v6524_v30  ;;  %v3428_v46 = vpop.f32.mrb[109].mxu1 }
 0x612   :  { %4769 = vmatprep.subr.bf16.mxu0 %v7382_v9  ;;  %v2805_v27 = vmul.f32 1.442695, %v2793_v13  ;;  %v2807_v26 = vmul.f32 1.442695, %v2794_v14  ;;  %v2809_v39 = vmul.f32 1.442695, %v2795_v24  ;;  %v2588_v8 = vadd.f32 %v2587_v54, %v2586_v0 }
 0x613   :  { %5158 = vpow2.f32 %v2799_v36  ;;  %v3016_v19 = vrot.slane %v3015_v20, 4  ;;  %v2602_v25 = vpack.c.bf16 %v6623_v23, %v6610_v43  ;;  %v3243_v49 = vmax.f32 %v6577_v31, %v6619_v17  ;;  %v4868_v57 = vpop.f32.mrb[110].mxu1 }
 0x614   :  { %5160 = vpow2.f32 %v2801_v55  ;;  %v3238_v48 = vsel %vm135_vm0, %v6608_v34, -inf  ;;  %v2590_v13 = vadd.f32 %v2589_v45, %v2588_v8  ;;  %v3431_v14 = vpop.f32.mrb[111].mxu1  ;;  %v2603_v30 = vpack.c.bf16 %v6641_v15, %v6631_v28 }
 0x615   :  { %5162 = vpow2.f32 %v2803_v6  ;;  %v3017_v37 = vmax.f32 %v3015_v20, %v3016_v19  ;;  %4770 = vmatpush3.bf16.msra.mxu0 %v2371_v7  ;;  %v3239_v54 = vmax.f32 %v6586_v59, %v3238_v48  ;;  %v3244_v31 = vsel %vm135_vm0, %v6621_v11, -inf  ;;  %v7424_v59 = vld [vmem:[#allocation30_spill] sm:$0xff] }
 0x616   :  { %5164 = vpow2.f32 %v2805_v27  ;;  %4785 = vmatprep.subr.bf16.mxu0 %v7382_v9  ;;  %v6675_v43 = vmul.f32 0.35355338, %v3214_v12  ;;  %v6677_v55 = vadd.f32 %v2591_v33, %v2590_v13  ;;  %v3245_v6 = vmax.f32 %v6592_v18, %v3244_v31 }
 0x617   :  { %5166 = vpow2.f32 %v2807_v26  ;;  %v3018_v8 = vrot.slane %v3017_v37, 2  ;;  %v7425_v23 = vsub.f32 %v6307_v50, %v6482_v2  ;;  %v6687_v45 = vmul.f32 0.35355338, %v4867_v35 }
 0x618   :  { %5168 = vpow2.f32 %v2809_v39  ;;  %4772 = vmatmul.mubr.msk.bf16.vlgmr.msra.gmra.mrb[52].mxu0 %vm135_vm0, %v7424_v59  ;;  %v3240_v17 = vsel %vm135_vm0, %v6675_v43, -inf  ;;  %v7426_v38 = vpack.c.bf16 %v6602_v52, %v6588_v16  ;;  %v3247_v36 = vmax.f32 %v3243_v49, %v3245_v6  ;;  %v4871_v20 = vpop.f32.mrb[112].mxu1 }
 0x619   :  { %v2578_v24 = vmul.f32 1.442695, %v7425_v23  ;;  %v3019_v12 = vmax.f32 %v3017_v37, %v3018_v8  ;;  %v3241_v39 = vmax.f32 %v6596_v47, %v3240_v17  ;;  %4793 = vmatprep.mubr.msk.bf16.mxu0 %vm5304_vm3, %v7382_v9  ;;  %v6695_v18 = vmul.f32 0.35355338, %v3428_v46  ;;  %v3444_v52 = vpop.f32.mrb[113].mxu1 }
 0x61a   :  { %4786 = vmatpush3.bf16.msra.mxu0 %v7426_v38  ;;  %v6700_v50 = vsel %vm135_vm0, %v6687_v45, -inf  ;;  %v6702_v2 = vmul.f32 0.35355338, %v4868_v57  ;;  %v6704_v16 = vmul.f32 0.35355338, %v3431_v14  ;;  %v4872_v27 = vpop.f32.mrb[114].mxu1 }
 0x61b   :  { %4787 = vmatprep.subr.bf16.mxu0 %v7382_v9  ;;  %5170 = vpow2.f32 %v2578_v24  ;;  %v3020_v0 = vrot.slane %v3019_v12, 1  ;;  %v3246_v47 = vmax.f32 %v3239_v54, %v3241_v39  ;;  %v6708_v33 = vsel %vm135_vm0, %v6695_v18, -inf  ;;  %v6712_v26 = vpop.eup %5156  ;;  %v3447_v14 = vpop.f32.mrb[115].mxu1 }
 0x61c   :  { %v6710_v35 = vmul.f32 0.35355338, %v4871_v20  ;;  %v6716_v19 = vsel %vm135_vm0, %v6702_v2, -inf  ;;  %v6720_v7 = vsel %vm135_vm0, %v6704_v16, -inf  ;;  %v6722_v46 = vmul.f32 0.35355338, %v3444_v52 }
 0x61d   :  { %v6724_v49 = vmul.f32 0.35355338, %v4872_v27  ;;  %v6726_v48 = vpop.eup %5158  ;;  %v2813_v57 = vsel %vm135_vm0, %v6712_v26, 0.0  ;;  %v6730_v13 = vmax.f32 %v3019_v12, %v3020_v0  ;;  %v3248_v37 = vmax.f32 %v3246_v47, %v3247_v36 }
 0x61e   :  { %4788 = vmatpush3.bf16.msra.mxu0 %v2602_v25  ;;  %v6734_v54 = vsel %vm135_vm0, %v6710_v35, -inf  ;;  %v6736_v31 = vpop.eup %5160  ;;  %v2814_v8 = vsel %vm135_vm0, %v6726_v48, 0.0  ;;  %v6747_v25 = vsel %vm135_vm0, %v6722_v46, -inf }
 0x61f   :  { %4789 = vmatprep.subr.bf16.mxu0 %v7382_v9  ;;  %v3476_v59 = vmax.f32 %v6700_v50, %v6734_v54  ;;  %v6749_v17 = vpop.eup %5162  ;;  %v2815_v23 = vadd.f32 %v2814_v8, %v2813_v57  ;;  %v2816_v24 = vsel %vm135_vm0, %v6736_v31, 0.0  ;;  %v3022_v12 = vsub.f32 %v6439_v22, %v6730_v13 }
 0x620   :  { %v3023_v38 = vsub.f32 %v6449_v62, %v6730_v13  ;;  %v6757_v36 = vpop.eup %5164  ;;  %v2818_v39 = vsel %vm135_vm0, %v6749_v17, 0.0  ;;  %v3024_v20 = vsub.f32 %v6437_v3, %v6730_v13  ;;  %v3025_v50 = vsub.f32 %v6447_v21, %v6730_v13  ;;  %v4889_v3 = vpop.f32.mrb[116].mxu1 }
 0x621   :  { %v3026_v52 = vsub.f32 %v6542_v58, %v6730_v13  ;;  %v6767_v0 = vpop.eup %5166  ;;  %v2817_v22 = vadd.f32 %v2816_v24, %v2815_v23  ;;  %v2820_v62 = vsel %vm135_vm0, %v6757_v36, 0.0  ;;  %v3027_v47 = vsub.f32 %v6559_v44, %v6730_v13  ;;  %v3661_v6 = vpop.f32.mrb[117].mxu1 }
 0x622   :  { %v3028_v27 = vsub.f32 %v6490_v51, %v6730_v13  ;;  %4790 = vmatpush3.bf16.msra.mxu0 %v2603_v30  ;;  %v6778_v21 = vpop.eup %5168  ;;  %v2822_v58 = vsel %vm135_vm0, %v6767_v0, 0.0  ;;  %v3030_v57 = vmul.f32 1.442695, %v3022_v12  ;;  %v3032_v54 = vmul.f32 1.442695, %v3023_v38  ;;  %v4890_v5 = vpop.f32.mrb[118].mxu1 }
 0x623   :  { %v3249_v8 = vrot.slane %v3248_v37, 4  ;;  %4791 = vmatprep.subr.bf16.mxu0 %v7382_v9  ;;  %v2819_v23 = vadd.f32 %v2818_v39, %v2817_v22  ;;  %v2824_v44 = vsel %vm135_vm0, %v6778_v21, 0.0  ;;  %v3034_v51 = vmul.f32 1.442695, %v3024_v20 }
 0x624   :  { %v3036_v24 = vmul.f32 1.442695, %v3025_v50  ;;  %5172 = vpow2.f32 %v3030_v57  ;;  %v3038_v15 = vmul.f32 1.442695, %v3026_v52  ;;  %v3040_v30 = vmul.f32 1.442695, %v3027_v47 }
 0x625   :  { %v6785_v28 = vpop.eup %5170  ;;  %v3042_v60 = vmul.f32 1.442695, %v3028_v27  ;;  %v2821_v29 = vadd.f32 %v2820_v62, %v2819_v23  ;;  %5174 = vpow2.f32 %v3032_v54  ;;  %v3250_v12 = vmax.f32 %v3248_v37, %v3249_v8  ;;  %v3664_v52 = vpop.f32.mrb[119].mxu1 }
 0x626   :  { %v2604_v38 = vpack.c.bf16 %v6785_v28, %v6652_v40  ;;  %5176 = vpow2.f32 %v3034_v51  ;;  %v2835_v39 = vpack.c.bf16 %v6749_v17, %v6736_v31  ;;  %v3472_v20 = vmax.f32 %v6708_v33, %v6747_v25 }
 0x627   :  { %v2836_v50 = vpack.c.bf16 %v6767_v0, %v6757_v36  ;;  %v2823_v22 = vadd.f32 %v2822_v58, %v2821_v29  ;;  %5178 = vpow2.f32 %v3036_v24  ;;  %v3251_v62 = vrot.slane %v3250_v12, 2 }
 0x628   :  { %4792 = vmatpush3.bf16.msra.mxu0 %v2604_v38  ;;  %v3477_v37 = vsel %vm135_vm0, %v6724_v49, -inf  ;;  %5180 = vpow2.f32 %v3038_v15  ;;  %v6799_v31 = vmul.f32 0.35355338, %v3447_v14  ;;  %v2796_v33 = vsub.f32 %v6432_v63, %v6606_v53  ;;  %v4893_v47 = vpop.f32.mrb[120].mxu1 }
 0x629   :  { %4807 = vmatprep.subr.bf16.mxu0 %v7382_v9  ;;  %v3478_v40 = vmax.f32 %v6716_v19, %v3477_v37  ;;  %v6803_v25 = vadd.f32 %v2824_v44, %v2823_v22  ;;  %5182 = vpow2.f32 %v3040_v30  ;;  %v3252_v29 = vmax.f32 %v3250_v12, %v3251_v62  ;;  %v3677_v58 = vpop.f32.mrb[121].mxu1 }
 0x62a   :  { %v6805_v17 = vmul.f32 0.35355338, %v4889_v3  ;;  %5184 = vpow2.f32 %v3042_v60  ;;  %v3473_v19 = vsel %vm135_vm0, %v6799_v31, -inf  ;;  %v2811_v14 = vmul.f32 1.442695, %v2796_v33 }
 0x62b   :  { %4794 = vmatmul.mubr.msk.bf16.vlgmr.msra.gmra.mrb[56].mxu0 %vm135_vm0, %v5963_v41  ;;  %v3480_v27 = vmax.f32 %v3476_v59, %v3478_v40  ;;  %v3253_v57 = vrot.slane %v3252_v29, 1  ;;  %v7427_v63 = vpack.c.bf16 %v6726_v48, %v6712_v26  ;;  %v3474_v53 = vmax.f32 %v6720_v7, %v3473_v19  ;;  %v4894_v59 = vpop.f32.mrb[122].mxu1 }
 0x62c   :  { %4815 = vmatprep.mubr.msk.bf16.mxu0 %vm5304_vm3, %v7382_v9  ;;  %v6819_v60 = vsel %vm135_vm0, %v6805_v17, -inf  ;;  %v6821_v41 = vmul.f32 0.35355338, %v3661_v6  ;;  %5186 = vpow2.f32 %v2811_v14  ;;  %v6824_v3 = vmul.f32 0.35355338, %v4890_v5  ;;  %v6838_v6 = vpop.f32.mrb[123].mxu1 }
 0x62d   :  { %4808 = vmatpush3.bf16.msra.mxu0 %v7427_v63  ;;  %v6826_v54 = vmul.f32 0.35355338, %v3664_v52  ;;  %v6828_v26 = vmul.f32 0.35355338, %v4893_v47  ;;  %v6830_v7 = vmax.f32 %v3252_v29, %v3253_v57  ;;  %v3479_v48 = vmax.f32 %v3472_v20, %v3474_v53 }
 0x62e   :  { %4809 = vmatprep.subr.bf16.mxu0 %v7382_v9  ;;  %v6834_v8 = vsel %vm135_vm0, %v6821_v41, -inf  ;;  %v6836_v23 = vmul.f32 0.35355338, %v3677_v58  ;;  %v6840_v44 = vpop.eup %5172  ;;  %v6844_v5 = vsel %vm135_vm0, %v6824_v3, -inf  ;;  %v6854_v15 = vmul.f32 0.35355338, %v4894_v59 }
 0x62f   :  { %v6848_v51 = vsel %vm135_vm0, %v6826_v54, -inf  ;;  %v6852_v24 = vsel %vm135_vm0, %v6828_v26, -inf  ;;  %v6856_v30 = vpop.eup %5174  ;;  %v3046_v12 = vsel %vm135_vm0, %v6840_v44, 0.0  ;;  %v3255_v38 = vsub.f32 %v6570_v1, %v6830_v7 }
 0x630   :  { %v3256_v20 = vsub.f32 %v6581_v61, %v6830_v7  ;;  %v3257_v52 = vsub.f32 %v6561_v10, %v6830_v7  ;;  %v6866_v22 = vpop.eup %5176  ;;  %v3047_v62 = vsel %vm135_vm0, %v6856_v30, 0.0  ;;  %v3258_v37 = vsub.f32 %v6579_v42, %v6830_v7  ;;  %v4911_v47 = vpop.f32.mrb[124].mxu1 }
 0x631   :  { %4810 = vmatpush3.bf16.msra.mxu0 %v2835_v39  ;;  %v3259_v40 = vsub.f32 %v6608_v34, %v6830_v7  ;;  %v3260_v1 = vsub.f32 %v6675_v43, %v6830_v7  ;;  %v6877_v61 = vpop.eup %5178  ;;  %v3048_v10 = vadd.f32 %v3047_v62, %v3046_v12  ;;  %v3049_v39 = vsel %vm135_vm0, %v6866_v22, 0.0  ;;  %v3894_v58 = vpop.f32.mrb[125].mxu1 }
 0x632   :  { %4811 = vmatprep.subr.bf16.mxu0 %v7382_v9  ;;  %v3261_v33 = vsub.f32 %v6598_v56, %v6830_v7  ;;  %v3263_v29 = vmul.f32 1.442695, %v3255_v38  ;;  %v6883_v42 = vpop.eup %5180  ;;  %v3051_v34 = vsel %vm135_vm0, %v6877_v61, 0.0  ;;  %v3265_v19 = vmul.f32 1.442695, %v3256_v20  ;;  %v4912_v56 = vpop.f32.mrb[126].mxu1 }
 0x633   :  { %v3267_v43 = vmul.f32 1.442695, %v3257_v52  ;;  %v3481_v14 = vmax.f32 %v3479_v48, %v3480_v27  ;;  %v6887_v57 = vpop.eup %5182  ;;  %v3050_v63 = vadd.f32 %v3049_v39, %v3048_v10  ;;  %v3053_v53 = vsel %vm135_vm0, %v6883_v42, 0.0  ;;  %v3897_v20 = vpop.f32.mrb[127].mxu1 }
 0x634   :  { %5188 = vpow2.f32 %v3263_v29  ;;  %v3269_v59 = vmul.f32 1.442695, %v3258_v37  ;;  %v6894_v12 = vpop.eup %5184  ;;  %v3055_v38 = vsel %vm135_vm0, %v6887_v57, 0.0  ;;  %v3271_v27 = vmul.f32 1.442695, %v3259_v40 }
 0x635   :  { %4812 = vmatpush3.bf16.msra.mxu0 %v2836_v50  ;;  %5190 = vpow2.f32 %v3265_v19  ;;  %v3273_v48 = vmul.f32 1.442695, %v3260_v1  ;;  %v3052_v52 = vadd.f32 %v3051_v34, %v3050_v63  ;;  %v3057_v62 = vsel %vm135_vm0, %v6894_v12, 0.0 }
 0x636   :  { %4813 = vmatprep.subr.bf16.mxu0 %v7382_v9  ;;  %5192 = vpow2.f32 %v3267_v43  ;;  %v3275_v37 = vmul.f32 1.442695, %v3261_v33  ;;  %v6901_v36 = vpop.eup %5186  ;;  %v3482_v0 = vrot.slane %v3481_v14, 4  ;;  %v3067_v50 = vpack.c.bf16 %v6856_v30, %v6840_v44 }
 0x637   :  { %5194 = vpow2.f32 %v3269_v59  ;;  %v3068_v40 = vpack.c.bf16 %v6877_v61, %v6866_v22  ;;  %v3054_v1 = vadd.f32 %v3053_v53, %v3052_v52  ;;  %v2837_v10 = vpack.c.bf16 %v6901_v36, %v6778_v21 }
 0x638   :  { %5196 = vpow2.f32 %v3271_v27  ;;  %v3709_v39 = vmax.f32 %v6819_v60, %v6852_v24  ;;  %v3483_v33 = vmax.f32 %v3481_v14, %v3482_v0  ;;  %v3704_v29 = vsel %vm135_vm0, %v6836_v23, -inf  ;;  %v4915_v21 = vpop.f32.mrb[128].mxu1 }
 0x639   :  { %5198 = vpow2.f32 %v3273_v48  ;;  %v3069_v34 = vpack.c.bf16 %v6887_v57, %v6883_v42  ;;  %v3056_v44 = vadd.f32 %v3055_v38, %v3054_v1  ;;  %4814 = vmatpush3.bf16.msra.mxu0 %v2837_v10  ;;  %v3705_v30 = vmax.f32 %v6834_v8, %v3704_v29  ;;  %v6925_v43 = vpop.f32.mrb[129].mxu1  ;;  %v7429_v38 = vld [vmem:[#allocation18_spill] sm:$0xff] }
 0x63a   :  { %5200 = vpow2.f32 %v3275_v37  ;;  %v3710_v22 = vsel %vm135_vm0, %v6854_v15, -inf  ;;  %v3484_v61 = vrot.slane %v3483_v33, 2  ;;  %4829 = vmatprep.subr.bf16.mxu0 %v7382_v9  ;;  %v6921_v24 = vmul.f32 0.35355338, %v6838_v6 }
 0x63b   :  { %v3711_v60 = vmax.f32 %v6844_v5, %v3710_v22  ;;  %v3029_v19 = vsub.f32 %v6550_v32, %v6730_v13  ;;  %v6927_v14 = vadd.f32 %v3057_v62, %v3056_v44  ;;  %v6929_v8 = vmul.f32 0.35355338, %v4911_v47  ;;  %v6939_v32 = vpop.f32.mrb[130].mxu1 }
 0x63c   :  { %v6931_v63 = vmul.f32 0.35355338, %v3894_v58  ;;  %v6933_v53 = vmul.f32 0.35355338, %v4912_v56  ;;  %v3485_v59 = vmax.f32 %v3483_v33, %v3484_v61  ;;  %4816 = vmatmul.mubr.msk.bf16.vlgmr.msra.gmra.mrb[60].mxu0 %vm135_vm0, %v7429_v38  ;;  %v3706_v6 = vsel %vm135_vm0, %v6921_v24, -inf  ;;  %v6954_v48 = vpop.f32.mrb[131].mxu1 }
 0x63d   :  { %7428 = vst [vmem:[#allocation12_spill] sm:$0xff] %v6927_v14  ;;  %v3713_v5 = vmax.f32 %v3709_v39, %v3711_v60  ;;  %v3044_v27 = vmul.f32 1.442695, %v3029_v19  ;;  %4830 = vmatpush3.bf16.msra.mxu0 %v3067_v50  ;;  %v3707_v47 = vmax.f32 %v6848_v51, %v3706_v6  ;;  %4837 = vmatprep.mubr.msk.bf16.mxu0 %vm5304_vm3, %v7382_v9  ;;  %v6948_v58 = vsel %vm135_vm0, %v6929_v8, -inf }
 0x63e   :  { %v6941_v13 = vpop.eup %5188  ;;  %v6952_v56 = vsel %vm135_vm0, %v6931_v63, -inf  ;;  %v3486_v37 = vrot.slane %v3485_v59, 1  ;;  %4831 = vmatprep.subr.bf16.mxu0 %v7382_v9  ;;  %v6963_v51 = vsel %vm135_vm0, %v6933_v53, -inf  ;;  %v6971_v39 = vmul.f32 0.35355338, %v4915_v21 }
 0x63f   :  { %v6956_v52 = vpop.eup %5190  ;;  %v3279_v62 = vsel %vm135_vm0, %v6941_v13, 0.0  ;;  %5202 = vpow2.f32 %v3044_v27  ;;  %v3712_v1 = vmax.f32 %v3705_v30, %v3707_v47  ;;  %v6979_v61 = vmul.f32 0.35355338, %v3897_v20 }
 0x640   :  { %v6965_v0 = vpop.eup %5192  ;;  %v3280_v50 = vsel %vm135_vm0, %v6956_v52, 0.0  ;;  %v6977_v22 = vmax.f32 %v3485_v59, %v3486_v37  ;;  %v3941_v38 = vsel %vm135_vm0, %v6971_v39, -inf  ;;  %v7027_v57 = vmul.f32 0.35355338, %v6939_v32 }
 0x641   :  { %v6973_v33 = vpop.eup %5194  ;;  %v3281_v29 = vadd.f32 %v3280_v50, %v3279_v62  ;;  %v3282_v44 = vsel %vm135_vm0, %v6965_v0, 0.0  ;;  %4832 = vmatpush3.bf16.msra.mxu0 %v3068_v40  ;;  %v3714_v19 = vmax.f32 %v3712_v1, %v3713_v5 }
 0x642   :  { %v6981_v60 = vpop.eup %5196  ;;  %v3284_v30 = vsel %vm135_vm0, %v6973_v33, 0.0  ;;  %v3488_v59 = vsub.f32 %v6695_v18, %v6977_v22  ;;  %v3489_v47 = vsub.f32 %v6704_v16, %v6977_v22  ;;  %4833 = vmatprep.subr.bf16.mxu0 %v7382_v9  ;;  %v3490_v62 = vsub.f32 %v6687_v45, %v6977_v22 }
 0x643   :  { %v6989_v6 = vpop.eup %5198  ;;  %v3283_v27 = vadd.f32 %v3282_v44, %v3281_v29  ;;  %v3286_v20 = vsel %vm135_vm0, %v6981_v60, 0.0  ;;  %v3491_v37 = vsub.f32 %v6702_v2, %v6977_v22  ;;  %v3492_v50 = vsub.f32 %v6722_v46, %v6977_v22 }
 0x644   :  { %v6998_v40 = vpop.eup %5200  ;;  %v3288_v5 = vsel %vm135_vm0, %v6989_v6, 0.0  ;;  %v3493_v1 = vsub.f32 %v6799_v31, %v6977_v22  ;;  %v3494_v29 = vsub.f32 %v6710_v35, %v6977_v22  ;;  %v3496_v44 = vmul.f32 1.442695, %v3488_v59 }
 0x645   :  { %v3285_v18 = vadd.f32 %v3284_v30, %v3283_v27  ;;  %v3290_v16 = vsel %vm135_vm0, %v6998_v40, 0.0  ;;  %v3498_v21 = vmul.f32 1.442695, %v3489_v47  ;;  %v3500_v10 = vmul.f32 1.442695, %v3490_v62  ;;  %4834 = vmatpush3.bf16.msra.mxu0 %v3069_v34 }
 0x646   :  { %v3942_v45 = vmax.f32 %v6948_v58, %v3941_v38  ;;  %v3502_v46 = vmul.f32 1.442695, %v3491_v37  ;;  %v3504_v30 = vmul.f32 1.442695, %v3492_v50  ;;  %v3506_v27 = vmul.f32 1.442695, %v3493_v1  ;;  %4835 = vmatprep.subr.bf16.mxu0 %v7382_v9 }
 0x647   :  { %v3287_v2 = vadd.f32 %v3286_v20, %v3285_v18  ;;  %5204 = vpow2.f32 %v3496_v44  ;;  %v3508_v31 = vmul.f32 1.442695, %v3494_v29  ;;  %v3715_v14 = vrot.slane %v3714_v19, 4 }
 0x648   :  { %v7020_v35 = vmul.f32 0.35355338, %v6925_v43  ;;  %5206 = vpow2.f32 %v3498_v21  ;;  %v3302_v42 = vpack.c.bf16 %v6989_v6, %v6981_v60  ;;  %v3943_v21 = vsel %vm135_vm0, %v7027_v57, -inf }
 0x649   :  { %v7022_v59 = vpop.eup %5202  ;;  %v3289_v47 = vadd.f32 %v3288_v5, %v3287_v2  ;;  %5208 = vpow2.f32 %v3500_v10  ;;  %v3716_v34 = vmax.f32 %v3714_v19, %v3715_v14  ;;  %v3944_v32 = vmax.f32 %v6963_v51, %v3943_v21 }
 0x64a   :  { %v3070_v58 = vpack.c.bf16 %v7022_v59, %v6894_v12  ;;  %v3937_v38 = vsel %vm135_vm0, %v7020_v35, -inf  ;;  %5210 = vpow2.f32 %v3502_v46  ;;  %v7040_v14 = vmul.f32 0.35355338, %v6954_v48 }
 0x64b   :  { %v7033_v43 = vadd.f32 %v3290_v16, %v3289_v47  ;;  %v3938_v20 = vmax.f32 %v6952_v56, %v3937_v38  ;;  %5212 = vpow2.f32 %v3504_v30  ;;  %v3717_v5 = vrot.slane %v3716_v34, 2 }
 0x64c   :  { %4836 = vmatpush3.bf16.msra.mxu0 %v3070_v58  ;;  %5214 = vpow2.f32 %v3506_v27  ;;  %v3262_v12 = vsub.f32 %v6621_v11, %v6830_v7  ;;  %v3495_v56 = vsub.f32 %v6724_v49, %v6977_v22  ;;  %v3934_v19 = vsel %vm135_vm0, %v6979_v61, -inf }
 0x64d   :  { %4851 = vmatprep.subr.bf16.mxu0 %v7382_v9  ;;  %v3718_v10 = vmax.f32 %v3716_v34, %v3717_v5  ;;  %v3946_v62 = vmax.f32 %v3942_v45, %v3944_v32  ;;  %v3939_v51 = vsel %vm135_vm0, %v7040_v14, -inf  ;;  %5216 = vpow2.f32 %v3508_v31 }
 0x64e   :  { %v3940_v48 = vmax.f32 %v3934_v19, %v3939_v51  ;;  %v3277_v37 = vmul.f32 1.442695, %v3262_v12  ;;  %v3510_v50 = vmul.f32 1.442695, %v3495_v56  ;;  %v7430_v11 = vpack.c.bf16 %v6956_v52, %v6941_v13 }
 0x64f   :  { %4838 = vmatmul.mubr.msk.bf16.vlgmr.msra.gmra.mrb[64].mxu0 %vm135_vm0, %v5848_v4  ;;  %v3719_v18 = vrot.slane %v3718_v10, 1  ;;  %v7431_v2 = vpack.c.bf16 %v6973_v33, %v6965_v0 }
 0x650   :  { %4852 = vmatpush3.bf16.msra.mxu0 %v7430_v11  ;;  %4859 = vmatprep.mubr.msk.bf16.mxu0 %vm5304_vm3, %v7382_v9  ;;  %v3945_v49 = vmax.f32 %v3938_v20, %v3940_v48  ;;  %5218 = vpow2.f32 %v3277_v37 }
 0x651   :  { %4853 = vmatprep.subr.bf16.mxu0 %v7382_v9  ;;  %v7059_v7 = vpop.eup %5204  ;;  %v3720_v22 = vmax.f32 %v3718_v10, %v3719_v18  ;;  %5220 = vpow2.f32 %v3510_v50 }
 0x652   :  { %v7061_v4 = vpop.eup %5206  ;;  %v3512_v16 = vsel %vm135_vm0, %v7059_v7, 0.0  ;;  %v3947_v1 = vmax.f32 %v3945_v49, %v3946_v62 }
 0x653   :  { %v7065_v29 = vpop.eup %5208  ;;  %v3513_v13 = vsel %vm135_vm0, %v7061_v4, 0.0  ;;  %v3721_v52 = vsub.f32 %v6821_v41, %v3720_v22  ;;  %v3722_v44 = vsub.f32 %v6826_v54, %v3720_v22  ;;  %v3723_v45 = vsub.f32 %v6805_v17, %v3720_v22 }
 0x654   :  { %4854 = vmatpush3.bf16.msra.mxu0 %v7431_v2  ;;  %v7075_v46 = vpop.eup %5210  ;;  %v3514_v30 = vadd.f32 %v3513_v13, %v3512_v16  ;;  %v3724_v27 = vsub.f32 %v6824_v3, %v3720_v22  ;;  %v3725_v31 = vsub.f32 %v6836_v23, %v3720_v22  ;;  %v3515_v41 = vsel %vm135_vm0, %v7065_v29, 0.0 }
 0x655   :  { %4855 = vmatprep.subr.bf16.mxu0 %v7382_v9  ;;  %v7080_v47 = vpop.eup %5212  ;;  %v3726_v17 = vsub.f32 %v6921_v24, %v3720_v22  ;;  %v3727_v54 = vsub.f32 %v6828_v26, %v3720_v22  ;;  %v3729_v0 = vmul.f32 1.442695, %v3721_v52  ;;  %v3517_v3 = vsel %vm135_vm0, %v7075_v46, 0.0 }
 0x656   :  { %v7086_v33 = vpop.eup %5214  ;;  %v3516_v34 = vadd.f32 %v3515_v41, %v3514_v30  ;;  %v3731_v58 = vmul.f32 1.442695, %v3722_v44  ;;  %v3733_v23 = vmul.f32 1.442695, %v3723_v45  ;;  %v3519_v38 = vsel %vm135_vm0, %v7080_v47, 0.0 }
 0x657   :  { %5222 = vpow2.f32 %v3729_v0  ;;  %v3735_v20 = vmul.f32 1.442695, %v3724_v27  ;;  %v3737_v21 = vmul.f32 1.442695, %v3725_v31  ;;  %v3521_v24 = vsel %vm135_vm0, %v7086_v33, 0.0  ;;  %v7098_v32 = vpop.eup %5216 }
 0x658   :  { %4856 = vmatpush3.bf16.msra.mxu0 %v3302_v42  ;;  %v3518_v26 = vadd.f32 %v3517_v3, %v3516_v34  ;;  %5224 = vpow2.f32 %v3731_v58  ;;  %v3739_v5 = vmul.f32 1.442695, %v3726_v17  ;;  %v3741_v12 = vmul.f32 1.442695, %v3727_v54 }
 0x659   :  { %4857 = vmatprep.subr.bf16.mxu0 %v7382_v9  ;;  %5226 = vpow2.f32 %v3733_v23  ;;  %v3948_v56 = vrot.slane %v3947_v1, 4  ;;  %v3533_v10 = vpack.c.bf16 %v7061_v4, %v7059_v7  ;;  %v3534_v6 = vpack.c.bf16 %v7075_v46, %v7065_v29 }
 0x65a   :  { %v7102_v19 = vpop.eup %5218  ;;  %v3520_v60 = vadd.f32 %v3519_v38, %v3518_v26  ;;  %5228 = vpow2.f32 %v3735_v20  ;;  %v3535_v42 = vpack.c.bf16 %v7086_v33, %v7080_v47  ;;  %v3728_v37 = vsub.f32 %v6854_v15, %v3720_v22 }
 0x65b   :  { %v7108_v62 = vpop.eup %5220  ;;  %5230 = vpow2.f32 %v3737_v21  ;;  %v3949_v51 = vmax.f32 %v3947_v1, %v3948_v56  ;;  %v3303_v48 = vpack.c.bf16 %v7102_v19, %v6998_v40  ;;  %v3523_v11 = vsel %vm135_vm0, %v7098_v32, 0.0  ;;  %v7432_v40 = vld [vmem:[#allocation19_spill] sm:$0xff] }
 0x65c   :  { %v3522_v50 = vadd.f32 %v3521_v24, %v3520_v60  ;;  %5232 = vpow2.f32 %v3739_v5  ;;  %v3536_v18 = vpack.c.bf16 %v7108_v62, %v7098_v32  ;;  %v3743_v7 = vmul.f32 1.442695, %v3728_v37  ;;  %v7433_v32 = vld [vmem:[#allocation36_spill] sm:$0xff] }
 0x65d   :  { %v3950_v49 = vrot.slane %v3949_v51, 2  ;;  %4858 = vmatpush3.bf16.msra.mxu0 %v3303_v48  ;;  %5234 = vpow2.f32 %v3741_v12  ;;  %v2826_v37 = vsel %vm135_vm0, %v6901_v36, 0.0  ;;  %v3292_v36 = vsel %vm135_vm0, %v7102_v19, 0.0 }
 0x65e   :  { %v7117_v4 = vadd.f32 %v3523_v11, %v3522_v50  ;;  %4873 = vmatprep.subr.bf16.mxu0 %v7382_v9  ;;  %5236 = vpow2.f32 %v3743_v7  ;;  %v7181_v50 = vadd.f32 %v2826_v37, %v6803_v25  ;;  %v7196_v25 = vadd.f32 %v3292_v36, %v7033_v43 }
 0x65f   :  { %v3951_v16 = vmax.f32 %v3949_v51, %v3950_v49  ;;  %v2593_v51 = vsel %vm135_vm0, %v6785_v28, 0.0  ;;  %v3059_v28 = vsel %vm135_vm0, %v7022_v59, 0.0  ;;  %v3525_v49 = vsel %vm135_vm0, %v7108_v62, 0.0 }
 0x660   :  { %4860 = vmatmul.mubr.msk.bf16.vlgmr.msra.gmra.mrb[68].mxu0 %vm135_vm0, %v7432_v40 }
 0x661   :  { %v7122_v15 = vpop.eup %5222  ;;  %v3952_v22 = vrot.slane %v3951_v16, 1  ;;  %4874 = vmatpush3.bf16.msra.mxu0 %v3533_v10  ;;  %4881 = vmatprep.mubr.msk.bf16.mxu0 %vm5304_vm3, %v7382_v9 }
 0x662   :  { %v5225_v1 = vpop.eup %5224  ;;  %v3745_v29 = vsel %vm135_vm0, %v7122_v15, 0.0  ;;  %4875 = vmatprep.subr.bf16.mxu0 %v7382_v9 }
 0x663   :  { %v7129_v13 = vpop.eup %5226  ;;  %v3746_v52 = vsel %vm135_vm0, %v5225_v1, 0.0  ;;  %v3953_v44 = vmax.f32 %v3951_v16, %v3952_v22  ;;  %v3766_v45 = vpack.c.bf16 %v5225_v1, %v7122_v15  ;;  %v7202_v16 = vadd.f32 %v3525_v49, %v7117_v4 }
 0x664   :  { %v7133_v2 = vpop.eup %5228  ;;  %v3747_v46 = vadd.f32 %v3746_v52, %v3745_v29  ;;  %v3748_v27 = vsel %vm135_vm0, %v7129_v13, 0.0 }
 0x665   :  { %v7135_v30 = vpop.eup %5230  ;;  %v3954_v31 = vsub.f32 %v6931_v63, %v3953_v44  ;;  %v3955_v47 = vsub.f32 %v6979_v61, %v3953_v44  ;;  %v3956_v41 = vsub.f32 %v6929_v8, %v3953_v44  ;;  %4876 = vmatpush3.bf16.msra.mxu0 %v3534_v6  ;;  %v3750_v0 = vsel %vm135_vm0, %v7133_v2, 0.0 }
 0x666   :  { %v7142_v17 = vpop.eup %5232  ;;  %v3749_v54 = vadd.f32 %v3748_v27, %v3747_v46  ;;  %v3957_v33 = vsub.f32 %v6933_v53, %v3953_v44  ;;  %v3958_v34 = vsub.f32 %v7020_v35, %v3953_v44  ;;  %4877 = vmatprep.subr.bf16.mxu0 %v7382_v9  ;;  %v3752_v63 = vsel %vm135_vm0, %v7135_v30, 0.0 }
 0x667   :  { %v3959_v61 = vsub.f32 %v7040_v14, %v3953_v44  ;;  %v3960_v8 = vsub.f32 %v6971_v39, %v3953_v44  ;;  %v3962_v3 = vmul.f32 1.442695, %v3954_v31  ;;  %v7153_v58 = vpop.eup %5234  ;;  %v3754_v38 = vsel %vm135_vm0, %v7142_v17, 0.0 }
 0x668   :  { %v3751_v23 = vadd.f32 %v3750_v0, %v3749_v54  ;;  %v3964_v20 = vmul.f32 1.442695, %v3955_v47  ;;  %v3966_v53 = vmul.f32 1.442695, %v3956_v41  ;;  %v7157_v21 = vpop.eup %5236  ;;  %v3968_v35 = vmul.f32 1.442695, %v3957_v33 }
 0x669   :  { %5238 = vpow2.f32 %v3962_v3  ;;  %v3970_v26 = vmul.f32 1.442695, %v3958_v34  ;;  %v3972_v24 = vmul.f32 1.442695, %v3959_v61  ;;  %4878 = vmatpush3.bf16.msra.mxu0 %v3535_v42  ;;  %v3974_v14 = vmul.f32 1.442695, %v3960_v8 }
 0x66a   :  { %v3753_v5 = vadd.f32 %v3752_v63, %v3751_v23  ;;  %5240 = vpow2.f32 %v3964_v20  ;;  %4879 = vmatprep.subr.bf16.mxu0 %v7382_v9  ;;  %v3767_v39 = vpack.c.bf16 %v7133_v2, %v7129_v13  ;;  %v3768_v12 = vpack.c.bf16 %v7142_v17, %v7135_v30  ;;  %v7435_v2 = vld [vmem:[#allocation10_spill] sm:$0xff]  ;;  %v7436_v8 = vld [vmem:[#allocation21_spill] sm:$0xff] }
 0x66b   :  { %5242 = vpow2.f32 %v3966_v53  ;;  %v3769_v56 = vpack.c.bf16 %v7157_v21, %v7153_v58  ;;  %v3961_v10 = vsub.f32 %v7027_v57, %v3953_v44  ;;  %v3756_v6 = vsel %vm135_vm0, %v7153_v58, 0.0 }
 0x66c   :  { %v3755_v60 = vadd.f32 %v3754_v38, %v3753_v5  ;;  %5244 = vpow2.f32 %v3968_v35  ;;  %v7176_v57 = vadd.f32 %v2593_v51, %v6677_v55  ;;  %v7434_v55 = vld [vmem:[#allocation12_spill] sm:$0xff]  ;;  %v1430_v46 = vrot.slane %v7435_v2, 4  ;;  %v7439_v5 = vld [vmem:[#allocation37_spill] sm:$0xff] }
 0x66d   :  { %5246 = vpow2.f32 %v3970_v26  ;;  %4880 = vmatpush3.bf16.msra.mxu0 %v3536_v18  ;;  %v3976_v42 = vmul.f32 1.442695, %v3961_v10  ;;  %v7190_v18 = vadd.f32 %v3059_v28, %v7434_v55  ;;  %v3758_v17 = vsel %vm135_vm0, %v7157_v21, 0.0  ;;  %v7437_v21 = vld [vmem:[#allocation7_spill] sm:$0xff]  ;;  %v7438_v26 = vld [vmem:[#allocation9_spill] sm:$0xff] }
 0x66e   :  { %v3757_v48 = vadd.f32 %v3756_v6, %v3755_v60  ;;  %5248 = vpow2.f32 %v3972_v24  ;;  %4895 = vmatprep.subr.bf16.mxu0 %v7382_v9  ;;  %v1431_v0 = vadd.f32 %v1430_v46, %v7435_v2  ;;  %v1661_v35 = vsel %vm135_vm0, %v7437_v21, 0.0  ;;  %v7441_v28 = vld [vmem:[#allocation11_spill] sm:$0xff] }
 0x66f   :  { %5250 = vpow2.f32 %v3974_v14  ;;  %v1662_v24 = vadd.f32 %v1661_v35, %v7438_v26 }
 0x670   :  { %4882 = vmatmul.mubr.msk.bf16.vlgmr.msra.gmra.mrb[72].mxu0 %vm135_vm0, %v7433_v32  ;;  %5252 = vpow2.f32 %v3976_v42  ;;  %v7215_v33 = vadd.f32 %v3758_v17, %v3757_v48  ;;  %v1432_v3 = vrot.slane %v1431_v0, 2  ;;  %v7440_v48 = vld [vmem:[#allocation23_spill] sm:$0xff] }
 0x671   :  { %4896 = vmatpush3.bf16.msra.mxu0 %v3766_v45  ;;  %4903 = vmatprep.mubr.msk.bf16.mxu0 %vm5304_vm3, %v7382_v9  ;;  %v1663_v14 = vrot.slane %v1662_v24, 4  ;;  %v1894_v37 = vsel %vm135_vm0, %v7440_v48, 0.0 }
 0x672   :  { %4897 = vmatprep.subr.bf16.mxu0 %v7382_v9  ;;  %v1433_v38 = vadd.f32 %v1432_v3, %v1431_v0  ;;  %v1895_v55 = vadd.f32 %v1894_v37, %v7441_v28  ;;  %v2828_v28 = vrot.slane %v7181_v50, 4 }
 0x673   :  { %v5239_v11 = vpop.eup %5238 }
 0x674   :  { %v5241_v59 = vpop.eup %5240  ;;  %v3978_v7 = vsel %vm135_vm0, %v5239_v11, 0.0  ;;  %v1434_v20 = vrot.slane %v1433_v38, 1 }
 0x675   :  { %v5243_v40 = vpop.eup %5242  ;;  %v3979_v15 = vsel %vm135_vm0, %v5241_v59, 0.0  ;;  %4898 = vmatpush3.bf16.msra.mxu0 %v3767_v39  ;;  %v3999_v19 = vpack.c.bf16 %v5241_v59, %v5239_v11  ;;  %v1664_v39 = vadd.f32 %v1663_v14, %v1662_v24  ;;  %v1896_v11 = vrot.slane %v1895_v55, 4 }
 0x676   :  { %v5245_v22 = vpop.eup %5244  ;;  %v3980_v1 = vadd.f32 %v3979_v15, %v3978_v7  ;;  %4899 = vmatprep.subr.bf16.mxu0 %v7382_v9  ;;  %v3981_v29 = vsel %vm135_vm0, %v5243_v40, 0.0  ;;  %v1435_v53 = vadd.f32 %v1434_v20, %v1433_v38  ;;  %v7442_v7 = vld [vmem:[#allocation25_spill] sm:$0xff] }
 0x677   :  { %v5247_v43 = vpop.eup %5246  ;;  %v4000_v13 = vpack.c.bf16 %v5245_v22, %v5243_v40  ;;  %v3983_v45 = vsel %vm135_vm0, %v5245_v22, 0.0  ;;  %v1665_v10 = vrot.slane %v1664_v39, 2  ;;  %v1897_v49 = vadd.f32 %v1896_v11, %v1895_v55 }
 0x678   :  { %v5249_v62 = vpop.eup %5248  ;;  %v3982_v52 = vadd.f32 %v3981_v29, %v3980_v1  ;;  %v3985_v31 = vsel %vm135_vm0, %v5247_v43, 0.0  ;;  %5254 = vrcp.f32 %v1435_v53  ;;  %v2127_v40 = vsel %vm135_vm0, %v7442_v7, 0.0 }
 0x679   :  { %v5251_v44 = vpop.eup %5250  ;;  %4900 = vmatpush3.bf16.msra.mxu0 %v3768_v12  ;;  %v4001_v4 = vpack.c.bf16 %v5249_v62, %v5247_v43  ;;  %v3987_v54 = vsel %vm135_vm0, %v5249_v62, 0.0  ;;  %v1666_v51 = vadd.f32 %v1665_v10, %v1664_v39  ;;  %v1898_v59 = vrot.slane %v1897_v49, 2 }
 0x67a   :  { %v5253_v30 = vpop.eup %5252  ;;  %v3984_v27 = vadd.f32 %v3983_v45, %v3982_v52  ;;  %4901 = vmatprep.subr.bf16.mxu0 %v7382_v9  ;;  %v3989_v63 = vsel %vm135_vm0, %v5251_v44, 0.0  ;;  %v2595_v39 = vrot.slane %v7176_v57, 4  ;;  %v2829_v11 = vadd.f32 %v2828_v28, %v7181_v50 }
 0x67b   :  { %v4002_v47 = vpack.c.bf16 %v5253_v30, %v5251_v44  ;;  %v3991_v58 = vsel %vm135_vm0, %v5253_v30, 0.0  ;;  %v1667_v32 = vrot.slane %v1666_v51, 1  ;;  %v1899_v15 = vadd.f32 %v1898_v59, %v1897_v49 }
 0x67c   :  { %v3986_v41 = vadd.f32 %v3985_v31, %v3984_v27  ;;  %v7444_v27 = vld [vmem:[#allocation26_spill] sm:$0xff]  ;;  %v2596_v10 = vadd.f32 %v2595_v39, %v7176_v57  ;;  %v2830_v49 = vrot.slane %v2829_v11, 2 }
 0x67d   :  { %4902 = vmatpush3.bf16.msra.mxu0 %v3769_v56  ;;  %v1668_v36 = vadd.f32 %v1667_v32, %v1666_v51  ;;  %v1900_v52 = vrot.slane %v1899_v15, 1  ;;  %v2360_v31 = vsel %vm135_vm0, %v7444_v27, 0.0 }
 0x67e   :  { %v3988_v34 = vadd.f32 %v3987_v54, %v3986_v41  ;;  %4917 = vmatprep.subr.bf16.mxu0 %v7382_v9  ;;  %v2831_v57 = vadd.f32 %v2830_v49, %v2829_v11 }
 0x67f   :  { %5256 = vrcp.f32 %v1668_v36 }
 0x680   :  { %v3990_v61 = vadd.f32 %v3989_v63, %v3988_v34  ;;  %4904 = vmatmul.mubr.msk.bf16.vlgmr.msra.gmra.mrb[76].mxu0 %vm135_vm0, %v7436_v8 }
 0x681   :  { %4918 = vmatpush3.bf16.msra.mxu0 %v3999_v19  ;;  %4925 = vmatprep.mubr.msk.bf16.mxu0 %vm5304_vm3, %v7382_v9  ;;  %v7443_v19 = vld [vmem:[#allocation24_spill] sm:$0xff] }
 0x682   :  { %4919 = vmatprep.subr.bf16.mxu0 %v7382_v9  ;;  %v7225_v23 = vadd.f32 %v3991_v58, %v3990_v61  ;;  %v5255_v12 = vpop.eup %5254  ;;  %v2128_v22 = vadd.f32 %v2127_v40, %v7443_v19  ;;  %v2832_v40 = vrot.slane %v2831_v57, 1 }
 0x684   :  { %v2129_v44 = vrot.slane %v2128_v22, 4 }
 0x685   :  { %4920 = vmatpush3.bf16.msra.mxu0 %v4000_v13 }
 0x686   :  { %4921 = vmatprep.subr.bf16.mxu0 %v7382_v9  ;;  %v2130_v2 = vadd.f32 %v2129_v44, %v2128_v22 }
 0x688   :  { %v2131_v46 = vrot.slane %v2130_v2, 2 }
 0x689   :  { %4922 = vmatpush3.bf16.msra.mxu0 %v4001_v4  ;;  %v5257_v1 = vpop.eup %5256  ;;  %v1901_v4 = vadd.f32 %v1900_v52, %v1899_v15 }
 0x68a   :  { %4923 = vmatprep.subr.bf16.mxu0 %v7382_v9  ;;  %v2132_v30 = vadd.f32 %v2131_v46, %v2130_v2 }
 0x68b   :  { %5258 = vrcp.f32 %v1901_v4 }
 0x68c   :  { %v2133_v17 = vrot.slane %v2132_v30, 1 }
 0x68d   :  { %4924 = vmatpush3.bf16.msra.mxu0 %v4002_v47  ;;  %v7445_v47 = vld [vmem:[#allocation22_spill] sm:$0xff] }
 0x68e   :  { %v2361_v41 = vadd.f32 %v2360_v31, %v7445_v47  ;;  %v2134_v3 = vadd.f32 %v2133_v17, %v2132_v30  ;;  %v3294_v30 = vrot.slane %v7196_v25, 4 }
 0x690   :  { %4926 = vmatmul.mubr.msk.bf16.vlgmr.msra.gmra.mrb[80].mxu0 %vm135_vm0, %v7439_v5  ;;  %v2362_v34 = vrot.slane %v2361_v41, 4  ;;  %5260 = vrcp.f32 %v2134_v3  ;;  %v3295_v47 = vadd.f32 %v3294_v30, %v7196_v25  ;;  %v5305_v30 = vmov 0  }
 0x691   :  { %4968 = vset.pattern.permute.xlu0 %v5305_v30  ;;  %4969 = vset.pattern.permute.xlu1 %v5305_v30 }
 0x692   :  { %v2363_v38 = vadd.f32 %v2362_v34, %v2361_v41  ;;  %v3296_v41 = vrot.slane %v3295_v47, 2  ;;  %v3527_v34 = vrot.slane %v7202_v16, 4 }
 0x694   :  { %v2364_v20 = vrot.slane %v2363_v38, 2 }
 0x695   :  { %v5259_v54 = vpop.eup %5258 }
 0x696   :  { %v2365_v53 = vadd.f32 %v2364_v20, %v2363_v38  ;;  %v3528_v38 = vadd.f32 %v3527_v34, %v7202_v16 }
 0x698   :  { %v2366_v26 = vrot.slane %v2365_v53, 1  ;;  %v3529_v20 = vrot.slane %v3528_v38, 2 }
 0x69a   :  { %v1477_v56 = vpop.f32.mrb[36].mxu0  ;;  %v5261_v21 = vpop.eup %5260 }
 0x69b   :  { %v1484_v60 = vmul.f32 %v5255_v12, %v1477_v56  ;;  %v4685_v6 = vpop.f32.mrb[37].mxu0  ;;  %v2367_v56 = vadd.f32 %v2366_v26, %v2365_v53  ;;  %v3530_v53 = vadd.f32 %v3529_v20, %v3528_v38 }
 0x69c   :  { %v1480_v42 = vpop.f32.mrb[38].mxu0 }
 0x69d   :  { %1485 = vst.msk [vmem:[#allocation3 + $0x10] sm:$0xff] %vm135_vm0, %v1484_v60  ;;  %v4686_v9 = vpop.f32.mrb[39].mxu0  ;;  %5262 = vrcp.f32 %v2367_v56  ;;  %v2597_v60 = vrot.slane %v2596_v10, 2 }
 0x69f   :  { %v2598_v6 = vadd.f32 %v2597_v60, %v2596_v10 }
 0x6a1   :  { %v2599_v51 = vrot.slane %v2598_v6, 1 }
 0x6a3   :  { %v2600_v36 = vadd.f32 %v2599_v51, %v2598_v6 }
 0x6a5   :  { %5264 = vrcp.f32 %v2600_v36 }
 0x6a7   :  { %v5263_v42 = vpop.eup %5262 }
 0x6af   :  { %v5265_v59 = vpop.eup %5264 }
 0x6b4   :  { %v1713_v43 = vpop.f32.mrb[40].mxu0 }
 0x6b5   :  { %v1720_v29 = vmul.f32 %v5257_v1, %v1713_v43  ;;  %v4707_v13 = vpop.f32.mrb[41].mxu0  ;;  %v3061_v1 = vrot.slane %v7190_v18, 4 }
 0x6b6   :  { %v1716_v62 = vpop.f32.mrb[42].mxu0 }
 0x6b7   :  { %1722 = vrot.lane.b32.xlu0 %v1720_v29, %s5302_s14  ;;  %v4708_v45 = vpop.f32.mrb[43].mxu0  ;;  %v2833_v29 = vadd.f32 %v2832_v40, %v2831_v57  ;;  %v3062_v13 = vadd.f32 %v3061_v1, %v7190_v18  ;;  %v3297_v18 = vadd.f32 %v3296_v41, %v3295_v47  ;;  %v4078_v47 = vld [vmem:[%s7330_s3 + $0x10] sm:$0xff]  ;;  %v4081_v41 = vld [vmem:[%s7330_s3 + $0x28] sm:$0xff] }
 0x6b9   :  { %5266 = vrcp.f32 %v2833_v29  ;;  %v3063_v62 = vrot.slane %v3062_v13, 2 }
 0x6bb   :  { %v3064_v50 = vadd.f32 %v3063_v62, %v3062_v13 }
 0x6bd   :  { %v3065_v45 = vrot.slane %v3064_v50, 1 }
 0x6bf   :  { %v3066_v31 = vadd.f32 %v3065_v45, %v3064_v50 }
 0x6c1   :  { %5268 = vrcp.f32 %v3066_v31  ;;  %v4079_v31 = vld [vmem:[%s7330_s3 + $0x18] sm:$0xff] }
 0x6c3   :  { %v5267_v52 = vpop.eup %5266 }
 0x6ca   :  { %v1943_v0 = vpop.f32.mrb[44].mxu0 }
 0x6cb   :  { %v1950_v63 = vmul.f32 %v5259_v54, %v1943_v0  ;;  %v4729_v61 = vpop.f32.mrb[45].mxu0  ;;  %v5269_v17 = vpop.eup %5268  ;;  %v3298_v0 = vrot.slane %v3297_v18, 1 }
 0x6cc   :  { %v1946_v8 = vpop.f32.mrb[46].mxu0 }
 0x6cd   :  { %1951 = vst.msk [vmem:[#allocation3 + $0x18] sm:$0xff] %vm135_vm0, %v1950_v63  ;;  %v4730_v58 = vpop.f32.mrb[47].mxu0 }
 0x6ce   :  { %v3299_v58 = vadd.f32 %v3298_v0, %v3297_v18  ;;  %v4080_v18 = vld [vmem:[%s7330_s3 + $0x20] sm:$0xff] }
 0x6d0   :  { %5270 = vrcp.f32 %v3299_v58 }
 0x6da   :  { %v5271_v26 = vpop.eup %5270 }
 0x6db   :  { %v2179_v35 = vpop.f32.mrb[48].mxu0 }
 0x6dc   :  { %v2186_v24 = vmul.f32 %v5261_v21, %v2179_v35  ;;  %v4751_v5 = vpop.f32.mrb[49].mxu0  ;;  %v3531_v21 = vrot.slane %v3530_v53, 1  ;;  %v3760_v35 = vrot.slane %v7215_v33, 4 }
 0x6dd   :  { %v2182_v14 = vpop.f32.mrb[50].mxu0 }
 0x6de   :  { %v4752_v12 = vpop.f32.mrb[51].mxu0  ;;  %2188 = vrot.lane.b32.xlu1 %v2186_v24, %s5302_s14  ;;  %v3761_v56 = vadd.f32 %v3760_v35, %v7215_v33 }
 0x6df   :  { %v3532_v12 = vadd.f32 %v3531_v21, %v3530_v53  ;;  %v4988_v53 = vld [vmem:[%s7329_s2 + $0x10] sm:$0xff]   ;;  %v4989_v21 = vld [vmem:[%s7329_s2 + $0x18] sm:$0xff]  }
 0x6e0   :  { %v3762_v10 = vrot.slane %v3761_v56, 2 }
 0x6e1   :  { %5272 = vrcp.f32 %v3532_v12 }
 0x6e2   :  { %v3763_v60 = vadd.f32 %v3762_v10, %v3761_v56 }
 0x6e4   :  { %v3764_v6 = vrot.slane %v3763_v60, 1 }
 0x6e6   :  { %v3765_v28 = vadd.f32 %v3764_v6, %v3763_v60 }
 0x6e8   :  { %5274 = vrcp.f32 %v3765_v28 }
 0x6eb   :  { %v2409_v9 = vpop.f32.mrb[52].mxu0 }
 0x6ec   :  { %v2416_v48 = vmul.f32 %v5263_v42, %v2409_v9  ;;  %v4773_v37 = vpop.f32.mrb[53].mxu0  ;;  %v3993_v42 = vrot.slane %v7225_v23, 4  ;;  %v5273_v9 = vpop.eup %5272 }
 0x6ed   :  { %v2412_v32 = vpop.f32.mrb[54].mxu0 }
 0x6ee   :  { %2417 = vst.msk [vmem:[#allocation3 + $0x20] sm:$0xff] %vm135_vm0, %v2416_v48  ;;  %v4774_v55 = vpop.f32.mrb[55].mxu0 }
 0x6ef   :  { %v3994_v55 = vadd.f32 %v3993_v42, %v7225_v23 }
 0x6f1   :  { %v3995_v36 = vrot.slane %v3994_v55, 2 }
 0x6f3   :  { %v3996_v11 = vadd.f32 %v3995_v36, %v3994_v55 }
 0x6f5   :  { %v3997_v57 = vrot.slane %v3996_v11, 1 }
 0x6fe   :  { %v2645_v7 = vpop.f32.mrb[56].mxu0 }
 0x6ff   :  { %v2652_v15 = vmul.f32 %v5265_v59, %v2645_v7  ;;  %v4795_v19 = vpop.f32.mrb[57].mxu0  ;;  %v5275_v59 = vpop.eup %5274 }
 0x700   :  { %v2648_v22 = vpop.f32.mrb[58].mxu0 }
 0x701   :  { %2654 = vrot.lane.b32.xlu0 %v2652_v15, %s5302_s14  ;;  %v4796_v43 = vpop.f32.mrb[59].mxu0  ;;  %v3998_v22 = vadd.f32 %v3997_v57, %v3996_v11 }
 0x703   :  { %5276 = vrcp.f32 %v3998_v22 }
 0x70d   :  { %v5277_v13 = vpop.eup %5276 }
 0x70f   :  { %v2875_v44 = vpop.f32.mrb[60].mxu0 }
 0x710   :  { %v2882_v4 = vmul.f32 %v5267_v52, %v2875_v44  ;;  %v4817_v2 = vpop.f32.mrb[61].mxu0  ;;  %v4986_v44 = vld [vmem:[%s7329_s2] sm:$0xff]  }
 0x711   :  { %v2878_v46 = vpop.f32.mrb[62].mxu0  ;;  %4937 = vmatprep.mubr.msk.bf16.mxu1 %vm135_vm0, %v4986_v44  ;;  %v4076_v2 = vld [vmem:[%s7330_s3] sm:$0xff] }
 0x712   :  { %2883 = vst.msk [vmem:[#allocation3 + $0x28] sm:$0xff] %vm135_vm0, %v2882_v4  ;;  %v4818_v27 = vpop.f32.mrb[63].mxu0  ;;  %v4077_v46 = vld [vmem:[%s7330_s3 + $0x8] sm:$0xff] }
 0x722   :  { %v3111_v54 = vpop.f32.mrb[64].mxu0 }
 0x723   :  { %v3118_v63 = vmul.f32 %v5269_v17, %v3111_v54  ;;  %v4839_v61 = vpop.f32.mrb[65].mxu0  ;;  %v4083_v17 = vld [vmem:[%s7330_s3 + $0x38] sm:$0xff]  ;;  %v4082_v54 = vld [vmem:[%s7330_s3 + $0x30] sm:$0xff] }
 0x724   :  { %v3114_v8 = vpop.f32.mrb[66].mxu0 }
 0x725   :  { %v4840_v3 = vpop.f32.mrb[67].mxu0  ;;  %3120 = vrot.lane.b32.xlu1 %v3118_v63, %s5302_s14 }
 0x729   :  { %v1723_v25 = vpop.permute.xlu0 %1722 }
 0x72a   :  { %1725 = vst.msk [vmem:[#allocation3 + $0x10] sm:$0xff] %vm792_vm4, %v1723_v25  ;;  %v4987_v25 = vld [vmem:[%s7329_s2 + $0x8] sm:$0xff]   ;;  %s5306_s2 = smov [#allocation4]  }
 0x72b   :  { %s4234_s16 = sshll.u32 %s5306_s2, 4  ;;  %s4235_s16 = int_to_ptr.vmem [resolvable:$true] %s4234_s16 }
 0x72c   :  { %s5278_s17 = scalar_lea.vmem %s4235_s16, 1024  ;;  %p5283_p1 = scmp.lt.s32.totalorder %s4235_s16, %s4235_s16 }
 0x72d   :  { %p5279_p0 = scmp.ne.s32.totalorder %s4235_s16, %s5278_s17  ;;  %p5284_p2 = scmp.lt.s32.totalorder %s5278_s17, %s5278_s17 }
 0x72f   :  { %p5285_p3 = por %p5284_p2, %p5283_p1 }
 0x731   :  { %v4066_v23 = vld [vmem:[#allocation3 + $0x10] sm:$0xff]  ;;  %p5286_p4 = pnand %p5285_p3, %p5279_p0 }
 0x733   :  { %v3341_v24 = vpop.f32.mrb[68].mxu0 }
 0x734   :  { %v3348_v5 = vmul.f32 %v5271_v26, %v3341_v24  ;;  %v4861_v14 = vpop.f32.mrb[69].mxu0 }
 0x735   :  { %v3344_v39 = vpop.f32.mrb[70].mxu0 }
 0x736   :  { %3349 = vst.msk [vmem:[#allocation3 + $0x30] sm:$0xff] %vm135_vm0, %v3348_v5  ;;  %v4862_v16 = vpop.f32.mrb[71].mxu0 }
 0x743   :  { %v3577_v51 = vpop.f32.mrb[72].mxu0 }
 0x744   :  { %v3584_v48 = vmul.f32 %v5273_v9, %v3577_v51  ;;  %v4883_v37 = vpop.f32.mrb[73].mxu0 }
 0x745   :  { %v3580_v32 = vpop.f32.mrb[74].mxu0 }
 0x746   :  { %3586 = vrot.lane.b32.xlu0 %v3584_v48, %s5302_s14  ;;  %v4884_v33 = vpop.f32.mrb[75].mxu0 }
 0x74a   :  { %4086 = vperm.xlu0 %4968, %v4076_v2  }
 0x74e   :  { %4101 = vperm.xlu0 %4968, %v4079_v31  }
 0x750   :  { %v2189_v49 = vpop.permute.xlu1 %2188 }
 0x751   :  { %2191 = vst.msk [vmem:[#allocation3 + $0x18] sm:$0xff] %vm792_vm4, %v2189_v49 }
 0x752   :  { %4111 = vperm.xlu0 %4968, %v4081_v41  }
 0x753   :  { %v3807_v7 = vpop.f32.mrb[76].mxu0 }
 0x754   :  { %v3814_v40 = vmul.f32 %v5275_v59, %v3807_v7  ;;  %v4905_v15 = vpop.f32.mrb[77].mxu0 }
 0x755   :  { %v3810_v19 = vpop.f32.mrb[78].mxu0 }
 0x756   :  { %3815 = vst.msk [vmem:[#allocation3 + $0x38] sm:$0xff] %vm135_vm0, %v3814_v40  ;;  %v4906_v1 = vpop.f32.mrb[79].mxu0  ;;  %4121 = vperm.xlu0 %4968, %v4083_v17  }
 0x758   :  { %v4067_v43 = vld [vmem:[#allocation3 + $0x18] sm:$0xff] }
 0x759   :  { %v4073_v29 = vpack.c.bf16 %v4067_v43, %v4066_v23 }
 0x75b   :  { %4931 = vmatprep.subr.bf16.mxu1 %v4073_v29 }
 0x75c   :  { %4932 = vmatpush3.bf16.msra.mxu1 %v4073_v29 }
 0x763   :  { %v4043_v62 = vpop.f32.mrb[80].mxu0 }
 0x764   :  { %v4050_v50 = vmul.f32 %v5277_v13, %v4043_v62  ;;  %v4927_v52 = vpop.f32.mrb[81].mxu0 }
 0x765   :  { %v4046_v45 = vpop.f32.mrb[82].mxu0 }
 0x766   :  { %v4928_v4 = vpop.f32.mrb[83].mxu0  ;;  %4052 = vrot.lane.b32.xlu1 %v4050_v50, %s5302_s14 }
 0x76a   :  { %4091 = vperm.xlu1 %4969, %v4077_v46  }
 0x76e   :  { %4096 = vperm.xlu1 %4969, %v4078_v47  }
 0x772   :  { %4106 = vperm.xlu1 %4969, %v4080_v18  }
 0x773   :  { %v2655_v27 = vpop.permute.xlu0 %2654 }
 0x774   :  { %2657 = vst.msk [vmem:[#allocation3 + $0x20] sm:$0xff] %vm792_vm4, %v2655_v27 }
 0x776   :  { %4116 = vperm.xlu1 %4969, %v4082_v54  }
 0x77b   :  { %v4068_v34 = vld [vmem:[#allocation3 + $0x20] sm:$0xff] }
 0x797   :  { %v3121_v0 = vpop.permute.xlu1 %3120 }
 0x798   :  { %3123 = vst.msk [vmem:[#allocation3 + $0x28] sm:$0xff] %vm792_vm4, %v3121_v0 }
 0x79f   :  { %v4069_v63 = vld [vmem:[#allocation3 + $0x28] sm:$0xff] }
 0x7a0   :  { %v4074_v61 = vpack.c.bf16 %v4069_v63, %v4068_v34 }
 0x7a2   :  { %4933 = vmatprep.subr.bf16.mxu1 %v4074_v61 }
 0x7a3   :  { %4934 = vmatpush3.bf16.msra.mxu1 %v4074_v61 }
 0x7b8   :  { %v3587_v8 = vpop.permute.xlu0 %3586 }
 0x7b9   :  { %3589 = vst.msk [vmem:[#allocation3 + $0x30] sm:$0xff] %vm792_vm4, %v3587_v8 }
 0x7c0   :  { %v4070_v58 = vld [vmem:[#allocation3 + $0x30] sm:$0xff] }
 0x7c9   :  { %v4087_v26 = vpop.permute.xlu0 %4086 }
 0x7cd   :  { %v4102_v5 = vpop.permute.xlu0 %4101 }
 0x7d1   :  { %v4112_v42 = vpop.permute.xlu0 %4111 }
 0x7d5   :  { %v4122_v28 = vpop.permute.xlu0 %4121 }
 0x7d8   :  { %v4053_v3 = vpop.permute.xlu1 %4052 }
 0x7d9   :  { %4055 = vst.msk [vmem:[#allocation3 + $0x38] sm:$0xff] %vm792_vm4, %v4053_v3 }
 0x7e0   :  { %v4071_v38 = vld [vmem:[#allocation3 + $0x38] sm:$0xff] }
 0x7e1   :  { %v4075_v20 = vpack.c.bf16 %v4071_v38, %v4070_v58 }
 0x7e3   :  { %4935 = vmatprep.subr.bf16.mxu1 %v4075_v20 }
 0x7e4   :  { %4936 = vmatpush3.bf16.msra.mxu1 %v4075_v20 }
 0x7e7   :  { %4938 = vmatmul.mubr.msk.bf16.vlgmr.msra.gmra.mrb[132].mxu1 %vm135_vm0, %v4987_v25 }
 0x7e8   :  { %4941 = vmatprep.mubr.msk.bf16.mxu1 %vm135_vm0, %v4988_v53 }
 0x7e9   :  { %v4092_v35 = vpop.permute.xlu1 %4091 }
 0x7ed   :  { %v4097_v24 = vpop.permute.xlu1 %4096 }
 0x7ef   :  { %4942 = vmatmul.mubr.msk.bf16.gmra.mrb[136].mxu1 %vm135_vm0, %v4989_v21 }
 0x7f1   :  { %v4107_v56 = vpop.permute.xlu1 %4106 }
 0x7f5   :  { %v4117_v51 = vpop.permute.xlu1 %4116 }
 0x8ba   :  { %v4939_v14 = vpop.f32.mrb[132].mxu1 }
 0x8bb   :  { %v4199_v39 = vadd.f32 %v4939_v14, %v4097_v24  ;;  %v4190_v12 = vpop.f32.mrb[133].mxu1 }
 0x8bc   :  { %v4191_v16 = vadd.f32 %v4190_v12, %v4087_v26  ;;  %v4940_v10 = vpop.f32.mrb[134].mxu1 }
 0x8bd   :  { %4223 = vst [vmem:[#allocation4 + $0x10] sm:$0xff] %v4199_v39  ;;  %v4202_v60 = vadd.f32 %v4940_v10, %v4102_v5  ;;  %v4193_v6 = vpop.f32.mrb[135].mxu1 }
 0x8be   :  { %4221 = vst [vmem:[#allocation4] sm:$0xff] %v4191_v16  ;;  %v4194_v9 = vadd.f32 %v4193_v6, %v4092_v35 }
 0x8bf   :  { %4224 = vst [vmem:[#allocation4 + $0x18] sm:$0xff] %v4202_v60 }
 0x8c0   :  { %4222 = vst [vmem:[#allocation4 + $0x8] sm:$0xff] %v4194_v9 }
 0x8c2   :  { %v4943_v48 = vpop.f32.mrb[136].mxu1 }
 0x8c3   :  { %v4215_v37 = vadd.f32 %v4943_v48, %v4117_v51  ;;  %v4206_v32 = vpop.f32.mrb[137].mxu1 }
 0x8c4   :  { %v4207_v55 = vadd.f32 %v4206_v32, %v4107_v56  ;;  %v4944_v33 = vpop.f32.mrb[138].mxu1 }
 0x8c5   :  { %4227 = vst [vmem:[#allocation4 + $0x30] sm:$0xff] %v4215_v37  ;;  %v4218_v36 = vadd.f32 %v4944_v33, %v4122_v28  ;;  %v4209_v11 = vpop.f32.mrb[139].mxu1 }
 0x8c6   :  { %4225 = vst [vmem:[#allocation4 + $0x20] sm:$0xff] %v4207_v55  ;;  %v4210_v49 = vadd.f32 %v4209_v11, %v4112_v42 }
 0x8c7   :  { %4228 = vst [vmem:[#allocation4 + $0x38] sm:$0xff] %v4218_v36 }
 0x8c8   :  { %4226 = vst [vmem:[#allocation4 + $0x28] sm:$0xff] %v4210_v49 }
 0x8c9   :  { %5289 = shalt.err (!%p5286_p4)
}
 0x8ca   :  { %s5290_s20 = scalar_lea.hbm %s7331_s4, 1024 }
 0x8cb   :  { %p5291_p5 = scmp.ne.s32.totalorder %s7331_s4, %s5290_s20  ;;  %p5294_p6 = scmp.lt.u32.totalorder %s5290_s20, %s7331_s4 }
 0x8cd   :  { %p5296_p7 = pnand %p5294_p6, %p5291_p5 }
 0x8cf   :  { %5299 = shalt.err (!%p5296_p7)
}
 0x8d0   :  { %s5307_s24 = smov 128   ;;  %s5308_s25 = smov 8  }
 0x8d1   :  { %4240 = dma.vmem_to_hbm [thread:$0]  %s4235_s16, 1024, %s7331_s4, [#allocation5], %s5307_s24, %s5307_s24, %s5308_s25  }
 0x8d2   :  { %5300 = dma.done.wait [#allocation5], 1024  }
 0x8d3   :  { %5301 = vsyncadd [#allocation5], 4294966272 }
 0x8d4   :  { %4244 = vsyncpa [#allocation5], 1 }

</bundles_post_ra>
